<compile_context>
chip_gen: v5e
topology: v5e:2x2
jax: 0.10.0
libtpu: 0.0.40
codegen_flags: <defaults>
</compile_context>

<pallas_src>
import functools

import jax
import jax.numpy as jnp
from jax import lax
from jax.experimental import pallas as pl
from jax.experimental.pallas import tpu as pltpu

LANES = 128          # lane width / padded output-channel dim
TM_MAX = 512         # row tile (B*OH*OW axis) for large layers
ROW_ALIGN = 16       # bf16 packs (16,128) per vreg -> 16-row alignment
BN_EPS = 1e-5
LEAKY_SLOPE = 0.2


def _ceil_to(x, m):
    return (x + m - 1) // m * m


# ---------------------------------------------------------------------------
# Pallas kernels
# ---------------------------------------------------------------------------

def _conv_bias_act_kernel(x_ref, w_ref, b_ref, o_ref, *, act):
    """Fused conv-matmul + bias + activation for one row tile (no BN)."""
    y = jnp.dot(x_ref[...], w_ref[...], preferred_element_type=jnp.float32)
    y = y + b_ref[...]
    if act == "leaky":
        y = jnp.where(y > 0, y, LEAKY_SLOPE * y)
    else:  # sigmoid (approx reciprocal uses the EUP slot; fine at 3e-2 tol)
        y = pl.reciprocal(1.0 + jnp.exp(-y), approx=True)
    o_ref[...] = y.astype(o_ref.dtype)


def conv_bias_act(patches, wmat, bias, act, tm, out_dtype):
    """patches:[Mp,K](bf16) @ wmat:[K,Np](bf16) + bias, fused activation."""
    Mp, K = patches.shape
    Np = wmat.shape[1]
    return pl.pallas_call(
        functools.partial(_conv_bias_act_kernel, act=act),
        out_shape=jax.ShapeDtypeStruct((Mp, Np), out_dtype),
        grid=(Mp // tm,),
        in_specs=[
            pl.BlockSpec((tm, K), lambda i: (i, 0)),
            pl.BlockSpec((K, Np), lambda i: (0, 0)),   # weight stays resident
            pl.BlockSpec((1, Np), lambda i: (0, 0)),
        ],
        out_specs=pl.BlockSpec((tm, Np), lambda i: (i, 0)),
        compiler_params=pltpu.CompilerParams(
            dimension_semantics=("parallel",)),
    )(patches, wmat, bias)


def _conv_bn_leaky_kernel(x_ref, w_ref, gamma_ref, beta_ref, o_ref, *, m_valid):
    """Single-shot fused conv-matmul + train-mode BatchNorm + LeakyReLU.

    The conv bias is dropped (cancels exactly under training-mode BN), so the
    zero-padded rows of the patches matrix produce exactly-zero rows of y and
    raw sums over all Mp rows equal sums over the m_valid real rows.
    """
    y = jnp.dot(x_ref[...], w_ref[...], preferred_element_type=jnp.float32)
    inv_m = 1.0 / float(m_valid)
    mean = jnp.sum(y, axis=0, keepdims=True) * inv_m                 # (1, Np)
    # var = E[y^2] - mean^2; fine in f32 at BN-scale magnitudes (keep the
    # centered form instead if activation magnitudes ever grow large).
    var = jnp.sum(y * y, axis=0, keepdims=True) * inv_m - mean * mean
    scale = gamma_ref[...] * lax.rsqrt(var + BN_EPS)
    shift = beta_ref[...] - mean * scale
    z = y * scale + shift
    z = jnp.where(z > 0, z, LEAKY_SLOPE * z)
    o_ref[...] = z.astype(o_ref.dtype)


def conv_bn_leaky(patches, wmat, gamma, beta, m_valid, out_dtype):
    """One pallas_call per BN layer: matmul + stats + normalize + LeakyReLU."""
    Mp, K = patches.shape
    Np = wmat.shape[1]
    return pl.pallas_call(
        functools.partial(_conv_bn_leaky_kernel, m_valid=m_valid),
        out_shape=jax.ShapeDtypeStruct((Mp, Np), out_dtype),
        grid=(1,),
        in_specs=[
            pl.BlockSpec((Mp, K), lambda i: (0, 0)),
            pl.BlockSpec((K, Np), lambda i: (0, 0)),
            pl.BlockSpec((1, Np), lambda i: (0, 0)),
            pl.BlockSpec((1, Np), lambda i: (0, 0)),
        ],
        out_specs=pl.BlockSpec((Mp, Np), lambda i: (0, 0)),
        compiler_params=pltpu.CompilerParams(
            dimension_semantics=("arbitrary",)),
    )(patches, wmat, gamma, beta)


# ---------------------------------------------------------------------------
# JAX glue: im2col, per-layer wrapper, full forward
# ---------------------------------------------------------------------------

def im2col(x_nhwc, kh, kw, stride, pad):
    if pad:
        x_nhwc = jnp.pad(x_nhwc, ((0, 0), (pad, pad), (pad, pad), (0, 0)))
    B, H, W, C = x_nhwc.shape
    OH = (H - kh) // stride + 1
    OW = (W - kw) // stride + 1
    cols = []
    for i in range(kh):
        for j in range(kw):
            cols.append(x_nhwc[:, i:i + stride * OH:stride,
                               j:j + stride * OW:stride, :])
    patches = jnp.stack(cols, axis=3)                 # [B, OH, OW, KH*KW, C]
    return patches.reshape(B * OH * OW, kh * kw * C), OH, OW


def conv_block(x_nhwc, layer, cout, stride, pad, act, out_dtype):
    B = x_nhwc.shape[0]
    patches, OH, OW = im2col(x_nhwc, 4, 4, stride, pad)   # bf16 [M, K]
    M, K = patches.shape

    if "gamma" in layer:
        # BN layers: M <= 512 at this size, so a single VMEM-resident block
        # handles matmul + stats + normalize + LeakyReLU in one kernel.
        Mp = _ceil_to(M, ROW_ALIGN)
        if Mp > M:
            patches = jnp.pad(patches, ((0, Mp - M), (0, 0)))
        out = conv_bn_leaky(patches, layer["wmat"], layer["gamma"],
                            layer["beta"], M, out_dtype)
    else:
        tm = TM_MAX if M >= TM_MAX else _ceil_to(M, ROW_ALIGN)
        Mp = _ceil_to(M, tm)
        if Mp > M:
            patches = jnp.pad(patches, ((0, Mp - M), (0, 0)))
        out = conv_bias_act(patches, layer["wmat"], layer["bias"], act, tm,
                            out_dtype)

    return out[:M, :cout].reshape(B, OH, OW, cout)


def init_params(key, ndf):
    dims = [(ndf, 3), (ndf * 2, ndf), (ndf * 4, ndf * 2),
            (ndf * 8, ndf * 4), (1, ndf * 8)]
    params = []
    for li, (cout, cin) in enumerate(dims):
        key, kw_, kb_ = jax.random.split(key, 3)
        layer = {
            "w": 0.02 * jax.random.normal(kw_, (cout, cin, 4, 4), jnp.float32),
            "b": 0.02 * jax.random.normal(kb_, (cout,), jnp.float32),
        }
        if li in (1, 2, 3):                           # layers 2..4 carry BatchNorm2d
            layer["gamma"] = jnp.ones((cout,), jnp.float32)   # PyTorch BN default init
            layer["beta"] = jnp.zeros((cout,), jnp.float32)
        params.append(layer)
    return params


def prepare_params(params):
    """One-time weight layout prep (transpose/pad/cast), kept out of the forward."""
    prepared = []
    for p in params:
        w = p["w"]                                    # [Cout, Cin, 4, 4]
        cout, cin, kh, kw = w.shape
        K = kh * kw * cin
        Np = _ceil_to(cout, LANES)
        # column order must match im2col: ((i*kw + j)*Cin + c)
        wmat = jnp.transpose(w, (2, 3, 1, 0)).reshape(K, cout)
        wmat = jnp.pad(wmat, ((0, 0), (0, Np - cout))).astype(jnp.bfloat16)
        layer = {"wmat": wmat}
        if "gamma" in p:
            layer["gamma"] = jnp.pad(p["gamma"], (0, Np - cout)).reshape(1, Np)
            layer["beta"] = jnp.pad(p["beta"], (0, Np - cout)).reshape(1, Np)
            # conv bias intentionally dropped (cancels under training-mode BN)
        else:
            layer["bias"] = jnp.pad(p["b"], (0, Np - cout)).reshape(1, Np)
        prepared.append(layer)
    return prepared


@functools.partial(jax.jit, static_argnums=(0,))
def discriminator_forward(couts, prepared, img_nchw):
    # accepts NCHW (PyTorch convention), runs NHWC/bf16 internally, returns NCHW f32.
    x = jnp.transpose(img_nchw, (0, 2, 3, 1)).astype(jnp.bfloat16)
    strides = (2, 2, 2, 1, 1)
    pads = (1, 1, 1, 0, 0)
    nl = len(prepared)
    for li, layer in enumerate(prepared):
        last = li == nl - 1
        act = "sigmoid" if last else "leaky"
        out_dtype = jnp.float32 if last else jnp.bfloat16
        x = conv_block(x, layer, couts[li], strides[li], pads[li], act, out_dtype)
    return jnp.transpose(x, (0, 3, 1, 2))


# Pure-JAX f32 reference (correctness check only; Pallas path produces the result).
@jax.jit
def reference_forward(params, img_nchw):
    x = img_nchw.astype(jnp.float32)
    strides = [2, 2, 2, 1, 1]
    pads = [1, 1, 1, 0, 0]
    for li, p in enumerate(params):
        x = lax.conv_general_dilated(
            x, p["w"], (strides[li],) * 2,
            [(pads[li], pads[li]), (pads[li], pads[li])],
            dimension_numbers=("NCHW", "OIHW", "NCHW"))
        x = x + p["b"][None, :, None, None]
        if "gamma" in p:
            mean = jnp.mean(x, axis=(0, 2, 3), keepdims=True)
            var = jnp.mean((x - mean) ** 2, axis=(0, 2, 3), keepdims=True)
            x = (x - mean) * lax.rsqrt(var + BN_EPS)
            x = x * p["gamma"][None, :, None, None] + p["beta"][None, :, None, None]
        if li == 4:
            x = jax.nn.sigmoid(x)
        else:
            x = jnp.where(x > 0, x, LEAKY_SLOPE * x)
    return x


if __name__ == "__main__":
    ndf = 8                                   # small but shape-consistent discriminator
    key = jax.random.PRNGKey(0)
    kp, kx = jax.random.split(key)
    params = init_params(kp, ndf)
    img = jax.random.normal(kx, (2, 3, 64, 64), jnp.float32)   # NCHW, like PyTorch

    prepared = prepare_params(params)
    couts = (ndf, ndf * 2, ndf * 4, ndf * 8, 1)

    out = jax.block_until_ready(discriminator_forward(couts, prepared, img))
    ref = jax.block_until_ready(reference_forward(params, img))

    assert out.shape == ref.shape == (2, 1, 2, 2), out.shape
    err = float(jnp.max(jnp.abs(out - ref)))
    assert err < 3e-2, f"max abs err vs reference: {err}"
    print("KERNEL_OK")
</pallas_src>

<mosaic_0001>
module attributes {stable_mosaic.version = 11 : i64} {
  func.func @_conv_bias_act_kernel(%arg0: i32, %arg1: memref<512x48xbf16, #tpu.memory_space<vmem>>, %arg2: memref<48x128xbf16, #tpu.memory_space<vmem>>, %arg3: memref<1x128xf32, #tpu.memory_space<vmem>>, %arg4: memref<512x128xbf16, #tpu.memory_space<vmem>>) attributes {dimension_semantics = [#tpu.dimension_semantics<parallel>], iteration_bounds = array<i64: 4>, scalar_prefetch = 0 : i64, scratch_operands = 0 : i64, tpu.core_type = #tpu.core_type<tc>, window_params = [{transform_indices = @transform_0, window_bounds = array<i64: 512, 48>}, {pipeline_mode = #tpu.pipeline_mode<synchronous>, transform_indices = @transform_1, window_bounds = array<i64: 48, 128>}, {pipeline_mode = #tpu.pipeline_mode<synchronous>, transform_indices = @transform_2, window_bounds = array<i64: 1, 128>}, {transform_indices = @transform_3, window_bounds = array<i64: 512, 128>}]} {
    %c0 = arith.constant 0 : index
    %c0_0 = arith.constant 0 : index
    %0 = vector.load %arg1[%c0, %c0_0] : memref<512x48xbf16, #tpu.memory_space<vmem>>, vector<512x48xbf16>
    %c0_1 = arith.constant 0 : index
    %c0_2 = arith.constant 0 : index
    %1 = vector.load %arg2[%c0_1, %c0_2] : memref<48x128xbf16, #tpu.memory_space<vmem>>, vector<48x128xbf16>
    %cst = arith.constant dense<0.000000e+00> : vector<512x128xf32>
    %2 = tpu.matmul %0, %1, %cst {dimension_numbers = #tpu.dot_dimension_numbers<[1], [0], [0], [1], [0, 0, 1, 1], [], []>} : vector<512x48xbf16>, vector<48x128xbf16>, vector<512x128xf32> -> vector<512x128xf32>
    %c0_3 = arith.constant 0 : index
    %c0_4 = arith.constant 0 : index
    %3 = vector.load %arg3[%c0_3, %c0_4] : memref<1x128xf32, #tpu.memory_space<vmem>>, vector<1x128xf32>
    %4 = vector.broadcast %3 : vector<1x128xf32> to vector<512x128xf32>
    %5 = arith.addf %2, %4 : vector<512x128xf32>
    %cst_5 = arith.constant 0.000000e+00 : f32
    %6 = vector.broadcast %cst_5 : f32 to vector<512x128xf32>
    %7 = arith.cmpf ogt, %5, %6 : vector<512x128xf32>
    %cst_6 = arith.constant 2.000000e-01 : f32
    %8 = vector.broadcast %cst_6 : f32 to vector<512x128xf32>
    %9 = arith.mulf %8, %5 : vector<512x128xf32>
    %10 = arith.select %7, %5, %9 : vector<512x128xi1>, vector<512x128xf32>
    %11 = arith.truncf %10 : vector<512x128xf32> to vector<512x128xbf16>
    %c0_7 = arith.constant 0 : index
    %c0_8 = arith.constant 0 : index
    %12 = vector.load %arg4[%c0_7, %c0_8] : memref<512x128xbf16, #tpu.memory_space<vmem>>, vector<512x128xbf16>
    tpu.vector_store %arg4[%c0_7, %c0_8], %11 {strides = array<i32>} : memref<512x128xbf16, #tpu.memory_space<vmem>>, vector<512x128xbf16>,
    return
  }
  func.func @transform_0(%arg0: i32) -> (i32, i32) {
    %c0_i32 = arith.constant 0 : i32
    %c0_i32_0 = arith.constant 0 : i32
    return %arg0, %c0_i32 : i32, i32
  }
  func.func @transform_1(%arg0: i32) -> (i32, i32) {
    %c0_i32 = arith.constant 0 : i32
    %c0_i32_0 = arith.constant 0 : i32
    %c0_i32_1 = arith.constant 0 : i32
    return %c0_i32, %c0_i32_0 : i32, i32
  }
  func.func @transform_2(%arg0: i32) -> (i32, i32) {
    %c0_i32 = arith.constant 0 : i32
    %c0_i32_0 = arith.constant 0 : i32
    %c0_i32_1 = arith.constant 0 : i32
    return %c0_i32, %c0_i32_0 : i32, i32
  }
  func.func @transform_3(%arg0: i32) -> (i32, i32) {
    %c0_i32 = arith.constant 0 : i32
    %c0_i32_0 = arith.constant 0 : i32
    return %arg0, %c0_i32 : i32, i32
  }
}

module attributes {stable_mosaic.version = 11 : i64} {
  func.func @_conv_bn_leaky_kernel(%arg0: i32, %arg1: memref<512x128xbf16, #tpu.memory_space<vmem>>, %arg2: memref<128x128xbf16, #tpu.memory_space<vmem>>, %arg3: memref<1x128xf32, #tpu.memory_space<vmem>>, %arg4: memref<1x128xf32, #tpu.memory_space<vmem>>, %arg5: memref<512x128xbf16, #tpu.memory_space<vmem>>) attributes {dimension_semantics = [#tpu.dimension_semantics<arbitrary>], iteration_bounds = array<i64: 1>, scalar_prefetch = 0 : i64, scratch_operands = 0 : i64, tpu.core_type = #tpu.core_type<tc>, window_params = [{pipeline_mode = #tpu.pipeline_mode<synchronous>, transform_indices = @transform_0, window_bounds = array<i64: 512, 128>}, {pipeline_mode = #tpu.pipeline_mode<synchronous>, transform_indices = @transform_1, window_bounds = array<i64: 128, 128>}, {pipeline_mode = #tpu.pipeline_mode<synchronous>, transform_indices = @transform_2, window_bounds = array<i64: 1, 128>}, {pipeline_mode = #tpu.pipeline_mode<synchronous>, transform_indices = @transform_3, window_bounds = array<i64: 1, 128>}, {pipeline_mode = #tpu.pipeline_mode<synchronous>, transform_indices = @transform_4, window_bounds = array<i64: 512, 128>}]} {
    %c0 = arith.constant 0 : index
    %c0_0 = arith.constant 0 : index
    %0 = vector.load %arg1[%c0, %c0_0] : memref<512x128xbf16, #tpu.memory_space<vmem>>, vector<512x128xbf16>
    %c0_1 = arith.constant 0 : index
    %c0_2 = arith.constant 0 : index
    %1 = vector.load %arg2[%c0_1, %c0_2] : memref<128x128xbf16, #tpu.memory_space<vmem>>, vector<128x128xbf16>
    %cst = arith.constant dense<0.000000e+00> : vector<512x128xf32>
    %2 = tpu.matmul %0, %1, %cst {dimension_numbers = #tpu.dot_dimension_numbers<[1], [0], [0], [1], [0, 0, 1, 1], [], []>} : vector<512x128xbf16>, vector<128x128xbf16>, vector<512x128xf32> -> vector<512x128xf32>
    %cst_3 = arith.constant dense<0.000000e+00> : vector<128xf32>
    %3 = vector.multi_reduction <add>, %2, %cst_3 [0] : vector<512x128xf32> to vector<128xf32>
    %4 = vector.shape_cast %3 : vector<128xf32> to vector<1x128xf32>
    %cst_4 = arith.constant 0.001953125 : f32
    %5 = vector.broadcast %cst_4 : f32 to vector<1x128xf32>
    %6 = arith.mulf %4, %5 : vector<1x128xf32>
    %7 = arith.mulf %2, %2 : vector<512x128xf32>
    %cst_5 = arith.constant dense<0.000000e+00> : vector<128xf32>
    %8 = vector.multi_reduction <add>, %7, %cst_5 [0] : vector<512x128xf32> to vector<128xf32>
    %9 = vector.shape_cast %8 : vector<128xf32> to vector<1x128xf32>
    %cst_6 = arith.constant 0.001953125 : f32
    %10 = vector.broadcast %cst_6 : f32 to vector<1x128xf32>
    %11 = arith.mulf %9, %10 : vector<1x128xf32>
    %12 = arith.mulf %6, %6 : vector<1x128xf32>
    %13 = arith.subf %11, %12 : vector<1x128xf32>
    %c0_7 = arith.constant 0 : index
    %c0_8 = arith.constant 0 : index
    %14 = vector.load %arg3[%c0_7, %c0_8] : memref<1x128xf32, #tpu.memory_space<vmem>>, vector<1x128xf32>
    %cst_9 = arith.constant 9.99999974E-6 : f32
    %15 = vector.broadcast %cst_9 : f32 to vector<1x128xf32>
    %16 = arith.addf %13, %15 : vector<1x128xf32>
    %17 = math.rsqrt %16 : vector<1x128xf32>
    %18 = arith.mulf %14, %17 : vector<1x128xf32>
    %c0_10 = arith.constant 0 : index
    %c0_11 = arith.constant 0 : index
    %19 = vector.load %arg4[%c0_10, %c0_11] : memref<1x128xf32, #tpu.memory_space<vmem>>, vector<1x128xf32>
    %20 = arith.mulf %6, %18 : vector<1x128xf32>
    %21 = arith.subf %19, %20 : vector<1x128xf32>
    %22 = vector.broadcast %18 : vector<1x128xf32> to vector<512x128xf32>
    %23 = arith.mulf %2, %22 : vector<512x128xf32>
    %24 = vector.broadcast %21 : vector<1x128xf32> to vector<512x128xf32>
    %25 = arith.addf %23, %24 : vector<512x128xf32>
    %cst_12 = arith.constant 0.000000e+00 : f32
    %26 = vector.broadcast %cst_12 : f32 to vector<512x128xf32>
    %27 = arith.cmpf ogt, %25, %26 : vector<512x128xf32>
    %cst_13 = arith.constant 2.000000e-01 : f32
    %28 = vector.broadcast %cst_13 : f32 to vector<512x128xf32>
    %29 = arith.mulf %28, %25 : vector<512x128xf32>
    %30 = arith.select %27, %25, %29 : vector<512x128xi1>, vector<512x128xf32>
    %31 = arith.truncf %30 : vector<512x128xf32> to vector<512x128xbf16>
    %c0_14 = arith.constant 0 : index
    %c0_15 = arith.constant 0 : index
    %32 = vector.load %arg5[%c0_14, %c0_15] : memref<512x128xbf16, #tpu.memory_space<vmem>>, vector<512x128xbf16>
    tpu.vector_store %arg5[%c0_14, %c0_15], %31 {strides = array<i32>} : memref<512x128xbf16, #tpu.memory_space<vmem>>, vector<512x128xbf16>,
    return
  }
  func.func @transform_0(%arg0: i32) -> (i32, i32) {
    %c0_i32 = arith.constant 0 : i32
    %c0_i32_0 = arith.constant 0 : i32
    %c0_i32_1 = arith.constant 0 : i32
    return %c0_i32, %c0_i32_0 : i32, i32
  }
  func.func @transform_1(%arg0: i32) -> (i32, i32) {
    %c0_i32 = arith.constant 0 : i32
    %c0_i32_0 = arith.constant 0 : i32
    %c0_i32_1 = arith.constant 0 : i32
    return %c0_i32, %c0_i32_0 : i32, i32
  }
  func.func @transform_2(%arg0: i32) -> (i32, i32) {
    %c0_i32 = arith.constant 0 : i32
    %c0_i32_0 = arith.constant 0 : i32
    %c0_i32_1 = arith.constant 0 : i32
    return %c0_i32, %c0_i32_0 : i32, i32
  }
  func.func @transform_3(%arg0: i32) -> (i32, i32) {
    %c0_i32 = arith.constant 0 : i32
    %c0_i32_0 = arith.constant 0 : i32
    %c0_i32_1 = arith.constant 0 : i32
    return %c0_i32, %c0_i32_0 : i32, i32
  }
  func.func @transform_4(%arg0: i32) -> (i32, i32) {
    %c0_i32 = arith.constant 0 : i32
    %c0_i32_0 = arith.constant 0 : i32
    %c0_i32_1 = arith.constant 0 : i32
    return %c0_i32, %c0_i32_0 : i32, i32
  }
}

module attributes {stable_mosaic.version = 11 : i64} {
  func.func @_conv_bn_leaky_kernel(%arg0: i32, %arg1: memref<128x256xbf16, #tpu.memory_space<vmem>>, %arg2: memref<256x128xbf16, #tpu.memory_space<vmem>>, %arg3: memref<1x128xf32, #tpu.memory_space<vmem>>, %arg4: memref<1x128xf32, #tpu.memory_space<vmem>>, %arg5: memref<128x128xbf16, #tpu.memory_space<vmem>>) attributes {dimension_semantics = [#tpu.dimension_semantics<arbitrary>], iteration_bounds = array<i64: 1>, scalar_prefetch = 0 : i64, scratch_operands = 0 : i64, tpu.core_type = #tpu.core_type<tc>, window_params = [{pipeline_mode = #tpu.pipeline_mode<synchronous>, transform_indices = @transform_0, window_bounds = array<i64: 128, 256>}, {pipeline_mode = #tpu.pipeline_mode<synchronous>, transform_indices = @transform_1, window_bounds = array<i64: 256, 128>}, {pipeline_mode = #tpu.pipeline_mode<synchronous>, transform_indices = @transform_2, window_bounds = array<i64: 1, 128>}, {pipeline_mode = #tpu.pipeline_mode<synchronous>, transform_indices = @transform_3, window_bounds = array<i64: 1, 128>}, {pipeline_mode = #tpu.pipeline_mode<synchronous>, transform_indices = @transform_4, window_bounds = array<i64: 128, 128>}]} {
    %c0 = arith.constant 0 : index
    %c0_0 = arith.constant 0 : index
    %0 = vector.load %arg1[%c0, %c0_0] : memref<128x256xbf16, #tpu.memory_space<vmem>>, vector<128x256xbf16>
    %c0_1 = arith.constant 0 : index
    %c0_2 = arith.constant 0 : index
    %1 = vector.load %arg2[%c0_1, %c0_2] : memref<256x128xbf16, #tpu.memory_space<vmem>>, vector<256x128xbf16>
    %cst = arith.constant dense<0.000000e+00> : vector<128x128xf32>
    %2 = tpu.matmul %0, %1, %cst {dimension_numbers = #tpu.dot_dimension_numbers<[1], [0], [0], [1], [0, 0, 1, 1], [], []>} : vector<128x256xbf16>, vector<256x128xbf16>, vector<128x128xf32> -> vector<128x128xf32>
    %cst_3 = arith.constant dense<0.000000e+00> : vector<128xf32>
    %3 = vector.multi_reduction <add>, %2, %cst_3 [0] : vector<128x128xf32> to vector<128xf32>
    %4 = vector.shape_cast %3 : vector<128xf32> to vector<1x128xf32>
    %cst_4 = arith.constant 7.812500e-03 : f32
    %5 = vector.broadcast %cst_4 : f32 to vector<1x128xf32>
    %6 = arith.mulf %4, %5 : vector<1x128xf32>
    %7 = arith.mulf %2, %2 : vector<128x128xf32>
    %cst_5 = arith.constant dense<0.000000e+00> : vector<128xf32>
    %8 = vector.multi_reduction <add>, %7, %cst_5 [0] : vector<128x128xf32> to vector<128xf32>
    %9 = vector.shape_cast %8 : vector<128xf32> to vector<1x128xf32>
    %cst_6 = arith.constant 7.812500e-03 : f32
    %10 = vector.broadcast %cst_6 : f32 to vector<1x128xf32>
    %11 = arith.mulf %9, %10 : vector<1x128xf32>
    %12 = arith.mulf %6, %6 : vector<1x128xf32>
    %13 = arith.subf %11, %12 : vector<1x128xf32>
    %c0_7 = arith.constant 0 : index
    %c0_8 = arith.constant 0 : index
    %14 = vector.load %arg3[%c0_7, %c0_8] : memref<1x128xf32, #tpu.memory_space<vmem>>, vector<1x128xf32>
    %cst_9 = arith.constant 9.99999974E-6 : f32
    %15 = vector.broadcast %cst_9 : f32 to vector<1x128xf32>
    %16 = arith.addf %13, %15 : vector<1x128xf32>
    %17 = math.rsqrt %16 : vector<1x128xf32>
    %18 = arith.mulf %14, %17 : vector<1x128xf32>
    %c0_10 = arith.constant 0 : index
    %c0_11 = arith.constant 0 : index
    %19 = vector.load %arg4[%c0_10, %c0_11] : memref<1x128xf32, #tpu.memory_space<vmem>>, vector<1x128xf32>
    %20 = arith.mulf %6, %18 : vector<1x128xf32>
    %21 = arith.subf %19, %20 : vector<1x128xf32>
    %22 = vector.broadcast %18 : vector<1x128xf32> to vector<128x128xf32>
    %23 = arith.mulf %2, %22 : vector<128x128xf32>
    %24 = vector.broadcast %21 : vector<1x128xf32> to vector<128x128xf32>
    %25 = arith.addf %23, %24 : vector<128x128xf32>
    %cst_12 = arith.constant 0.000000e+00 : f32
    %26 = vector.broadcast %cst_12 : f32 to vector<128x128xf32>
    %27 = arith.cmpf ogt, %25, %26 : vector<128x128xf32>
    %cst_13 = arith.constant 2.000000e-01 : f32
    %28 = vector.broadcast %cst_13 : f32 to vector<128x128xf32>
    %29 = arith.mulf %28, %25 : vector<128x128xf32>
    %30 = arith.select %27, %25, %29 : vector<128x128xi1>, vector<128x128xf32>
    %31 = arith.truncf %30 : vector<128x128xf32> to vector<128x128xbf16>
    %c0_14 = arith.constant 0 : index
    %c0_15 = arith.constant 0 : index
    %32 = vector.load %arg5[%c0_14, %c0_15] : memref<128x128xbf16, #tpu.memory_space<vmem>>, vector<128x128xbf16>
    tpu.vector_store %arg5[%c0_14, %c0_15], %31 {strides = array<i32>} : memref<128x128xbf16, #tpu.memory_space<vmem>>, vector<128x128xbf16>,
    return
  }
  func.func @transform_0(%arg0: i32) -> (i32, i32) {
    %c0_i32 = arith.constant 0 : i32
    %c0_i32_0 = arith.constant 0 : i32
    %c0_i32_1 = arith.constant 0 : i32
    return %c0_i32, %c0_i32_0 : i32, i32
  }
  func.func @transform_1(%arg0: i32) -> (i32, i32) {
    %c0_i32 = arith.constant 0 : i32
    %c0_i32_0 = arith.constant 0 : i32
    %c0_i32_1 = arith.constant 0 : i32
    return %c0_i32, %c0_i32_0 : i32, i32
  }
  func.func @transform_2(%arg0: i32) -> (i32, i32) {
    %c0_i32 = arith.constant 0 : i32
    %c0_i32_0 = arith.constant 0 : i32
    %c0_i32_1 = arith.constant 0 : i32
    return %c0_i32, %c0_i32_0 : i32, i32
  }
  func.func @transform_3(%arg0: i32) -> (i32, i32) {
    %c0_i32 = arith.constant 0 : i32
    %c0_i32_0 = arith.constant 0 : i32
    %c0_i32_1 = arith.constant 0 : i32
    return %c0_i32, %c0_i32_0 : i32, i32
  }
  func.func @transform_4(%arg0: i32) -> (i32, i32) {
    %c0_i32 = arith.constant 0 : i32
    %c0_i32_0 = arith.constant 0 : i32
    %c0_i32_1 = arith.constant 0 : i32
    return %c0_i32, %c0_i32_0 : i32, i32
  }
}

module attributes {stable_mosaic.version = 11 : i64} {
  func.func @_conv_bn_leaky_kernel(%arg0: i32, %arg1: memref<64x512xbf16, #tpu.memory_space<vmem>>, %arg2: memref<512x128xbf16, #tpu.memory_space<vmem>>, %arg3: memref<1x128xf32, #tpu.memory_space<vmem>>, %arg4: memref<1x128xf32, #tpu.memory_space<vmem>>, %arg5: memref<64x128xbf16, #tpu.memory_space<vmem>>) attributes {dimension_semantics = [#tpu.dimension_semantics<arbitrary>], iteration_bounds = array<i64: 1>, scalar_prefetch = 0 : i64, scratch_operands = 0 : i64, tpu.core_type = #tpu.core_type<tc>, window_params = [{pipeline_mode = #tpu.pipeline_mode<synchronous>, transform_indices = @transform_0, window_bounds = array<i64: 64, 512>}, {pipeline_mode = #tpu.pipeline_mode<synchronous>, transform_indices = @transform_1, window_bounds = array<i64: 512, 128>}, {pipeline_mode = #tpu.pipeline_mode<synchronous>, transform_indices = @transform_2, window_bounds = array<i64: 1, 128>}, {pipeline_mode = #tpu.pipeline_mode<synchronous>, transform_indices = @transform_3, window_bounds = array<i64: 1, 128>}, {pipeline_mode = #tpu.pipeline_mode<synchronous>, transform_indices = @transform_4, window_bounds = array<i64: 64, 128>}]} {
    %c0 = arith.constant 0 : index
    %c0_0 = arith.constant 0 : index
    %0 = vector.load %arg1[%c0, %c0_0] : memref<64x512xbf16, #tpu.memory_space<vmem>>, vector<64x512xbf16>
    %c0_1 = arith.constant 0 : index
    %c0_2 = arith.constant 0 : index
    %1 = vector.load %arg2[%c0_1, %c0_2] : memref<512x128xbf16, #tpu.memory_space<vmem>>, vector<512x128xbf16>
    %cst = arith.constant dense<0.000000e+00> : vector<64x128xf32>
    %2 = tpu.matmul %0, %1, %cst {dimension_numbers = #tpu.dot_dimension_numbers<[1], [0], [0], [1], [0, 0, 1, 1], [], []>} : vector<64x512xbf16>, vector<512x128xbf16>, vector<64x128xf32> -> vector<64x128xf32>
    %cst_3 = arith.constant dense<0.000000e+00> : vector<128xf32>
    %3 = vector.multi_reduction <add>, %2, %cst_3 [0] : vector<64x128xf32> to vector<128xf32>
    %4 = vector.shape_cast %3 : vector<128xf32> to vector<1x128xf32>
    %cst_4 = arith.constant 2.000000e-02 : f32
    %5 = vector.broadcast %cst_4 : f32 to vector<1x128xf32>
    %6 = arith.mulf %4, %5 : vector<1x128xf32>
    %7 = arith.mulf %2, %2 : vector<64x128xf32>
    %cst_5 = arith.constant dense<0.000000e+00> : vector<128xf32>
    %8 = vector.multi_reduction <add>, %7, %cst_5 [0] : vector<64x128xf32> to vector<128xf32>
    %9 = vector.shape_cast %8 : vector<128xf32> to vector<1x128xf32>
    %cst_6 = arith.constant 2.000000e-02 : f32
    %10 = vector.broadcast %cst_6 : f32 to vector<1x128xf32>
    %11 = arith.mulf %9, %10 : vector<1x128xf32>
    %12 = arith.mulf %6, %6 : vector<1x128xf32>
    %13 = arith.subf %11, %12 : vector<1x128xf32>
    %c0_7 = arith.constant 0 : index
    %c0_8 = arith.constant 0 : index
    %14 = vector.load %arg3[%c0_7, %c0_8] : memref<1x128xf32, #tpu.memory_space<vmem>>, vector<1x128xf32>
    %cst_9 = arith.constant 9.99999974E-6 : f32
    %15 = vector.broadcast %cst_9 : f32 to vector<1x128xf32>
    %16 = arith.addf %13, %15 : vector<1x128xf32>
    %17 = math.rsqrt %16 : vector<1x128xf32>
    %18 = arith.mulf %14, %17 : vector<1x128xf32>
    %c0_10 = arith.constant 0 : index
    %c0_11 = arith.constant 0 : index
    %19 = vector.load %arg4[%c0_10, %c0_11] : memref<1x128xf32, #tpu.memory_space<vmem>>, vector<1x128xf32>
    %20 = arith.mulf %6, %18 : vector<1x128xf32>
    %21 = arith.subf %19, %20 : vector<1x128xf32>
    %22 = vector.broadcast %18 : vector<1x128xf32> to vector<64x128xf32>
    %23 = arith.mulf %2, %22 : vector<64x128xf32>
    %24 = vector.broadcast %21 : vector<1x128xf32> to vector<64x128xf32>
    %25 = arith.addf %23, %24 : vector<64x128xf32>
    %cst_12 = arith.constant 0.000000e+00 : f32
    %26 = vector.broadcast %cst_12 : f32 to vector<64x128xf32>
    %27 = arith.cmpf ogt, %25, %26 : vector<64x128xf32>
    %cst_13 = arith.constant 2.000000e-01 : f32
    %28 = vector.broadcast %cst_13 : f32 to vector<64x128xf32>
    %29 = arith.mulf %28, %25 : vector<64x128xf32>
    %30 = arith.select %27, %25, %29 : vector<64x128xi1>, vector<64x128xf32>
    %31 = arith.truncf %30 : vector<64x128xf32> to vector<64x128xbf16>
    %c0_14 = arith.constant 0 : index
    %c0_15 = arith.constant 0 : index
    %32 = vector.load %arg5[%c0_14, %c0_15] : memref<64x128xbf16, #tpu.memory_space<vmem>>, vector<64x128xbf16>
    tpu.vector_store %arg5[%c0_14, %c0_15], %31 {strides = array<i32>} : memref<64x128xbf16, #tpu.memory_space<vmem>>, vector<64x128xbf16>,
    return
  }
  func.func @transform_0(%arg0: i32) -> (i32, i32) {
    %c0_i32 = arith.constant 0 : i32
    %c0_i32_0 = arith.constant 0 : i32
    %c0_i32_1 = arith.constant 0 : i32
    return %c0_i32, %c0_i32_0 : i32, i32
  }
  func.func @transform_1(%arg0: i32) -> (i32, i32) {
    %c0_i32 = arith.constant 0 : i32
    %c0_i32_0 = arith.constant 0 : i32
    %c0_i32_1 = arith.constant 0 : i32
    return %c0_i32, %c0_i32_0 : i32, i32
  }
  func.func @transform_2(%arg0: i32) -> (i32, i32) {
    %c0_i32 = arith.constant 0 : i32
    %c0_i32_0 = arith.constant 0 : i32
    %c0_i32_1 = arith.constant 0 : i32
    return %c0_i32, %c0_i32_0 : i32, i32
  }
  func.func @transform_3(%arg0: i32) -> (i32, i32) {
    %c0_i32 = arith.constant 0 : i32
    %c0_i32_0 = arith.constant 0 : i32
    %c0_i32_1 = arith.constant 0 : i32
    return %c0_i32, %c0_i32_0 : i32, i32
  }
  func.func @transform_4(%arg0: i32) -> (i32, i32) {
    %c0_i32 = arith.constant 0 : i32
    %c0_i32_0 = arith.constant 0 : i32
    %c0_i32_1 = arith.constant 0 : i32
    return %c0_i32, %c0_i32_0 : i32, i32
  }
}

module attributes {stable_mosaic.version = 11 : i64} {
  func.func @_conv_bias_act_kernel(%arg0: i32, %arg1: memref<16x1024xbf16, #tpu.memory_space<vmem>>, %arg2: memref<1024x128xbf16, #tpu.memory_space<vmem>>, %arg3: memref<1x128xf32, #tpu.memory_space<vmem>>, %arg4: memref<16x128xf32, #tpu.memory_space<vmem>>) attributes {dimension_semantics = [#tpu.dimension_semantics<parallel>], iteration_bounds = array<i64: 1>, scalar_prefetch = 0 : i64, scratch_operands = 0 : i64, tpu.core_type = #tpu.core_type<tc>, window_params = [{transform_indices = @transform_0, window_bounds = array<i64: 16, 1024>}, {pipeline_mode = #tpu.pipeline_mode<synchronous>, transform_indices = @transform_1, window_bounds = array<i64: 1024, 128>}, {pipeline_mode = #tpu.pipeline_mode<synchronous>, transform_indices = @transform_2, window_bounds = array<i64: 1, 128>}, {transform_indices = @transform_3, window_bounds = array<i64: 16, 128>}]} {
    %c0 = arith.constant 0 : index
    %c0_0 = arith.constant 0 : index
    %0 = vector.load %arg1[%c0, %c0_0] : memref<16x1024xbf16, #tpu.memory_space<vmem>>, vector<16x1024xbf16>
    %c0_1 = arith.constant 0 : index
    %c0_2 = arith.constant 0 : index
    %1 = vector.load %arg2[%c0_1, %c0_2] : memref<1024x128xbf16, #tpu.memory_space<vmem>>, vector<1024x128xbf16>
    %cst = arith.constant dense<0.000000e+00> : vector<16x128xf32>
    %2 = tpu.matmul %0, %1, %cst {dimension_numbers = #tpu.dot_dimension_numbers<[1], [0], [0], [1], [0, 0, 1, 1], [], []>} : vector<16x1024xbf16>, vector<1024x128xbf16>, vector<16x128xf32> -> vector<16x128xf32>
    %c0_3 = arith.constant 0 : index
    %c0_4 = arith.constant 0 : index
    %3 = vector.load %arg3[%c0_3, %c0_4] : memref<1x128xf32, #tpu.memory_space<vmem>>, vector<1x128xf32>
    %4 = vector.broadcast %3 : vector<1x128xf32> to vector<16x128xf32>
    %5 = arith.addf %2, %4 : vector<16x128xf32>
    %cst_5 = arith.constant 0.000000e+00 : f32
    %6 = vector.broadcast %cst_5 : f32 to vector<16x128xf32>
    %7 = arith.subf %6, %5 : vector<16x128xf32>
    %8 = math.exp %7 : vector<16x128xf32>
    %cst_6 = arith.constant 1.000000e+00 : f32
    %9 = vector.broadcast %cst_6 : f32 to vector<16x128xf32>
    %10 = arith.addf %9, %8 : vector<16x128xf32>
    %11 = tpu.reciprocal %10 {approx = true} : vector<16x128xf32> -> vector<16x128xf32>
    %c0_7 = arith.constant 0 : index
    %c0_8 = arith.constant 0 : index
    %12 = vector.load %arg4[%c0_7, %c0_8] : memref<16x128xf32, #tpu.memory_space<vmem>>, vector<16x128xf32>
    tpu.vector_store %arg4[%c0_7, %c0_8], %11 {strides = array<i32>} : memref<16x128xf32, #tpu.memory_space<vmem>>, vector<16x128xf32>,
    return
  }
  func.func @transform_0(%arg0: i32) -> (i32, i32) {
    %c0_i32 = arith.constant 0 : i32
    %c0_i32_0 = arith.constant 0 : i32
    return %arg0, %c0_i32 : i32, i32
  }
  func.func @transform_1(%arg0: i32) -> (i32, i32) {
    %c0_i32 = arith.constant 0 : i32
    %c0_i32_0 = arith.constant 0 : i32
    %c0_i32_1 = arith.constant 0 : i32
    return %c0_i32, %c0_i32_0 : i32, i32
  }
  func.func @transform_2(%arg0: i32) -> (i32, i32) {
    %c0_i32 = arith.constant 0 : i32
    %c0_i32_0 = arith.constant 0 : i32
    %c0_i32_1 = arith.constant 0 : i32
    return %c0_i32, %c0_i32_0 : i32, i32
  }
  func.func @transform_3(%arg0: i32) -> (i32, i32) {
    %c0_i32 = arith.constant 0 : i32
    %c0_i32_0 = arith.constant 0 : i32
    return %arg0, %c0_i32 : i32, i32
  }
}

</mosaic_0001>

<bundles_post_ra>
// kernel: discriminator_forward.5
= control target key start
LH: loop header
LB: loop body
LE: loop exit
PB: predicated region body
PF: predicated region fallthrough
CT: control target
= control target key end

     0   :  { %s1524_s12 = smov 0   ;;  %s1726_s0 = inlined_call_operand.vmem [shape: bf16[2048,48], index: 0, kind: input, shape index: {}]   ;;  %s1727_s1 = inlined_call_operand.vmem [shape: bf16[48,128], index: 1, kind: input, shape index: {}]   ;;  %s1728_s2 = inlined_call_operand.vmem [shape: f32[1,128], index: 2, kind: input, shape index: {}]   ;;  %s1729_s3 = inlined_call_operand.vmem [shape: bf16[2048,128], index: 3, kind: output, shape index: {}]  }
   0x1 LB: > { %s1069_s13 = sadd.s32 4294967295, %s1502_s12   ;;  %p1073_p0 = scmp.ge.s32.totalorder %s1502_s12, 1  ;;  %s1502_s12 = sphi %s1524_s12, %s13_s12  }
   0x2   : > { %p138_p1 = scmp.lt.s32.totalorder %s1502_s12, 5 }
   0x4   : > { %p139_p2 = pnand %p1073_p0, %p138_p1 }
   0x5   : > { %s1074_s16 = sshll.u32 (!%p139_p2), %s1069_s13, 6 }
   0x6   : > { %142 = sbr.rel (%p139_p2) target bundleno = 285 (0x11d), region = 32  ;;  %p163_p3 = scmp.lt.s32.totalorder (!%p139_p2), %s1074_s16, 255 }
   0xb   : > { %v1286_v0 = vld [vmem:[%s1727_s1 + $0x10] sm:$0xff]  ;;  %v1285_v1 = vld [vmem:[%s1727_s1 + $0x8] sm:$0xff]  ;;  %s1731_s16 = smov (!%p163_p3, %s1074_s16), 255  ;;  %v1284_v2 = vld [vmem:[%s1727_s1] sm:$0xff]  ;;  %vm427_vm0 = vcmask 392192  }
   0xc   : > { %529 = vmatpush.bf16.msra.mxu0 %v1286_v0  ;;  %1478 = vmatpush.bf16.msra.mxu1 %v1286_v0  ;;  %s1075_s19 = sshll.u32 %s1731_s16, 2  ;;  %v1618_v37 = vld [vmem:[%s1728_s2] ss:$0 sm:$0xff] }
   0xd   : > { %1479 = vmatpush.bf16.msra.mxu2 %v1286_v0  ;;  %1480 = vmatpush.bf16.msra.mxu3 %v1286_v0  ;;  %s1549_s24 = scalar_lea.vmem %s1726_s0, %s1075_s19  ;;  %s1631_s29 = scalar_lea.vmem %s1729_s3, %s1075_s19 }
   0xe   : > { %v1252_v3 = vld [vmem:[%s1549_s24] sm:$0xff]  ;;  %v1253_v7 = vld [vmem:[%s1549_s24 + $0x8] sm:$0xff]  ;;  %v1254_v11 = vld [vmem:[%s1549_s24 + $0x10] sm:$0xff] }
   0xf   : > { %v1260_v4 = vld [vmem:[%s1549_s24 + $0x40] sm:$0xff]  ;;  %v1261_v8 = vld [vmem:[%s1549_s24 + $0x48] sm:$0xff]  ;;  %v1262_v12 = vld [vmem:[%s1549_s24 + $0x50] sm:$0xff] }
  0x10   : > { %530 = vmatpush.bf16.msra.mxu0 %v1285_v1  ;;  %1481 = vmatpush.bf16.msra.mxu1 %v1285_v1  ;;  %v1268_v5 = vld [vmem:[%s1549_s24 + $0x80] sm:$0xff]  ;;  %v1269_v9 = vld [vmem:[%s1549_s24 + $0x88] sm:$0xff]  ;;  %v1270_v13 = vld [vmem:[%s1549_s24 + $0x90] sm:$0xff] }
  0x11   : > { %1482 = vmatpush.bf16.msra.mxu2 %v1285_v1  ;;  %1483 = vmatpush.bf16.msra.mxu3 %v1285_v1  ;;  %v1276_v6 = vld [vmem:[%s1549_s24 + $0xc0] sm:$0xff]  ;;  %v1277_v10 = vld [vmem:[%s1549_s24 + $0xc8] sm:$0xff]  ;;  %v1278_v14 = vld [vmem:[%s1549_s24 + $0xd0] sm:$0xff] }
  0x12   : > { %v1255_v15 = vld [vmem:[%s1549_s24 + $0x18] sm:$0xff]  ;;  %v1256_v19 = vld [vmem:[%s1549_s24 + $0x20] sm:$0xff]  ;;  %v1257_v23 = vld [vmem:[%s1549_s24 + $0x28] sm:$0xff] }
  0x13   : > { %v1263_v16 = vld [vmem:[%s1549_s24 + $0x58] sm:$0xff]  ;;  %v1264_v20 = vld [vmem:[%s1549_s24 + $0x60] sm:$0xff]  ;;  %v1265_v24 = vld [vmem:[%s1549_s24 + $0x68] sm:$0xff] }
  0x14   : > { %531 = vmatpush.bf16.msra.mxu0 %v1284_v2  ;;  %1484 = vmatpush.bf16.msra.mxu1 %v1284_v2  ;;  %v1271_v17 = vld [vmem:[%s1549_s24 + $0x98] sm:$0xff]  ;;  %v1272_v21 = vld [vmem:[%s1549_s24 + $0xa0] sm:$0xff]  ;;  %v1273_v25 = vld [vmem:[%s1549_s24 + $0xa8] sm:$0xff] }
  0x15   : > { %1485 = vmatpush.bf16.msra.mxu2 %v1284_v2  ;;  %1486 = vmatpush.bf16.msra.mxu3 %v1284_v2  ;;  %v1279_v18 = vld [vmem:[%s1549_s24 + $0xd8] sm:$0xff]  ;;  %v1280_v22 = vld [vmem:[%s1549_s24 + $0xe0] sm:$0xff]  ;;  %v1281_v26 = vld [vmem:[%s1549_s24 + $0xe8] sm:$0xff] }
  0x16   : > { %v1258_v27 = vld [vmem:[%s1549_s24 + $0x30] sm:$0xff]  ;;  %v1259_v31 = vld [vmem:[%s1549_s24 + $0x38] sm:$0xff] }
  0x17   : > { %1218 = vmatmul.msk.bf16.vlgmr.msra.gmra.mxu0 %vm427_vm0, %v1252_v3  ;;  %1226 = vmatmul.msk.bf16.vlgmr.msra.gmra.mxu1 %vm427_vm0, %v1260_v4  ;;  %v1266_v28 = vld [vmem:[%s1549_s24 + $0x70] sm:$0xff]  ;;  %v1267_v32 = vld [vmem:[%s1549_s24 + $0x78] sm:$0xff] }
  0x18   : > { %1234 = vmatmul.msk.bf16.vlgmr.msra.gmra.mxu2 %vm427_vm0, %v1268_v5  ;;  %1242 = vmatmul.msk.bf16.vlgmr.msra.gmra.mxu3 %vm427_vm0, %v1276_v6  ;;  %v1274_v29 = vld [vmem:[%s1549_s24 + $0xb0] sm:$0xff]  ;;  %v1275_v33 = vld [vmem:[%s1549_s24 + $0xb8] sm:$0xff] }
  0x19   : > { %v1282_v30 = vld [vmem:[%s1549_s24 + $0xf0] sm:$0xff]  ;;  %v1283_v34 = vld [vmem:[%s1549_s24 + $0xf8] sm:$0xff] }
  0x27   : > { %1219 = vmatmul.msk.bf16.gmra.mxu0 %vm427_vm0, %v1253_v7  ;;  %1227 = vmatmul.msk.bf16.gmra.mxu1 %vm427_vm0, %v1261_v8 }
  0x28   : > { %1235 = vmatmul.msk.bf16.gmra.mxu2 %vm427_vm0, %v1269_v9  ;;  %1243 = vmatmul.msk.bf16.gmra.mxu3 %vm427_vm0, %v1277_v10 }
  0x37   : > { %1220 = vmatmul.msk.bf16.gmra.mxu0 %vm427_vm0, %v1254_v11  ;;  %1228 = vmatmul.msk.bf16.gmra.mxu1 %vm427_vm0, %v1262_v12 }
  0x38   : > { %1236 = vmatmul.msk.bf16.gmra.mxu2 %vm427_vm0, %v1270_v13  ;;  %1244 = vmatmul.msk.bf16.gmra.mxu3 %vm427_vm0, %v1278_v14 }
  0x47   : > { %1221 = vmatmul.msk.bf16.gmra.mxu0 %vm427_vm0, %v1255_v15  ;;  %1229 = vmatmul.msk.bf16.gmra.mxu1 %vm427_vm0, %v1263_v16 }
  0x48   : > { %1237 = vmatmul.msk.bf16.gmra.mxu2 %vm427_vm0, %v1271_v17  ;;  %1245 = vmatmul.msk.bf16.gmra.mxu3 %vm427_vm0, %v1279_v18 }
  0x57   : > { %1222 = vmatmul.msk.bf16.gmra.mxu0 %vm427_vm0, %v1256_v19  ;;  %1230 = vmatmul.msk.bf16.gmra.mxu1 %vm427_vm0, %v1264_v20 }
  0x58   : > { %1238 = vmatmul.msk.bf16.gmra.mxu2 %vm427_vm0, %v1272_v21  ;;  %1246 = vmatmul.msk.bf16.gmra.mxu3 %vm427_vm0, %v1280_v22 }
  0x67   : > { %1223 = vmatmul.msk.bf16.gmra.mxu0 %vm427_vm0, %v1257_v23  ;;  %1231 = vmatmul.msk.bf16.gmra.mxu1 %vm427_vm0, %v1265_v24 }
  0x68   : > { %1239 = vmatmul.msk.bf16.gmra.mxu2 %vm427_vm0, %v1273_v25  ;;  %1247 = vmatmul.msk.bf16.gmra.mxu3 %vm427_vm0, %v1281_v26 }
  0x77   : > { %1224 = vmatmul.msk.bf16.gmra.mxu0 %vm427_vm0, %v1258_v27  ;;  %1232 = vmatmul.msk.bf16.gmra.mxu1 %vm427_vm0, %v1266_v28 }
  0x78   : > { %1240 = vmatmul.msk.bf16.gmra.mxu2 %vm427_vm0, %v1274_v29  ;;  %1248 = vmatmul.msk.bf16.gmra.mxu3 %vm427_vm0, %v1282_v30 }
  0x87   : > { %1225 = vmatmul.msk.bf16.gmra.mxu0 %vm427_vm0, %v1259_v31  ;;  %1233 = vmatmul.msk.bf16.gmra.mxu1 %vm427_vm0, %v1267_v32 }
  0x88   : > { %1241 = vmatmul.msk.bf16.gmra.mxu2 %vm427_vm0, %v1275_v33  ;;  %1249 = vmatmul.msk.bf16.gmra.mxu3 %vm427_vm0, %v1283_v34 }
  0x94   : > { %v533_v35 = vpop.f32.mrf.mxu0  ;;  %v573_v36 = vpop.f32.mrf.mxu1 }
  0x95   : > { %v534_v38 = vadd.f32 %v1618_v37, %v533_v35  ;;  %v574_v39 = vadd.f32 %v1618_v37, %v573_v36 }
  0x97   : > { %v757_v44 = vmul.f32 0.2, %v534_v38  ;;  %v773_v45 = vmul.f32 0.2, %v574_v39  ;;  %vm693_vm1 = vcmp.gt.f32.partialorder %v534_v38, 0.0  ;;  %vm709_vm2 = vcmp.gt.f32.partialorder %v574_v39, 0.0 }
  0x99   : > { %v821_v52 = vsel %vm693_vm1, %v534_v38, %v757_v44  ;;  %v837_v53 = vsel %vm709_vm2, %v574_v39, %v773_v45 }
  0x9b   : > { %v613_v40 = vpop.f32.mrf.mxu2  ;;  %v653_v41 = vpop.f32.mrf.mxu3 }
  0x9c   : > { %v535_v42 = vpop.f32.mrf.mxu0  ;;  %v575_v43 = vpop.f32.mrf.mxu1  ;;  %v614_v50 = vadd.f32 %v1618_v37, %v613_v40  ;;  %v654_v51 = vadd.f32 %v1618_v37, %v653_v41 }
  0x9d   : > { %v536_v46 = vadd.f32 %v1618_v37, %v535_v42  ;;  %v576_v47 = vadd.f32 %v1618_v37, %v575_v43 }
  0x9e   : > { %v789_v60 = vmul.f32 0.2, %v614_v50  ;;  %v805_v61 = vmul.f32 0.2, %v654_v51  ;;  %vm725_vm5 = vcmp.gt.f32.partialorder %v614_v50, 0.0  ;;  %vm741_vm6 = vcmp.gt.f32.partialorder %v654_v51, 0.0 }
  0x9f   : > { %vm694_vm3 = vcmp.gt.f32.partialorder %v536_v46, 0.0  ;;  %v758_v48 = vmul.f32 0.2, %v536_v46  ;;  %vm710_vm4 = vcmp.gt.f32.partialorder %v576_v47, 0.0  ;;  %v774_v49 = vmul.f32 0.2, %v576_v47 }
  0xa0   : > { %v853_v4 = vsel %vm725_vm5, %v614_v50, %v789_v60  ;;  %v869_v5 = vsel %vm741_vm6, %v654_v51, %v805_v61 }
  0xa1   : > { %v822_v54 = vsel %vm694_vm3, %v536_v46, %v758_v48  ;;  %v838_v55 = vsel %vm710_vm4, %v576_v47, %v774_v49 }
  0xa2   : > { %v1290_v56 = vpack.c.bf16 %v822_v54, %v821_v52  ;;  %v1330_v57 = vpack.c.bf16 %v838_v55, %v837_v53 }
  0xa3   : > { %v615_v58 = vpop.f32.mrf.mxu2  ;;  %v655_v59 = vpop.f32.mrf.mxu3 }
  0xa4   : > { %1291 = vst [vmem:[%s1631_s29] sm:$0xff] %v1290_v56   ;;  %v616_v62 = vadd.f32 %v1618_v37, %v615_v58  ;;  %v656_v63 = vadd.f32 %v1618_v37, %v655_v59  ;;  %v538_v0 = vpop.f32.mrf.mxu0  ;;  %v578_v1 = vpop.f32.mrf.mxu1 }
  0xa5   : > { %1454 = vst [vmem:[%s1631_s29 + $0x40] sm:$0xff] %v1330_v57   ;;  %v539_v10 = vadd.f32 %v1618_v37, %v538_v0  ;;  %v579_v11 = vadd.f32 %v1618_v37, %v578_v1 }
  0xa6   : > { %vm726_vm7 = vcmp.gt.f32.partialorder %v616_v62, 0.0  ;;  %v790_v2 = vmul.f32 0.2, %v616_v62  ;;  %vm742_vm8 = vcmp.gt.f32.partialorder %v656_v63, 0.0  ;;  %v806_v3 = vmul.f32 0.2, %v656_v63 }
  0xa7   : > { %v759_v16 = vmul.f32 0.2, %v539_v10  ;;  %v775_v17 = vmul.f32 0.2, %v579_v11  ;;  %vm695_vm9 = vcmp.gt.f32.partialorder %v539_v10, 0.0  ;;  %vm711_vm10 = vcmp.gt.f32.partialorder %v579_v11, 0.0 }
  0xa8   : > { %v854_v6 = vsel %vm726_vm7, %v616_v62, %v790_v2  ;;  %v870_v7 = vsel %vm742_vm8, %v656_v63, %v806_v3 }
  0xa9   : > { %v1370_v8 = vpack.c.bf16 %v854_v6, %v853_v4  ;;  %v1410_v9 = vpack.c.bf16 %v870_v7, %v869_v5  ;;  %v823_v24 = vsel %vm695_vm9, %v539_v10, %v759_v16  ;;  %v839_v25 = vsel %vm711_vm10, %v579_v11, %v775_v17 }
  0xab   : > { %1462 = vst [vmem:[%s1631_s29 + $0x80] sm:$0xff] %v1370_v8   ;;  %v618_v12 = vpop.f32.mrf.mxu2  ;;  %v658_v13 = vpop.f32.mrf.mxu3 }
  0xac   : > { %1470 = vst [vmem:[%s1631_s29 + $0xc0] sm:$0xff] %v1410_v9   ;;  %v540_v14 = vpop.f32.mrf.mxu0  ;;  %v580_v15 = vpop.f32.mrf.mxu1  ;;  %v619_v22 = vadd.f32 %v1618_v37, %v618_v12  ;;  %v659_v23 = vadd.f32 %v1618_v37, %v658_v13 }
  0xad   : > { %v541_v18 = vadd.f32 %v1618_v37, %v540_v14  ;;  %v581_v19 = vadd.f32 %v1618_v37, %v580_v15 }
  0xae   : > { %v791_v32 = vmul.f32 0.2, %v619_v22  ;;  %v807_v33 = vmul.f32 0.2, %v659_v23  ;;  %vm727_vm13 = vcmp.gt.f32.partialorder %v619_v22, 0.0  ;;  %vm743_vm14 = vcmp.gt.f32.partialorder %v659_v23, 0.0 }
  0xaf   : > { %vm696_vm11 = vcmp.gt.f32.partialorder %v541_v18, 0.0  ;;  %v760_v20 = vmul.f32 0.2, %v541_v18  ;;  %vm712_vm12 = vcmp.gt.f32.partialorder %v581_v19, 0.0  ;;  %v776_v21 = vmul.f32 0.2, %v581_v19 }
  0xb0   : > { %v855_v41 = vsel %vm727_vm13, %v619_v22, %v791_v32  ;;  %v871_v42 = vsel %vm743_vm14, %v659_v23, %v807_v33 }
  0xb1   : > { %v824_v26 = vsel %vm696_vm11, %v541_v18, %v760_v20  ;;  %v840_v27 = vsel %vm712_vm12, %v581_v19, %v776_v21 }
  0xb2   : > { %v1295_v28 = vpack.c.bf16 %v824_v26, %v823_v24  ;;  %v1335_v29 = vpack.c.bf16 %v840_v27, %v839_v25 }
  0xb3   : > { %v620_v30 = vpop.f32.mrf.mxu2  ;;  %v660_v31 = vpop.f32.mrf.mxu3 }
  0xb4   : > { %1447 = vst [vmem:[%s1631_s29 + $0x8] sm:$0xff] %v1295_v28   ;;  %v621_v34 = vadd.f32 %v1618_v37, %v620_v30  ;;  %v661_v35 = vadd.f32 %v1618_v37, %v660_v31  ;;  %v543_v36 = vpop.f32.mrf.mxu0  ;;  %v583_v38 = vpop.f32.mrf.mxu1 }
  0xb5   : > { %1455 = vst [vmem:[%s1631_s29 + $0x48] sm:$0xff] %v1335_v29   ;;  %v544_v47 = vadd.f32 %v1618_v37, %v543_v36  ;;  %v584_v48 = vadd.f32 %v1618_v37, %v583_v38 }
  0xb6   : > { %vm728_vm15 = vcmp.gt.f32.partialorder %v621_v34, 0.0  ;;  %v792_v39 = vmul.f32 0.2, %v621_v34  ;;  %vm744_vm0 = vcmp.gt.f32.partialorder %v661_v35, 0.0  ;;  %v808_v40 = vmul.f32 0.2, %v661_v35 }
  0xb7   : > { %v761_v53 = vmul.f32 0.2, %v544_v47  ;;  %v777_v54 = vmul.f32 0.2, %v584_v48  ;;  %vm697_vm1 = vcmp.gt.f32.partialorder %v544_v47, 0.0  ;;  %vm713_vm2 = vcmp.gt.f32.partialorder %v584_v48, 0.0 }
  0xb8   : > { %v856_v43 = vsel %vm728_vm15, %v621_v34, %v792_v39  ;;  %v872_v44 = vsel %vm744_vm0, %v661_v35, %v808_v40 }
  0xb9   : > { %v1375_v45 = vpack.c.bf16 %v856_v43, %v855_v41  ;;  %v1415_v46 = vpack.c.bf16 %v872_v44, %v871_v42  ;;  %v825_v61 = vsel %vm697_vm1, %v544_v47, %v761_v53  ;;  %v841_v62 = vsel %vm713_vm2, %v584_v48, %v777_v54 }
  0xbb   : > { %1463 = vst [vmem:[%s1631_s29 + $0x88] sm:$0xff] %v1375_v45   ;;  %v623_v49 = vpop.f32.mrf.mxu2  ;;  %v663_v50 = vpop.f32.mrf.mxu3 }
  0xbc   : > { %1471 = vst [vmem:[%s1631_s29 + $0xc8] sm:$0xff] %v1415_v46   ;;  %v545_v51 = vpop.f32.mrf.mxu0  ;;  %v585_v52 = vpop.f32.mrf.mxu1  ;;  %v624_v59 = vadd.f32 %v1618_v37, %v623_v49  ;;  %v664_v60 = vadd.f32 %v1618_v37, %v663_v50 }
  0xbd   : > { %v546_v55 = vadd.f32 %v1618_v37, %v545_v51  ;;  %v586_v56 = vadd.f32 %v1618_v37, %v585_v52 }
  0xbe   : > { %v793_v5 = vmul.f32 0.2, %v624_v59  ;;  %v809_v6 = vmul.f32 0.2, %v664_v60  ;;  %vm729_vm5 = vcmp.gt.f32.partialorder %v624_v59, 0.0  ;;  %vm745_vm6 = vcmp.gt.f32.partialorder %v664_v60, 0.0 }
  0xbf   : > { %vm698_vm3 = vcmp.gt.f32.partialorder %v546_v55, 0.0  ;;  %v762_v57 = vmul.f32 0.2, %v546_v55  ;;  %vm714_vm4 = vcmp.gt.f32.partialorder %v586_v56, 0.0  ;;  %v778_v58 = vmul.f32 0.2, %v586_v56 }
  0xc0   : > { %v857_v13 = vsel %vm729_vm5, %v624_v59, %v793_v5  ;;  %v873_v14 = vsel %vm745_vm6, %v664_v60, %v809_v6 }
  0xc1   : > { %v826_v63 = vsel %vm698_vm3, %v546_v55, %v762_v57  ;;  %v842_v0 = vsel %vm714_vm4, %v586_v56, %v778_v58 }
  0xc2   : > { %v1300_v1 = vpack.c.bf16 %v826_v63, %v825_v61  ;;  %v1340_v2 = vpack.c.bf16 %v842_v0, %v841_v62 }
  0xc3   : > { %v625_v3 = vpop.f32.mrf.mxu2  ;;  %v665_v4 = vpop.f32.mrf.mxu3 }
  0xc4   : > { %1448 = vst [vmem:[%s1631_s29 + $0x10] sm:$0xff] %v1300_v1   ;;  %v626_v7 = vadd.f32 %v1618_v37, %v625_v3  ;;  %v666_v8 = vadd.f32 %v1618_v37, %v665_v4  ;;  %v548_v9 = vpop.f32.mrf.mxu0  ;;  %v588_v10 = vpop.f32.mrf.mxu1 }
  0xc5   : > { %1456 = vst [vmem:[%s1631_s29 + $0x50] sm:$0xff] %v1340_v2   ;;  %v549_v19 = vadd.f32 %v1618_v37, %v548_v9  ;;  %v589_v20 = vadd.f32 %v1618_v37, %v588_v10 }
  0xc6   : > { %vm730_vm7 = vcmp.gt.f32.partialorder %v626_v7, 0.0  ;;  %v794_v11 = vmul.f32 0.2, %v626_v7  ;;  %vm746_vm8 = vcmp.gt.f32.partialorder %v666_v8, 0.0  ;;  %v810_v12 = vmul.f32 0.2, %v666_v8 }
  0xc7   : > { %v763_v25 = vmul.f32 0.2, %v549_v19  ;;  %v779_v26 = vmul.f32 0.2, %v589_v20  ;;  %vm699_vm9 = vcmp.gt.f32.partialorder %v549_v19, 0.0  ;;  %vm715_vm10 = vcmp.gt.f32.partialorder %v589_v20, 0.0 }
  0xc8   : > { %v858_v15 = vsel %vm730_vm7, %v626_v7, %v794_v11  ;;  %v874_v16 = vsel %vm746_vm8, %v666_v8, %v810_v12 }
  0xc9   : > { %v1380_v17 = vpack.c.bf16 %v858_v15, %v857_v13  ;;  %v1420_v18 = vpack.c.bf16 %v874_v16, %v873_v14  ;;  %v827_v33 = vsel %vm699_vm9, %v549_v19, %v763_v25  ;;  %v843_v34 = vsel %vm715_vm10, %v589_v20, %v779_v26 }
  0xcb   : > { %1464 = vst [vmem:[%s1631_s29 + $0x90] sm:$0xff] %v1380_v17   ;;  %v628_v21 = vpop.f32.mrf.mxu2  ;;  %v668_v22 = vpop.f32.mrf.mxu3 }
  0xcc   : > { %1472 = vst [vmem:[%s1631_s29 + $0xd0] sm:$0xff] %v1420_v18   ;;  %v550_v23 = vpop.f32.mrf.mxu0  ;;  %v590_v24 = vpop.f32.mrf.mxu1  ;;  %v629_v31 = vadd.f32 %v1618_v37, %v628_v21  ;;  %v669_v32 = vadd.f32 %v1618_v37, %v668_v22 }
  0xcd   : > { %v551_v27 = vadd.f32 %v1618_v37, %v550_v23  ;;  %v591_v28 = vadd.f32 %v1618_v37, %v590_v24 }
  0xce   : > { %v795_v42 = vmul.f32 0.2, %v629_v31  ;;  %v811_v43 = vmul.f32 0.2, %v669_v32  ;;  %vm731_vm13 = vcmp.gt.f32.partialorder %v629_v31, 0.0  ;;  %vm747_vm14 = vcmp.gt.f32.partialorder %v669_v32, 0.0 }
  0xcf   : > { %vm700_vm11 = vcmp.gt.f32.partialorder %v551_v27, 0.0  ;;  %v764_v29 = vmul.f32 0.2, %v551_v27  ;;  %vm716_vm12 = vcmp.gt.f32.partialorder %v591_v28, 0.0  ;;  %v780_v30 = vmul.f32 0.2, %v591_v28 }
  0xd0   : > { %v859_v50 = vsel %vm731_vm13, %v629_v31, %v795_v42  ;;  %v875_v51 = vsel %vm747_vm14, %v669_v32, %v811_v43 }
  0xd1   : > { %v828_v35 = vsel %vm700_vm11, %v551_v27, %v764_v29  ;;  %v844_v36 = vsel %vm716_vm12, %v591_v28, %v780_v30 }
  0xd2   : > { %v1305_v38 = vpack.c.bf16 %v828_v35, %v827_v33  ;;  %v1345_v39 = vpack.c.bf16 %v844_v36, %v843_v34 }
  0xd3   : > { %v630_v40 = vpop.f32.mrf.mxu2  ;;  %v670_v41 = vpop.f32.mrf.mxu3 }
  0xd4   : > { %1449 = vst [vmem:[%s1631_s29 + $0x18] sm:$0xff] %v1305_v38   ;;  %v631_v44 = vadd.f32 %v1618_v37, %v630_v40  ;;  %v671_v45 = vadd.f32 %v1618_v37, %v670_v41  ;;  %v553_v46 = vpop.f32.mrf.mxu0  ;;  %v593_v47 = vpop.f32.mrf.mxu1 }
  0xd5   : > { %1457 = vst [vmem:[%s1631_s29 + $0x58] sm:$0xff] %v1345_v39   ;;  %v554_v56 = vadd.f32 %v1618_v37, %v553_v46  ;;  %v594_v57 = vadd.f32 %v1618_v37, %v593_v47 }
  0xd6   : > { %vm732_vm15 = vcmp.gt.f32.partialorder %v631_v44, 0.0  ;;  %v796_v48 = vmul.f32 0.2, %v631_v44  ;;  %vm748_vm0 = vcmp.gt.f32.partialorder %v671_v45, 0.0  ;;  %v812_v49 = vmul.f32 0.2, %v671_v45 }
  0xd7   : > { %v765_v62 = vmul.f32 0.2, %v554_v56  ;;  %v781_v63 = vmul.f32 0.2, %v594_v57  ;;  %vm701_vm1 = vcmp.gt.f32.partialorder %v554_v56, 0.0  ;;  %vm717_vm2 = vcmp.gt.f32.partialorder %v594_v57, 0.0 }
  0xd8   : > { %v860_v52 = vsel %vm732_vm15, %v631_v44, %v796_v48  ;;  %v876_v53 = vsel %vm748_vm0, %v671_v45, %v812_v49 }
  0xd9   : > { %v1385_v54 = vpack.c.bf16 %v860_v52, %v859_v50  ;;  %v1425_v55 = vpack.c.bf16 %v876_v53, %v875_v51  ;;  %v829_v6 = vsel %vm701_vm1, %v554_v56, %v765_v62  ;;  %v845_v7 = vsel %vm717_vm2, %v594_v57, %v781_v63 }
  0xdb   : > { %1465 = vst [vmem:[%s1631_s29 + $0x98] sm:$0xff] %v1385_v54   ;;  %v633_v58 = vpop.f32.mrf.mxu2  ;;  %v673_v59 = vpop.f32.mrf.mxu3 }
  0xdc   : > { %1473 = vst [vmem:[%s1631_s29 + $0xd8] sm:$0xff] %v1425_v55   ;;  %v555_v60 = vpop.f32.mrf.mxu0  ;;  %v595_v61 = vpop.f32.mrf.mxu1  ;;  %v634_v4 = vadd.f32 %v1618_v37, %v633_v58  ;;  %v674_v5 = vadd.f32 %v1618_v37, %v673_v59 }
  0xdd   : > { %v556_v0 = vadd.f32 %v1618_v37, %v555_v60  ;;  %v596_v1 = vadd.f32 %v1618_v37, %v595_v61 }
  0xde   : > { %v797_v14 = vmul.f32 0.2, %v634_v4  ;;  %v813_v15 = vmul.f32 0.2, %v674_v5  ;;  %vm733_vm5 = vcmp.gt.f32.partialorder %v634_v4, 0.0  ;;  %vm749_vm6 = vcmp.gt.f32.partialorder %v674_v5, 0.0 }
  0xdf   : > { %vm702_vm3 = vcmp.gt.f32.partialorder %v556_v0, 0.0  ;;  %v766_v2 = vmul.f32 0.2, %v556_v0  ;;  %vm718_vm4 = vcmp.gt.f32.partialorder %v596_v1, 0.0  ;;  %v782_v3 = vmul.f32 0.2, %v596_v1 }
  0xe0   : > { %v861_v22 = vsel %vm733_vm5, %v634_v4, %v797_v14  ;;  %v877_v23 = vsel %vm749_vm6, %v674_v5, %v813_v15 }
  0xe1   : > { %v830_v8 = vsel %vm702_vm3, %v556_v0, %v766_v2  ;;  %v846_v9 = vsel %vm718_vm4, %v596_v1, %v782_v3 }
  0xe2   : > { %v1310_v10 = vpack.c.bf16 %v830_v8, %v829_v6  ;;  %v1350_v11 = vpack.c.bf16 %v846_v9, %v845_v7 }
  0xe3   : > { %v635_v12 = vpop.f32.mrf.mxu2  ;;  %v675_v13 = vpop.f32.mrf.mxu3 }
  0xe4   : > { %1450 = vst [vmem:[%s1631_s29 + $0x20] sm:$0xff] %v1310_v10   ;;  %v636_v16 = vadd.f32 %v1618_v37, %v635_v12  ;;  %v676_v17 = vadd.f32 %v1618_v37, %v675_v13  ;;  %v558_v18 = vpop.f32.mrf.mxu0  ;;  %v598_v19 = vpop.f32.mrf.mxu1 }
  0xe5   : > { %1458 = vst [vmem:[%s1631_s29 + $0x60] sm:$0xff] %v1350_v11   ;;  %v559_v28 = vadd.f32 %v1618_v37, %v558_v18  ;;  %v599_v29 = vadd.f32 %v1618_v37, %v598_v19 }
  0xe6   : > { %vm734_vm7 = vcmp.gt.f32.partialorder %v636_v16, 0.0  ;;  %v798_v20 = vmul.f32 0.2, %v636_v16  ;;  %vm750_vm8 = vcmp.gt.f32.partialorder %v676_v17, 0.0  ;;  %v814_v21 = vmul.f32 0.2, %v676_v17 }
  0xe7   : > { %v767_v34 = vmul.f32 0.2, %v559_v28  ;;  %v783_v35 = vmul.f32 0.2, %v599_v29  ;;  %vm703_vm9 = vcmp.gt.f32.partialorder %v559_v28, 0.0  ;;  %vm719_vm10 = vcmp.gt.f32.partialorder %v599_v29, 0.0 }
  0xe8   : > { %v862_v24 = vsel %vm734_vm7, %v636_v16, %v798_v20  ;;  %v878_v25 = vsel %vm750_vm8, %v676_v17, %v814_v21 }
  0xe9   : > { %v1390_v26 = vpack.c.bf16 %v862_v24, %v861_v22  ;;  %v1430_v27 = vpack.c.bf16 %v878_v25, %v877_v23  ;;  %v831_v43 = vsel %vm703_vm9, %v559_v28, %v767_v34  ;;  %v847_v44 = vsel %vm719_vm10, %v599_v29, %v783_v35 }
  0xeb   : > { %1466 = vst [vmem:[%s1631_s29 + $0xa0] sm:$0xff] %v1390_v26   ;;  %v638_v30 = vpop.f32.mrf.mxu2  ;;  %v678_v31 = vpop.f32.mrf.mxu3 }
  0xec   : > { %1474 = vst [vmem:[%s1631_s29 + $0xe0] sm:$0xff] %v1430_v27   ;;  %v560_v32 = vpop.f32.mrf.mxu0  ;;  %v600_v33 = vpop.f32.mrf.mxu1  ;;  %v639_v41 = vadd.f32 %v1618_v37, %v638_v30  ;;  %v679_v42 = vadd.f32 %v1618_v37, %v678_v31 }
  0xed   : > { %v561_v36 = vadd.f32 %v1618_v37, %v560_v32  ;;  %v601_v38 = vadd.f32 %v1618_v37, %v600_v33 }
  0xee   : > { %v799_v51 = vmul.f32 0.2, %v639_v41  ;;  %v815_v52 = vmul.f32 0.2, %v679_v42  ;;  %vm735_vm13 = vcmp.gt.f32.partialorder %v639_v41, 0.0  ;;  %vm751_vm14 = vcmp.gt.f32.partialorder %v679_v42, 0.0 }
  0xef   : > { %vm704_vm11 = vcmp.gt.f32.partialorder %v561_v36, 0.0  ;;  %v768_v39 = vmul.f32 0.2, %v561_v36  ;;  %vm720_vm12 = vcmp.gt.f32.partialorder %v601_v38, 0.0  ;;  %v784_v40 = vmul.f32 0.2, %v601_v38 }
  0xf0   : > { %v863_v59 = vsel %vm735_vm13, %v639_v41, %v799_v51  ;;  %v879_v60 = vsel %vm751_vm14, %v679_v42, %v815_v52 }
  0xf1   : > { %v832_v45 = vsel %vm704_vm11, %v561_v36, %v768_v39  ;;  %v848_v46 = vsel %vm720_vm12, %v601_v38, %v784_v40 }
  0xf2   : > { %v1315_v47 = vpack.c.bf16 %v832_v45, %v831_v43  ;;  %v1355_v48 = vpack.c.bf16 %v848_v46, %v847_v44 }
  0xf3   : > { %v640_v49 = vpop.f32.mrf.mxu2  ;;  %v680_v50 = vpop.f32.mrf.mxu3 }
  0xf4   : > { %1451 = vst [vmem:[%s1631_s29 + $0x28] sm:$0xff] %v1315_v47   ;;  %v641_v53 = vadd.f32 %v1618_v37, %v640_v49  ;;  %v681_v54 = vadd.f32 %v1618_v37, %v680_v50  ;;  %v563_v55 = vpop.f32.mrf.mxu0  ;;  %v603_v56 = vpop.f32.mrf.mxu1 }
  0xf5   : > { %1459 = vst [vmem:[%s1631_s29 + $0x68] sm:$0xff] %v1355_v48   ;;  %v564_v1 = vadd.f32 %v1618_v37, %v563_v55  ;;  %v604_v2 = vadd.f32 %v1618_v37, %v603_v56 }
  0xf6   : > { %vm736_vm15 = vcmp.gt.f32.partialorder %v641_v53, 0.0  ;;  %v800_v57 = vmul.f32 0.2, %v641_v53  ;;  %vm752_vm0 = vcmp.gt.f32.partialorder %v681_v54, 0.0  ;;  %v816_v58 = vmul.f32 0.2, %v681_v54 }
  0xf7   : > { %v769_v7 = vmul.f32 0.2, %v564_v1  ;;  %v785_v8 = vmul.f32 0.2, %v604_v2  ;;  %vm705_vm1 = vcmp.gt.f32.partialorder %v564_v1, 0.0  ;;  %vm721_vm2 = vcmp.gt.f32.partialorder %v604_v2, 0.0 }
  0xf8   : > { %v864_v61 = vsel %vm736_vm15, %v641_v53, %v800_v57  ;;  %v880_v62 = vsel %vm752_vm0, %v681_v54, %v816_v58 }
  0xf9   : > { %v1395_v63 = vpack.c.bf16 %v864_v61, %v863_v59  ;;  %v1435_v0 = vpack.c.bf16 %v880_v62, %v879_v60  ;;  %v833_v15 = vsel %vm705_vm1, %v564_v1, %v769_v7  ;;  %v849_v16 = vsel %vm721_vm2, %v604_v2, %v785_v8 }
  0xfb   : > { %1467 = vst [vmem:[%s1631_s29 + $0xa8] sm:$0xff] %v1395_v63   ;;  %v643_v3 = vpop.f32.mrf.mxu2  ;;  %v683_v4 = vpop.f32.mrf.mxu3 }
  0xfc   : > { %1475 = vst [vmem:[%s1631_s29 + $0xe8] sm:$0xff] %v1435_v0   ;;  %v565_v5 = vpop.f32.mrf.mxu0  ;;  %v605_v6 = vpop.f32.mrf.mxu1  ;;  %v644_v13 = vadd.f32 %v1618_v37, %v643_v3  ;;  %v684_v14 = vadd.f32 %v1618_v37, %v683_v4 }
  0xfd   : > { %v566_v9 = vadd.f32 %v1618_v37, %v565_v5  ;;  %v606_v10 = vadd.f32 %v1618_v37, %v605_v6 }
  0xfe   : > { %v801_v23 = vmul.f32 0.2, %v644_v13  ;;  %v817_v24 = vmul.f32 0.2, %v684_v14  ;;  %vm737_vm5 = vcmp.gt.f32.partialorder %v644_v13, 0.0  ;;  %vm753_vm6 = vcmp.gt.f32.partialorder %v684_v14, 0.0 }
  0xff   : > { %vm706_vm3 = vcmp.gt.f32.partialorder %v566_v9, 0.0  ;;  %v770_v11 = vmul.f32 0.2, %v566_v9  ;;  %vm722_vm4 = vcmp.gt.f32.partialorder %v606_v10, 0.0  ;;  %v786_v12 = vmul.f32 0.2, %v606_v10 }
 0x100   : > { %v865_v31 = vsel %vm737_vm5, %v644_v13, %v801_v23  ;;  %v881_v32 = vsel %vm753_vm6, %v684_v14, %v817_v24 }
 0x101   : > { %v834_v17 = vsel %vm706_vm3, %v566_v9, %v770_v11  ;;  %v850_v18 = vsel %vm722_vm4, %v606_v10, %v786_v12 }
 0x102   : > { %v1320_v19 = vpack.c.bf16 %v834_v17, %v833_v15  ;;  %v1360_v20 = vpack.c.bf16 %v850_v18, %v849_v16 }
 0x103   : > { %v645_v21 = vpop.f32.mrf.mxu2  ;;  %v685_v22 = vpop.f32.mrf.mxu3 }
 0x104   : > { %1452 = vst [vmem:[%s1631_s29 + $0x30] sm:$0xff] %v1320_v19   ;;  %v646_v25 = vadd.f32 %v1618_v37, %v645_v21  ;;  %v686_v26 = vadd.f32 %v1618_v37, %v685_v22  ;;  %v568_v27 = vpop.f32.mrf.mxu0  ;;  %v608_v28 = vpop.f32.mrf.mxu1 }
 0x105   : > { %1460 = vst [vmem:[%s1631_s29 + $0x70] sm:$0xff] %v1360_v20   ;;  %v569_v38 = vadd.f32 %v1618_v37, %v568_v27  ;;  %v609_v39 = vadd.f32 %v1618_v37, %v608_v28 }
 0x106   : > { %vm738_vm7 = vcmp.gt.f32.partialorder %v646_v25, 0.0  ;;  %v802_v29 = vmul.f32 0.2, %v646_v25  ;;  %vm754_vm8 = vcmp.gt.f32.partialorder %v686_v26, 0.0  ;;  %v818_v30 = vmul.f32 0.2, %v686_v26 }
 0x107   : > { %v771_v44 = vmul.f32 0.2, %v569_v38  ;;  %v787_v45 = vmul.f32 0.2, %v609_v39  ;;  %vm707_vm9 = vcmp.gt.f32.partialorder %v569_v38, 0.0  ;;  %vm723_vm10 = vcmp.gt.f32.partialorder %v609_v39, 0.0 }
 0x108   : > { %v866_v33 = vsel %vm738_vm7, %v646_v25, %v802_v29  ;;  %v882_v34 = vsel %vm754_vm8, %v686_v26, %v818_v30 }
 0x109   : > { %v1400_v35 = vpack.c.bf16 %v866_v33, %v865_v31  ;;  %v1440_v36 = vpack.c.bf16 %v882_v34, %v881_v32  ;;  %v835_v52 = vsel %vm707_vm9, %v569_v38, %v771_v44  ;;  %v851_v53 = vsel %vm723_vm10, %v609_v39, %v787_v45 }
 0x10b   : > { %1468 = vst [vmem:[%s1631_s29 + $0xb0] sm:$0xff] %v1400_v35   ;;  %v648_v40 = vpop.f32.mrf.mxu2  ;;  %v688_v41 = vpop.f32.mrf.mxu3 }
 0x10c   : > { %1476 = vst [vmem:[%s1631_s29 + $0xf0] sm:$0xff] %v1440_v36   ;;  %v570_v42 = vpop.f32.mrf.mxu0  ;;  %v610_v43 = vpop.f32.mrf.mxu1  ;;  %v649_v50 = vadd.f32 %v1618_v37, %v648_v40  ;;  %v689_v51 = vadd.f32 %v1618_v37, %v688_v41 }
 0x10d   : > { %v571_v46 = vadd.f32 %v1618_v37, %v570_v42  ;;  %v611_v47 = vadd.f32 %v1618_v37, %v610_v43 }
 0x10e   : > { %v803_v60 = vmul.f32 0.2, %v649_v50  ;;  %v819_v61 = vmul.f32 0.2, %v689_v51  ;;  %vm739_vm13 = vcmp.gt.f32.partialorder %v649_v50, 0.0  ;;  %vm755_vm14 = vcmp.gt.f32.partialorder %v689_v51, 0.0 }
 0x10f   : > { %vm708_vm11 = vcmp.gt.f32.partialorder %v571_v46, 0.0  ;;  %v772_v48 = vmul.f32 0.2, %v571_v46  ;;  %vm724_vm12 = vcmp.gt.f32.partialorder %v611_v47, 0.0  ;;  %v788_v49 = vmul.f32 0.2, %v611_v47 }
 0x110   : > { %v867_v2 = vsel %vm739_vm13, %v649_v50, %v803_v60  ;;  %v883_v3 = vsel %vm755_vm14, %v689_v51, %v819_v61 }
 0x111   : > { %v836_v54 = vsel %vm708_vm11, %v571_v46, %v772_v48  ;;  %v852_v55 = vsel %vm724_vm12, %v611_v47, %v788_v49 }
 0x112   : > { %v1325_v56 = vpack.c.bf16 %v836_v54, %v835_v52  ;;  %v1365_v57 = vpack.c.bf16 %v852_v55, %v851_v53 }
 0x113   : > { %v650_v58 = vpop.f32.mrf.mxu2  ;;  %v690_v59 = vpop.f32.mrf.mxu3 }
 0x114   : > { %1453 = vst [vmem:[%s1631_s29 + $0x38] sm:$0xff] %v1325_v56   ;;  %v651_v62 = vadd.f32 %v1618_v37, %v650_v58  ;;  %v691_v63 = vadd.f32 %v1618_v37, %v690_v59 }
 0x115   : > { %1461 = vst [vmem:[%s1631_s29 + $0x78] sm:$0xff] %v1365_v57  }
 0x116   : > { %vm740_vm15 = vcmp.gt.f32.partialorder %v651_v62, 0.0  ;;  %v804_v0 = vmul.f32 0.2, %v651_v62  ;;  %vm756_vm0 = vcmp.gt.f32.partialorder %v691_v63, 0.0  ;;  %v820_v1 = vmul.f32 0.2, %v691_v63 }
 0x118   : > { %v868_v4 = vsel %vm740_vm15, %v651_v62, %v804_v0  ;;  %v884_v5 = vsel %vm756_vm0, %v691_v63, %v820_v1 }
 0x119   : > { %v1405_v6 = vpack.c.bf16 %v868_v4, %v867_v2  ;;  %v1445_v7 = vpack.c.bf16 %v884_v5, %v883_v3 }
 0x11b   : > { %1469 = vst [vmem:[%s1631_s29 + $0xb8] sm:$0xff] %v1405_v6  }
 0x11c   : > { %1477 = vst [vmem:[%s1631_s29 + $0xf8] sm:$0xff] %v1445_v7  }
 0x11d PF: > { %s13_s12 = sadd.s32 1, %s1502_s12  }
 0x11e   : > { %p10_p4 = scmp.ge.s32.totalorder %s13_s12, 6  }
 0x120   :  { %12 = sbr.rel (!%p10_p4) target bundleno = 1 (0x1), region = 62 }

// kernel: discriminator_forward.6
= control target key start
LH: loop header
LB: loop body
LE: loop exit
PB: predicated region body
PF: predicated region fallthrough
CT: control target
= control target key end

     0   :  { %s3148_s1 = inlined_call_operand.vmem [shape: bf16[128,128], index: 1, kind: input, shape index: {}]   ;;  %s3149_s0 = inlined_call_operand.vmem [shape: bf16[512,128], index: 0, kind: input, shape index: {}]   ;;  %s3150_s2 = inlined_call_operand.vmem [shape: f32[1,128], index: 2, kind: input, shape index: {}]   ;;  %s3151_s3 = inlined_call_operand.vmem [shape: f32[1,128], index: 3, kind: input, shape index: {}]   ;;  %s3152_s4 = inlined_call_operand.vmem [shape: bf16[512,128], index: 4, kind: output, shape index: {}]  }
   0x1   :  { %v1385_v0 = vld [vmem:[%s3148_s1 + $0x38] sm:$0xff]  ;;  %v1384_v1 = vld [vmem:[%s3148_s1 + $0x30] sm:$0xff]  ;;  %v1383_v2 = vld [vmem:[%s3148_s1 + $0x28] sm:$0xff] }
   0x2   :  { %337 = vmatpush.bf16.msra.mxu0 %v1385_v0  ;;  %1577 = vmatpush.bf16.msra.mxu1 %v1385_v0  ;;  %v1382_v3 = vld [vmem:[%s3148_s1 + $0x20] sm:$0xff]  ;;  %v1381_v4 = vld [vmem:[%s3148_s1 + $0x18] sm:$0xff]  ;;  %v1380_v5 = vld [vmem:[%s3148_s1 + $0x10] sm:$0xff] }
   0x3   :  { %1578 = vmatpush.bf16.msra.mxu2 %v1385_v0  ;;  %1579 = vmatpush.bf16.msra.mxu3 %v1385_v0  ;;  %v1379_v6 = vld [vmem:[%s3148_s1 + $0x8] sm:$0xff]  ;;  %v1378_v7 = vld [vmem:[%s3148_s1] sm:$0xff]  ;;  %v1348_v13 = vld [vmem:[%s3149_s0 + $0x10] sm:$0xff] }
   0x4   :  { %v1346_v8 = vld [vmem:[%s3149_s0] sm:$0xff]  ;;  %v1347_v10 = vld [vmem:[%s3149_s0 + $0x8] sm:$0xff]  ;;  %v1356_v14 = vld [vmem:[%s3149_s0 + $0x50] sm:$0xff] }
   0x5   :  { %v1354_v9 = vld [vmem:[%s3149_s0 + $0x40] sm:$0xff]  ;;  %v1355_v11 = vld [vmem:[%s3149_s0 + $0x48] sm:$0xff]  ;;  %v1349_v16 = vld [vmem:[%s3149_s0 + $0x18] sm:$0xff] }
   0x6   :  { %338 = vmatpush.bf16.msra.mxu0 %v1384_v1  ;;  %1580 = vmatpush.bf16.msra.mxu1 %v1384_v1  ;;  %v1362_v12 = vld [vmem:[%s3149_s0 + $0x80] sm:$0xff]  ;;  %v1363_v15 = vld [vmem:[%s3149_s0 + $0x88] sm:$0xff]  ;;  %v1357_v17 = vld [vmem:[%s3149_s0 + $0x58] sm:$0xff] }
   0x7   :  { %1581 = vmatpush.bf16.msra.mxu2 %v1384_v1  ;;  %1582 = vmatpush.bf16.msra.mxu3 %v1384_v1  ;;  %v1364_v18 = vld [vmem:[%s3149_s0 + $0x90] sm:$0xff]  ;;  %v1370_v19 = vld [vmem:[%s3149_s0 + $0xc0] sm:$0xff]  ;;  %v1365_v22 = vld [vmem:[%s3149_s0 + $0x98] sm:$0xff] }
   0x8   :  { %v1350_v20 = vld [vmem:[%s3149_s0 + $0x20] sm:$0xff]  ;;  %v1371_v23 = vld [vmem:[%s3149_s0 + $0xc8] sm:$0xff]  ;;  %v1372_v27 = vld [vmem:[%s3149_s0 + $0xd0] sm:$0xff] }
   0x9   :  { %v1358_v21 = vld [vmem:[%s3149_s0 + $0x60] sm:$0xff]  ;;  %v1351_v24 = vld [vmem:[%s3149_s0 + $0x28] sm:$0xff]  ;;  %v1352_v28 = vld [vmem:[%s3149_s0 + $0x30] sm:$0xff] }
   0xa   :  { %339 = vmatpush.bf16.msra.mxu0 %v1383_v2  ;;  %1583 = vmatpush.bf16.msra.mxu1 %v1383_v2  ;;  %v1359_v25 = vld [vmem:[%s3149_s0 + $0x68] sm:$0xff]  ;;  %v1366_v26 = vld [vmem:[%s3149_s0 + $0xa0] sm:$0xff]  ;;  %v1360_v29 = vld [vmem:[%s3149_s0 + $0x70] sm:$0xff] }
   0xb   :  { %1584 = vmatpush.bf16.msra.mxu2 %v1383_v2  ;;  %1585 = vmatpush.bf16.msra.mxu3 %v1383_v2  ;;  %v1367_v30 = vld [vmem:[%s3149_s0 + $0xa8] sm:$0xff]  ;;  %v1373_v31 = vld [vmem:[%s3149_s0 + $0xd8] sm:$0xff]  ;;  %v1368_v34 = vld [vmem:[%s3149_s0 + $0xb0] sm:$0xff] }
   0xc   :  { %v1353_v32 = vld [vmem:[%s3149_s0 + $0x38] sm:$0xff]  ;;  %v1374_v35 = vld [vmem:[%s3149_s0 + $0xe0] sm:$0xff]  ;;  %v1375_v39 = vld [vmem:[%s3149_s0 + $0xe8] sm:$0xff] }
   0xd   :  { %v1361_v33 = vld [vmem:[%s3149_s0 + $0x78] sm:$0xff]  ;;  %v1376_v43 = vld [vmem:[%s3149_s0 + $0xf0] sm:$0xff] }
   0xe   :  { %340 = vmatpush.bf16.msra.mxu0 %v1382_v3  ;;  %1586 = vmatpush.bf16.msra.mxu1 %v1382_v3  ;;  %v1369_v38 = vld [vmem:[%s3149_s0 + $0xb8] sm:$0xff] }
   0xf   :  { %1587 = vmatpush.bf16.msra.mxu2 %v1382_v3  ;;  %1588 = vmatpush.bf16.msra.mxu3 %v1382_v3  ;;  %v1377_v49 = vld [vmem:[%s3149_s0 + $0xf8] sm:$0xff] }
  0x12   :  { %341 = vmatpush.bf16.msra.mxu0 %v1381_v4  ;;  %1589 = vmatpush.bf16.msra.mxu1 %v1381_v4 }
  0x13   :  { %1590 = vmatpush.bf16.msra.mxu2 %v1381_v4  ;;  %1591 = vmatpush.bf16.msra.mxu3 %v1381_v4 }
  0x16   :  { %342 = vmatpush.bf16.msra.mxu0 %v1380_v5  ;;  %1592 = vmatpush.bf16.msra.mxu1 %v1380_v5 }
  0x17   :  { %1593 = vmatpush.bf16.msra.mxu2 %v1380_v5  ;;  %1594 = vmatpush.bf16.msra.mxu3 %v1380_v5 }
  0x1a   :  { %343 = vmatpush.bf16.msra.mxu0 %v1379_v6  ;;  %1595 = vmatpush.bf16.msra.mxu1 %v1379_v6 }
  0x1b   :  { %1596 = vmatpush.bf16.msra.mxu2 %v1379_v6  ;;  %1597 = vmatpush.bf16.msra.mxu3 %v1379_v6 }
  0x1e   :  { %344 = vmatpush.bf16.msra.mxu0 %v1378_v7  ;;  %1598 = vmatpush.bf16.msra.mxu1 %v1378_v7 }
  0x1f   :  { %1599 = vmatpush.bf16.msra.mxu2 %v1378_v7  ;;  %1600 = vmatpush.bf16.msra.mxu3 %v1378_v7 }
  0x21   :  { %345 = vmatmul.bf16.vlgmr.msra.gmra.mxu0 %v1346_v8  ;;  %385 = vmatmul.bf16.vlgmr.msra.gmra.mxu1 %v1354_v9 }
  0x22   :  { %425 = vmatmul.bf16.vlgmr.msra.gmra.mxu2 %v1362_v12  ;;  %465 = vmatmul.bf16.vlgmr.msra.gmra.mxu3 %v1370_v19 }
  0x31   :  { %350 = vmatmul.bf16.gmra.mxu0 %v1347_v10  ;;  %390 = vmatmul.bf16.gmra.mxu1 %v1355_v11 }
  0x32   :  { %430 = vmatmul.bf16.gmra.mxu2 %v1363_v15  ;;  %470 = vmatmul.bf16.gmra.mxu3 %v1371_v23 }
  0x41   :  { %355 = vmatmul.bf16.gmra.mxu0 %v1348_v13  ;;  %395 = vmatmul.bf16.gmra.mxu1 %v1356_v14 }
  0x42   :  { %435 = vmatmul.bf16.gmra.mxu2 %v1364_v18  ;;  %475 = vmatmul.bf16.gmra.mxu3 %v1372_v27 }
  0x51   :  { %360 = vmatmul.bf16.gmra.mxu0 %v1349_v16  ;;  %400 = vmatmul.bf16.gmra.mxu1 %v1357_v17 }
  0x52   :  { %440 = vmatmul.bf16.gmra.mxu2 %v1365_v22  ;;  %480 = vmatmul.bf16.gmra.mxu3 %v1373_v31 }
  0x61   :  { %365 = vmatmul.bf16.gmra.mxu0 %v1350_v20  ;;  %405 = vmatmul.bf16.gmra.mxu1 %v1358_v21 }
  0x62   :  { %445 = vmatmul.bf16.gmra.mxu2 %v1366_v26  ;;  %485 = vmatmul.bf16.gmra.mxu3 %v1374_v35 }
  0x71   :  { %370 = vmatmul.bf16.gmra.mxu0 %v1351_v24  ;;  %410 = vmatmul.bf16.gmra.mxu1 %v1359_v25 }
  0x72   :  { %450 = vmatmul.bf16.gmra.mxu2 %v1367_v30  ;;  %490 = vmatmul.bf16.gmra.mxu3 %v1375_v39 }
  0x81   :  { %375 = vmatmul.bf16.gmra.mxu0 %v1352_v28  ;;  %415 = vmatmul.bf16.gmra.mxu1 %v1360_v29 }
  0x82   :  { %455 = vmatmul.bf16.gmra.mxu2 %v1368_v34  ;;  %495 = vmatmul.bf16.gmra.mxu3 %v1376_v43 }
  0x91   :  { %380 = vmatmul.bf16.gmra.mxu0 %v1353_v32  ;;  %420 = vmatmul.bf16.gmra.mxu1 %v1361_v33 }
  0x92   :  { %460 = vmatmul.bf16.gmra.mxu2 %v1369_v38  ;;  %500 = vmatmul.bf16.gmra.mxu3 %v1377_v49 }
  0x9e   :  { %v1736_v36 = vpop.f32.mrf.mxu0  ;;  %v1738_v37 = vpop.f32.mrf.mxu1 }
  0x9f   :  { %v576_v9 = vmul.f32 %v1736_v36, %v1736_v36 }
  0xa5   :  { %v1763_v48 = vpop.f32.mrf.mxu2  ;;  %v1788_v60 = vpop.f32.mrf.mxu3 }
  0xa6   :  { %v1746_v40 = vpop.f32.mrf.mxu0  ;;  %v1748_v41 = vpop.f32.mrf.mxu1 }
  0xa7   :  { %v577_v7 = vmul.f32 %v1746_v40, %v1746_v40  ;;  %v506_v10 = vadd.f32 %v1746_v40, %v1736_v36 }
  0xa9   :  { %v640_v13 = vadd.f32 %v577_v7, %v576_v9 }
  0xad   :  { %v1772_v52 = vpop.f32.mrf.mxu2  ;;  %v1796_v0 = vpop.f32.mrf.mxu3 }
  0xae   :  { %v1750_v42 = vpop.f32.mrf.mxu0  ;;  %v1755_v44 = vpop.f32.mrf.mxu1 }
  0xaf   :  { %v578_v11 = vmul.f32 %v1750_v42, %v1750_v42  ;;  %v507_v14 = vadd.f32 %v506_v10, %v1750_v42 }
  0xb1   :  { %v641_v17 = vadd.f32 %v640_v13, %v578_v11 }
  0xb5   :  { %v1778_v55 = vpop.f32.mrf.mxu2  ;;  %v1804_v4 = vpop.f32.mrf.mxu3 }
  0xb6   :  { %v1757_v45 = vpop.f32.mrf.mxu0  ;;  %v1759_v46 = vpop.f32.mrf.mxu1 }
  0xb7   :  { %v579_v15 = vmul.f32 %v1757_v45, %v1757_v45  ;;  %v508_v18 = vadd.f32 %v507_v14, %v1757_v45 }
  0xb9   :  { %v642_v20 = vadd.f32 %v641_v17, %v579_v15 }
  0xbd   :  { %v1784_v58 = vpop.f32.mrf.mxu2  ;;  %v1820_v12 = vpop.f32.mrf.mxu3 }
  0xbe   :  { %v1761_v47 = vpop.f32.mrf.mxu0  ;;  %v1770_v51 = vpop.f32.mrf.mxu1  ;;  %3195 = vst [vmem:[#allocation2_spill] sm:$0xff] %v1784_v58 }
  0xbf   :  { %3199 = vst [vmem:[#allocation6_spill] sm:$0xff] %v1820_v12  ;;  %v580_v19 = vmul.f32 %v1761_v47, %v1761_v47  ;;  %v509_v21 = vadd.f32 %v508_v18, %v1761_v47 }
  0xc1   :  { %v643_v24 = vadd.f32 %v642_v20, %v580_v19 }
  0xc5   :  { %v1794_v63 = vpop.f32.mrf.mxu2  ;;  %v1845_v32 = vpop.f32.mrf.mxu3 }
  0xc6   :  { %v1768_v50 = vpop.f32.mrf.mxu0  ;;  %v1776_v54 = vpop.f32.mrf.mxu1  ;;  %3196 = vst [vmem:[#allocation3_spill] sm:$0xff] %v1794_v63 }
  0xc7   :  { %v581_v22 = vmul.f32 %v1768_v50, %v1768_v50  ;;  %v510_v25 = vadd.f32 %v509_v21, %v1768_v50 }
  0xc9   :  { %v644_v28 = vadd.f32 %v643_v24, %v581_v22 }
  0xcd   :  { %v1802_v3 = vpop.f32.mrf.mxu2  ;;  %v1868_v21 = vpop.f32.mrf.mxu3 }
  0xce   :  { %v1774_v53 = vpop.f32.mrf.mxu0  ;;  %v1782_v57 = vpop.f32.mrf.mxu1 }
  0xcf   :  { %v582_v26 = vmul.f32 %v1774_v53, %v1774_v53  ;;  %v511_v29 = vadd.f32 %v510_v25, %v1774_v53 }
  0xd1   :  { %v645_v33 = vadd.f32 %v644_v28, %v582_v26 }
  0xd5   :  { %v1812_v8 = vpop.f32.mrf.mxu2 }
  0xd6   :  { %v1780_v56 = vpop.f32.mrf.mxu0  ;;  %v1790_v61 = vpop.f32.mrf.mxu1 }
  0xd7   :  { %v583_v30 = vmul.f32 %v1780_v56, %v1780_v56  ;;  %v512_v34 = vadd.f32 %v511_v29, %v1780_v56 }
  0xd9   :  { %v646_v38 = vadd.f32 %v645_v33, %v583_v30 }
  0xdd   :  { %v1838_v27 = vpop.f32.mrf.mxu2 }
  0xde   :  { %v1786_v59 = vpop.f32.mrf.mxu0  ;;  %v1800_v2 = vpop.f32.mrf.mxu1 }
  0xdf   :  { %3197 = vst [vmem:[#allocation4_spill] sm:$0xff] %v1800_v2  ;;  %v584_v35 = vmul.f32 %v1786_v59, %v1786_v59  ;;  %v513_v39 = vadd.f32 %v512_v34, %v1786_v59 }
  0xe1   :  { %v647_v49 = vadd.f32 %v646_v38, %v584_v35 }
  0xe5   :  { %v1863_v17 = vpop.f32.mrf.mxu2 }
  0xe6   :  { %v1792_v62 = vpop.f32.mrf.mxu0  ;;  %v1808_v6 = vpop.f32.mrf.mxu1  ;;  %3201 = vst [vmem:[#allocation8_spill] sm:$0xff] %v1863_v17 }
  0xe7   :  { %3198 = vst [vmem:[#allocation5_spill] sm:$0xff] %v1808_v6  ;;  %v585_v43 = vmul.f32 %v1792_v62, %v1792_v62  ;;  %v514_v7 = vadd.f32 %v513_v39, %v1792_v62 }
  0xe9   :  { %v648_v11 = vadd.f32 %v647_v49, %v585_v43 }
  0xed   :  { %v1884_v49 = vpop.f32.mrf.mxu2 }
  0xee   :  { %v1798_v1 = vpop.f32.mrf.mxu0  ;;  %v1833_v23 = vpop.f32.mrf.mxu1  ;;  %3202 = vst [vmem:[#allocation9_spill] sm:$0xff] %v1884_v49 }
  0xef   :  { %3200 = vst [vmem:[#allocation7_spill] sm:$0xff] %v1833_v23  ;;  %v586_v9 = vmul.f32 %v1798_v1, %v1798_v1  ;;  %v515_v13 = vadd.f32 %v514_v7, %v1798_v1  ;;  %v592_v7 = vmul.f32 %v1738_v37, %v1738_v37 }
  0xf1   :  { %v649_v18 = vadd.f32 %v648_v11, %v586_v9 }
  0xf6   :  { %v1806_v5 = vpop.f32.mrf.mxu0  ;;  %v1856_v10 = vpop.f32.mrf.mxu1 }
  0xf7   :  { %v587_v14 = vmul.f32 %v1806_v5, %v1806_v5  ;;  %v516_v19 = vadd.f32 %v515_v13, %v1806_v5  ;;  %v1889_v13 = vpop.f32.mrf.mxu3 }
  0xf8   :  { %3203 = vst [vmem:[#allocation10_spill] sm:$0xff] %v1889_v13 }
  0xf9   :  { %v650_v22 = vadd.f32 %v649_v18, %v587_v14  ;;  %v593_v14 = vmul.f32 %v1748_v41, %v1748_v41 }
  0xfe   :  { %v1825_v16 = vpop.f32.mrf.mxu0  ;;  %v1879_v35 = vpop.f32.mrf.mxu1 }
  0xff   :  { %v588_v20 = vmul.f32 %v1825_v16, %v1825_v16  ;;  %v517_v24 = vadd.f32 %v516_v19, %v1825_v16 }
 0x101   :  { %v651_v26 = vadd.f32 %v650_v22, %v588_v20  ;;  %v594_v20 = vmul.f32 %v1755_v44, %v1755_v44 }
 0x106   :  { %v1843_v31 = vpop.f32.mrf.mxu0 }
 0x107   :  { %v589_v25 = vmul.f32 %v1843_v31, %v1843_v31  ;;  %v518_v28 = vadd.f32 %v517_v24, %v1843_v31 }
 0x109   :  { %v652_v30 = vadd.f32 %v651_v26, %v589_v25  ;;  %v595_v25 = vmul.f32 %v1759_v46, %v1759_v46 }
 0x10e   :  { %v1861_v15 = vpop.f32.mrf.mxu0 }
 0x10f   :  { %v590_v29 = vmul.f32 %v1861_v15, %v1861_v15  ;;  %v519_v33 = vadd.f32 %v518_v28, %v1861_v15 }
 0x111   :  { %v653_v38 = vadd.f32 %v652_v30, %v590_v29  ;;  %v1900_v29 = vpop.f32.mrf.mxu1  ;;  %v596_v30 = vmul.f32 %v1770_v51, %v1770_v51 }
 0x112   :  { %3204 = vst [vmem:[#allocation11_spill] sm:$0xff] %v1900_v29 }
 0x116   :  { %v1877_v34 = vpop.f32.mrf.mxu0 }
 0x117   :  { %v520_v39 = vadd.f32 %v519_v33, %v1877_v34  ;;  %v591_v43 = vmul.f32 %v1877_v34, %v1877_v34 }
 0x119   :  { %v521_v9 = vadd.f32 %v520_v39, %v1738_v37  ;;  %v654_v11 = vadd.f32 %v653_v38, %v591_v43  ;;  %v1905_v39 = vpop.f32.mrf.mxu2  ;;  %v597_v43 = vmul.f32 %v1776_v54, %v1776_v54 }
 0x11b   :  { %v522_v18 = vadd.f32 %v521_v9, %v1748_v41  ;;  %v655_v19 = vadd.f32 %v654_v11, %v592_v7  ;;  %v1910_v11 = vpop.f32.mrf.mxu3 }
 0x11c   :  { %3205 = vst [vmem:[#allocation12_spill] sm:$0xff] %v1910_v11 }
 0x11d   :  { %v523_v22 = vadd.f32 %v522_v18, %v1755_v44  ;;  %v656_v24 = vadd.f32 %v655_v19, %v593_v14  ;;  %v598_v14 = vmul.f32 %v1782_v57, %v1782_v57 }
 0x11f   :  { %v524_v26 = vadd.f32 %v523_v22, %v1759_v46  ;;  %v657_v28 = vadd.f32 %v656_v24, %v594_v20  ;;  %v599_v20 = vmul.f32 %v1790_v61, %v1790_v61 }
 0x121   :  { %v525_v33 = vadd.f32 %v524_v26, %v1770_v51  ;;  %v658_v38 = vadd.f32 %v657_v28, %v595_v25  ;;  %v600_v25 = vmul.f32 %v1800_v2, %v1800_v2 }
 0x123   :  { %v526_v7 = vadd.f32 %v525_v33, %v1776_v54  ;;  %v659_v9 = vadd.f32 %v658_v38, %v596_v30  ;;  %v1921_v30 = vpop.f32.mrf.mxu1  ;;  %v601_v33 = vmul.f32 %v1808_v6, %v1808_v6 }
 0x124   :  { %3206 = vst [vmem:[#allocation13_spill] sm:$0xff] %v1921_v30 }
 0x125   :  { %v660_v18 = vadd.f32 %v659_v9, %v597_v43  ;;  %v527_v19 = vadd.f32 %v526_v7, %v1782_v57  ;;  %v1926_v7 = vpop.f32.mrf.mxu2  ;;  %v602_v9 = vmul.f32 %v1833_v23, %v1833_v23 }
 0x127   :  { %v528_v22 = vadd.f32 %v527_v19, %v1790_v61  ;;  %v661_v24 = vadd.f32 %v660_v18, %v598_v14  ;;  %v1931_v19 = vpop.f32.mrf.mxu3 }
 0x128   :  { %3207 = vst [vmem:[#allocation14_spill] sm:$0xff] %v1931_v19 }
 0x129   :  { %v529_v26 = vadd.f32 %v528_v22, %v1800_v2  ;;  %v662_v28 = vadd.f32 %v661_v24, %v599_v20  ;;  %v603_v20 = vmul.f32 %v1856_v10, %v1856_v10 }
 0x12b   :  { %v530_v38 = vadd.f32 %v529_v26, %v1808_v6  ;;  %v663_v43 = vadd.f32 %v662_v28, %v600_v25  ;;  %v604_v25 = vmul.f32 %v1879_v35, %v1879_v35 }
 0x12d   :  { %v531_v14 = vadd.f32 %v530_v38, %v1833_v23  ;;  %v664_v18 = vadd.f32 %v663_v43, %v601_v33  ;;  %v605_v33 = vmul.f32 %v1900_v29, %v1900_v29  ;;  %v1942_v38 = vpop.f32.mrf.mxu1 }
 0x12e   :  { %3208 = vst [vmem:[#allocation15_spill] sm:$0xff] %v1942_v38 }
 0x12f   :  { %v532_v22 = vadd.f32 %v531_v14, %v1856_v10  ;;  %v665_v24 = vadd.f32 %v664_v18, %v602_v9  ;;  %v606_v9 = vmul.f32 %v1921_v30, %v1921_v30  ;;  %v1947_v14 = vpop.f32.mrf.mxu2 }
 0x131   :  { %v533_v2 = vadd.f32 %v532_v22, %v1879_v35  ;;  %v666_v26 = vadd.f32 %v665_v24, %v603_v20  ;;  %v607_v20 = vmul.f32 %v1942_v38, %v1942_v38  ;;  %v608_v24 = vmul.f32 %v1763_v48, %v1763_v48 }
 0x133   :  { %v667_v28 = vadd.f32 %v666_v26, %v604_v25  ;;  %v534_v6 = vadd.f32 %v533_v2, %v1900_v29  ;;  %v1952_v2 = vpop.f32.mrf.mxu3 }
 0x134   :  { %3209 = vst [vmem:[#allocation16_spill] sm:$0xff] %v1952_v2 }
 0x135   :  { %v668_v43 = vadd.f32 %v667_v28, %v605_v33  ;;  %v535_v23 = vadd.f32 %v534_v6, %v1921_v30  ;;  %v609_v6 = vmul.f32 %v1772_v52, %v1772_v52 }
 0x137   :  { %v669_v18 = vadd.f32 %v668_v43, %v606_v9  ;;  %v536_v22 = vadd.f32 %v535_v23, %v1942_v38  ;;  %v610_v23 = vmul.f32 %v1778_v55, %v1778_v55  ;;  %v611_v38 = vmul.f32 %v1784_v58, %v1784_v58 }
 0x139   :  { %v537_v25 = vadd.f32 %v536_v22, %v1763_v48  ;;  %v670_v26 = vadd.f32 %v669_v18, %v607_v20  ;;  %v1966_v22 = vpop.f32.mrf.mxu2  ;;  %v612_v18 = vmul.f32 %v1794_v63, %v1794_v63 }
 0x13b   :  { %v538_v28 = vadd.f32 %v537_v25, %v1772_v52  ;;  %v671_v33 = vadd.f32 %v670_v26, %v608_v24  ;;  %v1971_v25 = vpop.f32.mrf.mxu3  ;;  %v613_v26 = vmul.f32 %v1802_v3, %v1802_v3 }
 0x13c   :  { %3210 = vst [vmem:[#allocation17_spill] sm:$0xff] %v1971_v25 }
 0x13d   :  { %v539_v43 = vadd.f32 %v538_v28, %v1778_v55  ;;  %v672_v9 = vadd.f32 %v671_v33, %v609_v6  ;;  %v614_v33 = vmul.f32 %v1812_v8, %v1812_v8 }
 0x13f   :  { %v540_v30 = vadd.f32 %v539_v43, %v1784_v58  ;;  %v673_v29 = vadd.f32 %v672_v9, %v610_v23  ;;  %v615_v9 = vmul.f32 %v1838_v27, %v1838_v27 }
 0x141   :  { %v541_v20 = vadd.f32 %v540_v30, %v1794_v63  ;;  %v674_v24 = vadd.f32 %v673_v29, %v611_v38  ;;  %v616_v38 = vmul.f32 %v1863_v17, %v1863_v17 }
 0x143   :  { %v542_v6 = vadd.f32 %v541_v20, %v1802_v3  ;;  %v675_v28 = vadd.f32 %v674_v24, %v612_v18  ;;  %v1985_v20 = vpop.f32.mrf.mxu2  ;;  %v617_v18 = vmul.f32 %v1884_v49, %v1884_v49 }
 0x144   :  { %3211 = vst [vmem:[#allocation18_spill] sm:$0xff] %v1985_v20 }
 0x145   :  { %v676_v23 = vadd.f32 %v675_v28, %v613_v26  ;;  %v543_v43 = vadd.f32 %v542_v6, %v1812_v8  ;;  %v1990_v6 = vpop.f32.mrf.mxu3  ;;  %v618_v28 = vmul.f32 %v1905_v39, %v1905_v39 }
 0x146   :  { %3212 = vst [vmem:[#allocation19_spill] sm:$0xff] %v1990_v6 }
 0x147   :  { %v544_v30 = vadd.f32 %v543_v43, %v1838_v27  ;;  %v677_v29 = vadd.f32 %v676_v23, %v614_v33 }
 0x149   :  { %v545_v63 = vadd.f32 %v544_v30, %v1863_v17  ;;  %v678_v58 = vadd.f32 %v677_v29, %v615_v9  ;;  %v619_v9 = vmul.f32 %v1926_v7, %v1926_v7 }
 0x14b   :  { %v546_v24 = vadd.f32 %v545_v63, %v1884_v49  ;;  %v679_v26 = vadd.f32 %v678_v58, %v616_v38  ;;  %v620_v58 = vmul.f32 %v1947_v14, %v1947_v14  ;;  %v621_v49 = vmul.f32 %v1966_v22, %v1966_v22 }
 0x14d   :  { %v547_v33 = vadd.f32 %v546_v24, %v1905_v39  ;;  %v680_v23 = vadd.f32 %v679_v26, %v617_v18  ;;  %v2004_v24 = vpop.f32.mrf.mxu2 }
 0x14e   :  { %3213 = vst [vmem:[#allocation20_spill] sm:$0xff] %v2004_v24 }
 0x14f   :  { %v548_v43 = vadd.f32 %v547_v33, %v1926_v7  ;;  %v681_v30 = vadd.f32 %v680_v23, %v618_v28  ;;  %v622_v28 = vmul.f32 %v1985_v20, %v1985_v20  ;;  %v2009_v33 = vpop.f32.mrf.mxu3 }
 0x150   :  { %3214 = vst [vmem:[#allocation21_spill] sm:$0xff] %v2009_v33 }
 0x151   :  { %v682_v29 = vadd.f32 %v681_v30, %v619_v9  ;;  %v549_v17 = vadd.f32 %v548_v43, %v1947_v14  ;;  %v623_v9 = vmul.f32 %v2004_v24, %v2004_v24 }
 0x153   :  { %v683_v63 = vadd.f32 %v682_v29, %v620_v58  ;;  %v550_v38 = vadd.f32 %v549_v17, %v1966_v22  ;;  %v624_v17 = vmul.f32 %v1788_v60, %v1788_v60 }
 0x155   :  { %v684_v18 = vadd.f32 %v683_v63, %v621_v49  ;;  %v551_v26 = vadd.f32 %v550_v38, %v1985_v20  ;;  %v625_v49 = vmul.f32 %v1796_v0, %v1796_v0  ;;  %v626_v38 = vmul.f32 %v1804_v4, %v1804_v4 }
 0x157   :  { %v685_v23 = vadd.f32 %v684_v18, %v622_v28  ;;  %v552_v43 = vadd.f32 %v551_v26, %v2004_v24  ;;  %v627_v28 = vmul.f32 %v1820_v12, %v1820_v12 }
 0x159   :  { %v553_v30 = vadd.f32 %v552_v43, %v1788_v60  ;;  %v686_v29 = vadd.f32 %v685_v23, %v623_v9  ;;  %v2026_v43 = vpop.f32.mrf.mxu3  ;;  %v628_v23 = vmul.f32 %v1845_v32, %v1845_v32 }
 0x15a   :  { %3215 = vst [vmem:[#allocation22_spill] sm:$0xff] %v2026_v43 }
 0x15b   :  { %v554_v58 = vadd.f32 %v553_v30, %v1796_v0  ;;  %v687_v63 = vadd.f32 %v686_v29, %v624_v17  ;;  %v629_v30 = vmul.f32 %v1868_v21, %v1868_v21 }
 0x15d   :  { %v555_v18 = vadd.f32 %v554_v58, %v1804_v4  ;;  %v688_v26 = vadd.f32 %v687_v63, %v625_v49  ;;  %v630_v58 = vmul.f32 %v1889_v13, %v1889_v13 }
 0x15f   :  { %v556_v24 = vadd.f32 %v555_v18, %v1820_v12  ;;  %v689_v20 = vadd.f32 %v688_v26, %v626_v38  ;;  %v631_v18 = vmul.f32 %v1910_v11, %v1910_v11 }
 0x161   :  { %v557_v9 = vadd.f32 %v556_v24, %v1845_v32  ;;  %v690_v17 = vadd.f32 %v689_v20, %v627_v28  ;;  %v632_v20 = vmul.f32 %v1931_v19, %v1931_v19 }
 0x163   :  { %v558_v29 = vadd.f32 %v557_v9, %v1868_v21  ;;  %v691_v49 = vadd.f32 %v690_v17, %v628_v23  ;;  %v2043_v9 = vpop.f32.mrf.mxu3  ;;  %v633_v23 = vmul.f32 %v1952_v2, %v1952_v2 }
 0x164   :  { %3216 = vst [vmem:[#allocation23_spill] sm:$0xff] %v2043_v9 }
 0x165   :  { %v692_v63 = vadd.f32 %v691_v49, %v629_v30  ;;  %v559_v38 = vadd.f32 %v558_v29, %v1889_v13  ;;  %v634_v29 = vmul.f32 %v1971_v25, %v1971_v25 }
 0x167   :  { %v560_v26 = vadd.f32 %v559_v38, %v1910_v11  ;;  %v693_v12 = vadd.f32 %v692_v63, %v630_v58  ;;  %v635_v38 = vmul.f32 %v1990_v6, %v1990_v6 }
 0x169   :  { %v561_v24 = vadd.f32 %v560_v26, %v1931_v19  ;;  %v694_v28 = vadd.f32 %v693_v12, %v631_v18  ;;  %v636_v19 = vmul.f32 %v2009_v33, %v2009_v33 }
 0x16b   :  { %v562_v17 = vadd.f32 %v561_v24, %v1952_v2  ;;  %v695_v30 = vadd.f32 %v694_v28, %v632_v20  ;;  %v637_v28 = vmul.f32 %v2026_v43, %v2026_v43 }
 0x16d   :  { %v563_v49 = vadd.f32 %v562_v17, %v1971_v25  ;;  %v696_v58 = vadd.f32 %v695_v30, %v633_v23  ;;  %v2060_v17 = vpop.f32.mrf.mxu3 }
 0x16e   :  { %3217 = vst [vmem:[#allocation24_spill] sm:$0xff] %v2060_v17 }
 0x16f   :  { %v564_v63 = vadd.f32 %v563_v49, %v1990_v6  ;;  %v697_v12 = vadd.f32 %v696_v58, %v634_v29  ;;  %v638_v29 = vmul.f32 %v2043_v9, %v2043_v9 }
 0x171   :  { %v698_v18 = vadd.f32 %v697_v12, %v635_v38  ;;  %v565_v26 = vadd.f32 %v564_v63, %v2009_v33  ;;  %v639_v63 = vmul.f32 %v2060_v17, %v2060_v17 }
 0x173   :  { %v699_v24 = vadd.f32 %v698_v18, %v636_v19  ;;  %v566_v20 = vadd.f32 %v565_v26, %v2026_v43 }
 0x175   :  { %v700_v23 = vadd.f32 %v699_v24, %v637_v28  ;;  %v567_v30 = vadd.f32 %v566_v20, %v2043_v9 }
 0x177   :  { %v701_v49 = vadd.f32 %v700_v23, %v638_v29  ;;  %v568_v58 = vadd.f32 %v567_v30, %v2060_v17 }
 0x179   :  { %v569_v19 = vrot.slane %v568_v58, 4  ;;  %v702_v38 = vadd.f32 %v701_v49, %v639_v63 }
 0x17b   :  { %v570_v12 = vadd.f32 %v569_v19, %v568_v58  ;;  %v703_v18 = vrot.slane %v702_v38, 4 }
 0x17d   :  { %v571_v26 = vrot.slane %v570_v12, 2  ;;  %v704_v43 = vadd.f32 %v703_v18, %v702_v38  ;;  %v725_v38 = vld [vmem:[%s3151_s3] sm:$0x1] }
 0x17f   :  { %v572_v33 = vadd.f32 %v571_v26, %v570_v12  ;;  %v705_v6 = vrot.slane %v704_v43, 2  ;;  %v3218_v26 = vld [vmem:[#allocation4_spill] sm:$0xff] }
 0x181   :  { %v573_v24 = vrot.slane %v572_v33, 1  ;;  %v706_v28 = vadd.f32 %v705_v6, %v704_v43  ;;  %v712_v6 = vld [vmem:[%s3150_s2] sm:$0x1] }
 0x183   :  { %v574_v20 = vadd.f32 %v573_v24, %v572_v33  ;;  %v707_v25 = vrot.slane %v706_v28, 1  ;;  %v3219_v24 = vld [vmem:[#allocation5_spill] sm:$0xff] }
 0x185   :  { %v575_v2 = vmul.f32 0.001953125, %v574_v20  ;;  %v708_v9 = vadd.f32 %v707_v25, %v706_v28  ;;  %v3220_v28 = vld [vmem:[#allocation7_spill] sm:$0xff] }
 0x186   :  { %v3221_v20 = vld [vmem:[#allocation11_spill] sm:$0xff] }
 0x187   :  { %v709_v23 = vmul.f32 0.001953125, %v708_v9  ;;  %v710_v29 = vmul.f32 %v575_v2, %v575_v2 }
 0x189   :  { %v711_v30 = vsub.f32 %v709_v23, %v710_v29  ;;  %v3222_v29 = vld [vmem:[#allocation13_spill] sm:$0xff] }
 0x18b   :  { %v713_v11 = vadd.f32 1e-05, %v711_v30 }
 0x18d   :  { %1601 = vrsqrt.f32 %v713_v11  ;;  %vm720_vm1 = vweird.f32 %v713_v11 }
 0x193   :  { %v1602_v17 = vpop.eup %1601 }
 0x194   :  { %v715_v13 = vmul.f32 %v1602_v17, %v713_v11  ;;  %vm721_vm0 = vweird.f32 %v1602_v17 }
 0x195   :  { %vm722_vm2 = vmor %vm720_vm1, %vm721_vm0 }
 0x196   :  { %v716_v49 = vmul.f32 %v1602_v17, %v715_v13 }
 0x198   :  { %v717_v58 = vmul.f32 0.5, %v716_v49  ;;  %v3223_v49 = vld [vmem:[#allocation15_spill] sm:$0xff] }
 0x19a   :  { %v718_v63 = vsub.f32 1.5, %v717_v58 }
 0x19c   :  { %v719_v19 = vmul.f32 %v1602_v17, %v718_v63 }
 0x19e   :  { %v723_v33 = vsel %vm722_vm2, %v1602_v17, %v719_v19  ;;  %v3224_v19 = vld [vmem:[#allocation2_spill] sm:$0xff] }
 0x19f   :  { %v724_v25 = vmul.f32 %v723_v33, %v712_v6  ;;  %v3225_v33 = vld [vmem:[#allocation3_spill] sm:$0xff] }
 0x1a1   :  { %v726_v43 = vmul.f32 %v724_v25, %v575_v2  ;;  %v2071_v9 = vperm.slane %v724_v25, 0 }
 0x1a3   :  { %v727_v13 = vsub.f32 %v725_v38, %v726_v43  ;;  %v2078_v12 = vmul.f32 %v2071_v9, %v1736_v36  ;;  %v2082_v11 = vmul.f32 %v2071_v9, %v1746_v40  ;;  %v2086_v17 = vmul.f32 %v2071_v9, %v1750_v42  ;;  %v3226_v43 = vld [vmem:[#allocation8_spill] sm:$0xff] }
 0x1a4   :  { %v2090_v2 = vmul.f32 %v2071_v9, %v1757_v45  ;;  %v2094_v18 = vmul.f32 %v2071_v9, %v1761_v47  ;;  %v2098_v36 = vmul.f32 %v2071_v9, %v1768_v50  ;;  %v2102_v40 = vmul.f32 %v2071_v9, %v1774_v53 }
 0x1a5   :  { %v2106_v42 = vmul.f32 %v2071_v9, %v1780_v56  ;;  %v2110_v45 = vmul.f32 %v2071_v9, %v1786_v59  ;;  %v2114_v47 = vmul.f32 %v2071_v9, %v1792_v62  ;;  %v2118_v50 = vmul.f32 %v2071_v9, %v1798_v1 }
 0x1a6   :  { %v2122_v53 = vmul.f32 %v2071_v9, %v1806_v5  ;;  %v2126_v56 = vmul.f32 %v2071_v9, %v1825_v16  ;;  %v2130_v59 = vmul.f32 %v2071_v9, %v1843_v31  ;;  %v2134_v62 = vmul.f32 %v2071_v9, %v1861_v15 }
 0x1a7   :  { %v2138_v1 = vmul.f32 %v2071_v9, %v1877_v34  ;;  %v2142_v5 = vmul.f32 %v2071_v9, %v1738_v37  ;;  %v2146_v16 = vmul.f32 %v2071_v9, %v1748_v41  ;;  %v2150_v31 = vmul.f32 %v2071_v9, %v1755_v44 }
 0x1a8   :  { %v2154_v15 = vmul.f32 %v2071_v9, %v1759_v46  ;;  %v2158_v34 = vmul.f32 %v2071_v9, %v1770_v51  ;;  %v2162_v37 = vmul.f32 %v2071_v9, %v1776_v54  ;;  %v2166_v41 = vmul.f32 %v2071_v9, %v1782_v57 }
 0x1a9   :  { %v2170_v44 = vmul.f32 %v2071_v9, %v1790_v61  ;;  %v2174_v46 = vmul.f32 %v2071_v9, %v3218_v26  ;;  %v2178_v51 = vmul.f32 %v2071_v9, %v3219_v24  ;;  %v2182_v54 = vmul.f32 %v2071_v9, %v3220_v28  ;;  %v3227_v26 = vld [vmem:[#allocation9_spill] sm:$0xff] }
 0x1aa   :  { %v2186_v57 = vmul.f32 %v2071_v9, %v1856_v10  ;;  %v2190_v61 = vmul.f32 %v2071_v9, %v1879_v35  ;;  %v2194_v23 = vmul.f32 %v2071_v9, %v3221_v20  ;;  %v2198_v30 = vmul.f32 %v2071_v9, %v3222_v29  ;;  %v3228_v20 = vld [vmem:[#allocation18_spill] sm:$0xff] }
 0x1ab   :  { %v2202_v58 = vmul.f32 %v2071_v9, %v3223_v49  ;;  %v2206_v10 = vmul.f32 %v2071_v9, %v1763_v48  ;;  %v2210_v35 = vmul.f32 %v2071_v9, %v1772_v52  ;;  %v2214_v63 = vmul.f32 %v2071_v9, %v1778_v55  ;;  %v3229_v49 = vld [vmem:[#allocation20_spill] sm:$0xff] }
 0x1ac   :  { %v2218_v6 = vmul.f32 %v2071_v9, %v3224_v19  ;;  %v2222_v25 = vmul.f32 %v2071_v9, %v3225_v33  ;;  %v2226_v48 = vmul.f32 %v2071_v9, %v1802_v3  ;;  %v2230_v52 = vmul.f32 %v2071_v9, %v1812_v8  ;;  %v3230_v33 = vld [vmem:[#allocation6_spill] sm:$0xff] }
 0x1ad   :  { %v2234_v55 = vmul.f32 %v2071_v9, %v1838_v27  ;;  %v2238_v38 = vmul.f32 %v2071_v9, %v3226_v43  ;;  %v2242_v24 = vmul.f32 %v2071_v9, %v3227_v26  ;;  %v2246_v3 = vmul.f32 %v2071_v9, %v1905_v39 }
 0x1ae   :  { %v2250_v8 = vmul.f32 %v2071_v9, %v1926_v7  ;;  %v2254_v27 = vmul.f32 %v2071_v9, %v1947_v14  ;;  %v2258_v28 = vmul.f32 %v2071_v9, %v1966_v22  ;;  %v2262_v29 = vmul.f32 %v2071_v9, %v3228_v20  ;;  %v3236_v20 = vld [vmem:[#allocation12_spill] sm:$0xff] }
 0x1af   :  { %v2266_v39 = vmul.f32 %v2071_v9, %v3229_v49  ;;  %v2270_v7 = vmul.f32 %v2071_v9, %v1788_v60  ;;  %v2274_v14 = vmul.f32 %v2071_v9, %v1796_v0  ;;  %v2276_v19 = vperm.slane %v727_v13, 0  ;;  %v3234_v0 = vld [vmem:[#allocation10_spill] sm:$0xff] }
 0x1b0   :  { %v2280_v22 = vmul.f32 %v2071_v9, %v1804_v4  ;;  %v2284_v43 = vmul.f32 %v2071_v9, %v3230_v33  ;;  %v2288_v26 = vmul.f32 %v2071_v9, %v1845_v32  ;;  %v2292_v60 = vmul.f32 %v2071_v9, %v1868_v21  ;;  %v3238_v49 = vld [vmem:[#allocation14_spill] sm:$0xff] }
 0x1b1   :  { %v2296_v13 = vmul.f32 %v2071_v9, %v3234_v0  ;;  %v2300_v4 = vmul.f32 %v2071_v9, %v3236_v20  ;;  %v2304_v33 = vmul.f32 %v2071_v9, %v3238_v49 }
 0x1b2   :  { %3231 = vst [vmem:[#allocation4_spill] sm:$0xff] %v2284_v43  ;;  %v3240_v43 = vld [vmem:[#allocation16_spill] sm:$0xff] }
 0x1b3   :  { %3232 = vst [vmem:[#allocation5_spill] sm:$0xff] %v2288_v26  ;;  %v2308_v32 = vmul.f32 %v2071_v9, %v3240_v43  ;;  %v3242_v26 = vld [vmem:[#allocation17_spill] sm:$0xff] }
 0x1b4   :  { %3233 = vst [vmem:[#allocation7_spill] sm:$0xff] %v2292_v60  ;;  %v2312_v21 = vmul.f32 %v2071_v9, %v3242_v26  ;;  %v3243_v60 = vld [vmem:[#allocation19_spill] sm:$0xff] }
 0x1b5   :  { %3235 = vst [vmem:[#allocation11_spill] sm:$0xff] %v2296_v13  ;;  %v2316_v0 = vmul.f32 %v2071_v9, %v3243_v60  ;;  %v3244_v13 = vld [vmem:[#allocation21_spill] sm:$0xff]  ;;  %v2336_v60 = vadd.f32 %v2276_v19, %v2078_v12  ;;  %v2356_v12 = vadd.f32 %v2276_v19, %v2098_v36  ;;  %v2376_v36 = vadd.f32 %v2276_v19, %v2118_v50 }
 0x1b6   :  { %3237 = vst [vmem:[#allocation13_spill] sm:$0xff] %v2300_v4  ;;  %v2320_v20 = vmul.f32 %v2071_v9, %v3244_v13  ;;  %v3245_v4 = vld [vmem:[#allocation22_spill] sm:$0xff]  ;;  %v2340_v13 = vadd.f32 %v2276_v19, %v2082_v11  ;;  %v2360_v11 = vadd.f32 %v2276_v19, %v2102_v40  ;;  %v2380_v40 = vadd.f32 %v2276_v19, %v2122_v53 }
 0x1b7   :  { %3239 = vst [vmem:[#allocation15_spill] sm:$0xff] %v2304_v33  ;;  %v2324_v49 = vmul.f32 %v2071_v9, %v3245_v4  ;;  %v3246_v33 = vld [vmem:[#allocation23_spill] sm:$0xff]  ;;  %v2344_v4 = vadd.f32 %v2276_v19, %v2086_v17  ;;  %v2364_v17 = vadd.f32 %v2276_v19, %v2106_v42  ;;  %v2384_v42 = vadd.f32 %v2276_v19, %v2126_v56 }
 0x1b8   :  { %3241 = vst [vmem:[#allocation2_spill] sm:$0xff] %v2308_v32  ;;  %v2328_v43 = vmul.f32 %v2071_v9, %v3246_v33  ;;  %v3247_v32 = vld [vmem:[#allocation24_spill] sm:$0xff]  ;;  %v2348_v33 = vadd.f32 %v2276_v19, %v2090_v2  ;;  %v2368_v2 = vadd.f32 %v2276_v19, %v2110_v45  ;;  %v2388_v45 = vadd.f32 %v2276_v19, %v2130_v59 }
 0x1b9   :  { %v2332_v26 = vmul.f32 %v2071_v9, %v3247_v32  ;;  %v2352_v9 = vadd.f32 %v2276_v19, %v2094_v18  ;;  %v2372_v18 = vadd.f32 %v2276_v19, %v2114_v47  ;;  %v2392_v47 = vadd.f32 %v2276_v19, %v2134_v62  ;;  %v3254_v32 = vld [vmem:[#allocation4_spill] sm:$0xff] }
 0x1ba   :  { %v2396_v50 = vadd.f32 %v2276_v19, %v2138_v1  ;;  %v2400_v53 = vadd.f32 %v2276_v19, %v2142_v5  ;;  %v2404_v56 = vadd.f32 %v2276_v19, %v2146_v16  ;;  %v2408_v59 = vadd.f32 %v2276_v19, %v2150_v31 }
 0x1bb   :  { %v2412_v62 = vadd.f32 %v2276_v19, %v2154_v15  ;;  %v2416_v1 = vadd.f32 %v2276_v19, %v2158_v34  ;;  %v2420_v5 = vadd.f32 %v2276_v19, %v2162_v37  ;;  %v2424_v16 = vadd.f32 %v2276_v19, %v2166_v41 }
 0x1bc   :  { %v2428_v31 = vadd.f32 %v2276_v19, %v2170_v44  ;;  %v2432_v15 = vadd.f32 %v2276_v19, %v2174_v46  ;;  %v2436_v34 = vadd.f32 %v2276_v19, %v2178_v51  ;;  %v2440_v37 = vadd.f32 %v2276_v19, %v2182_v54 }
 0x1bd   :  { %v2444_v41 = vadd.f32 %v2276_v19, %v2186_v57  ;;  %v2448_v44 = vadd.f32 %v2276_v19, %v2190_v61  ;;  %v2452_v46 = vadd.f32 %v2276_v19, %v2194_v23  ;;  %v2456_v51 = vadd.f32 %v2276_v19, %v2198_v30 }
 0x1be   :  { %v2460_v54 = vadd.f32 %v2276_v19, %v2202_v58  ;;  %v2464_v57 = vadd.f32 %v2276_v19, %v2206_v10  ;;  %v2468_v61 = vadd.f32 %v2276_v19, %v2210_v35  ;;  %v2472_v23 = vadd.f32 %v2276_v19, %v2214_v63 }
 0x1bf   :  { %v2476_v30 = vadd.f32 %v2276_v19, %v2218_v6  ;;  %v2480_v58 = vadd.f32 %v2276_v19, %v2222_v25  ;;  %v2484_v10 = vadd.f32 %v2276_v19, %v2226_v48  ;;  %v2488_v35 = vadd.f32 %v2276_v19, %v2230_v52 }
 0x1c0   :  { %v2492_v63 = vadd.f32 %v2276_v19, %v2234_v55  ;;  %v2496_v6 = vadd.f32 %v2276_v19, %v2238_v38  ;;  %v2500_v25 = vadd.f32 %v2276_v19, %v2242_v24  ;;  %v2504_v48 = vadd.f32 %v2276_v19, %v2246_v3 }
 0x1c1   :  { %v2508_v52 = vadd.f32 %v2276_v19, %v2250_v8  ;;  %v2512_v55 = vadd.f32 %v2276_v19, %v2254_v27  ;;  %v2516_v38 = vadd.f32 %v2276_v19, %v2258_v28  ;;  %v2520_v24 = vadd.f32 %v2276_v19, %v2262_v29 }
 0x1c2   :  { %v2524_v3 = vadd.f32 %v2276_v19, %v2266_v39  ;;  %v2528_v8 = vadd.f32 %v2276_v19, %v2270_v7  ;;  %v2532_v27 = vadd.f32 %v2276_v19, %v2274_v14  ;;  %v2536_v28 = vadd.f32 %v2276_v19, %v2280_v22 }
 0x1c3   :  { %3248 = vst [vmem:[#allocation3_spill] sm:$0xff] %v2516_v38  ;;  %v2540_v29 = vadd.f32 %v2276_v19, %v3254_v32  ;;  %vm862_vm3 = vcmp.gt.f32.partialorder %v2336_v60, 0.0  ;;  %vm863_vm4 = vcmp.gt.f32.partialorder %v2340_v13, 0.0  ;;  %vm864_vm5 = vcmp.gt.f32.partialorder %v2344_v4, 0.0 }
 0x1c4   :  { %3249 = vst [vmem:[#allocation8_spill] sm:$0xff] %v2520_v24  ;;  %v3256_v24 = vld [vmem:[#allocation5_spill] sm:$0xff]  ;;  %vm865_vm6 = vcmp.gt.f32.partialorder %v2348_v33, 0.0  ;;  %vm866_vm7 = vcmp.gt.f32.partialorder %v2352_v9, 0.0  ;;  %vm867_vm8 = vcmp.gt.f32.partialorder %v2356_v12, 0.0  ;;  %vm868_vm9 = vcmp.gt.f32.partialorder %v2360_v11, 0.0 }
 0x1c5   :  { %3250 = vst [vmem:[#allocation9_spill] sm:$0xff] %v2524_v3  ;;  %v2544_v39 = vadd.f32 %v2276_v19, %v3256_v24  ;;  %v3258_v3 = vld [vmem:[#allocation7_spill] sm:$0xff]  ;;  %vm869_vm10 = vcmp.gt.f32.partialorder %v2364_v17, 0.0  ;;  %vm870_vm11 = vcmp.gt.f32.partialorder %v2368_v2, 0.0  ;;  %vm871_vm12 = vcmp.gt.f32.partialorder %v2372_v18, 0.0 }
 0x1c6   :  { %3251 = vst [vmem:[#allocation18_spill] sm:$0xff] %v2528_v8  ;;  %v2548_v7 = vadd.f32 %v2276_v19, %v3258_v3  ;;  %v3260_v8 = vld [vmem:[#allocation11_spill] sm:$0xff]  ;;  %v2568_v3 = vadd.f32 %v2276_v19, %v2312_v21  ;;  %v926_v21 = vmul.f32 0.2, %v2336_v60  ;;  %vm872_vm13 = vcmp.gt.f32.partialorder %v2376_v36, 0.0 }
 0x1c7   :  { %3252 = vst [vmem:[#allocation20_spill] sm:$0xff] %v2532_v27  ;;  %v2552_v14 = vadd.f32 %v2276_v19, %v3260_v8  ;;  %v3262_v27 = vld [vmem:[#allocation13_spill] sm:$0xff]  ;;  %v2572_v8 = vadd.f32 %v2276_v19, %v2316_v0  ;;  %v927_v0 = vmul.f32 0.2, %v2340_v13  ;;  %vm873_vm14 = vcmp.gt.f32.partialorder %v2380_v40, 0.0 }
 0x1c8   :  { %3253 = vst [vmem:[#allocation6_spill] sm:$0xff] %v2536_v28  ;;  %v2556_v22 = vadd.f32 %v2276_v19, %v3262_v27  ;;  %v3264_v28 = vld [vmem:[#allocation15_spill] sm:$0xff]  ;;  %v2576_v27 = vadd.f32 %v2276_v19, %v2320_v20  ;;  %v928_v20 = vmul.f32 0.2, %v2344_v4  ;;  %vm874_vm15 = vcmp.gt.f32.partialorder %v2384_v42, 0.0 }
 0x1c9   :  { %3255 = vst [vmem:[#allocation10_spill] sm:$0xff] %v2540_v29  ;;  %v2560_v32 = vadd.f32 %v2276_v19, %v3264_v28  ;;  %v3266_v29 = vld [vmem:[#allocation2_spill] sm:$0xff]  ;;  %v2580_v28 = vadd.f32 %v2276_v19, %v2324_v49  ;;  %v2596_v49 = vadd.f32 %v2276_v19, %v2328_v43  ;;  %v934_v43 = vmul.f32 0.2, %v2368_v2 }
 0x1ca   :  { %3257 = vst [vmem:[#allocation12_spill] sm:$0xff] %v2544_v39  ;;  %v2564_v24 = vadd.f32 %v2276_v19, %v3266_v29  ;;  %v929_v29 = vmul.f32 0.2, %v2348_v33  ;;  %vm875_vm0 = vcmp.gt.f32.partialorder %v2388_v45, 0.0  ;;  %vm876_vm1 = vcmp.gt.f32.partialorder %v2392_v47, 0.0 }
 0x1cb   :  { %3259 = vst [vmem:[#allocation14_spill] sm:$0xff] %v2548_v7  ;;  %v2637_v7 = vsel %vm863_vm4, %v2340_v13, %v927_v0  ;;  %vm877_vm2 = vcmp.gt.f32.partialorder %v2396_v50, 0.0  ;;  %v2648_v39 = vmul.f32 0.2, %v2404_v56  ;;  %v2653_v38 = vsel %vm864_vm5, %v2344_v4, %v928_v20 }
 0x1cc   :  { %3261 = vst [vmem:[#allocation16_spill] sm:$0xff] %v2552_v14  ;;  %v2632_v14 = vmul.f32 0.2, %v2392_v47  ;;  %vm879_vm4 = vcmp.gt.f32.partialorder %v2404_v56, 0.0  ;;  %v2658_v13 = vmul.f32 0.2, %v2408_v59 }
 0x1cd   :  { %3263 = vst [vmem:[#allocation17_spill] sm:$0xff] %v2556_v22  ;;  %v2616_v22 = vmul.f32 0.2, %v2380_v40  ;;  %v2661_v0 = vmul.f32 0.2, %v2412_v62  ;;  %vm883_vm5 = vcmp.gt.f32.partialorder %v2420_v5, 0.0 }
 0x1ce   :  { %3265 = vst [vmem:[#allocation19_spill] sm:$0xff] %v2560_v32  ;;  %v2613_v32 = vmul.f32 0.2, %v2376_v36  ;;  %v2674_v4 = vmul.f32 0.2, %v2420_v5 }
 0x1cf   :  { %3267 = vst [vmem:[#allocation21_spill] sm:$0xff] %v2564_v24  ;;  %v933_v24 = vmul.f32 0.2, %v2364_v17  ;;  %v2677_v20 = vmul.f32 0.2, %v2424_v16 }
 0x1d0   :  { %3268 = vst [vmem:[#allocation22_spill] sm:$0xff] %v2568_v3  ;;  %v932_v3 = vmul.f32 0.2, %v2360_v11 }
 0x1d1   :  { %3269 = vst [vmem:[#allocation23_spill] sm:$0xff] %v2572_v8  ;;  %v2604_v8 = vadd.f32 %v2276_v19, %v2332_v26  ;;  %v2621_v19 = vsel %vm862_vm3, %v2336_v60, %v926_v21  ;;  %v2626_v26 = vmul.f32 0.2, %v2384_v42  ;;  %v2642_v60 = vmul.f32 0.2, %v2396_v50 }
 0x1d2   :  { %3270 = vst [vmem:[#allocation24_spill] sm:$0xff] %v2576_v27  ;;  %v931_v27 = vmul.f32 0.2, %v2356_v12  ;;  %v2645_v21 = vmul.f32 0.2, %v2400_v53  ;;  %vm881_vm3 = vcmp.gt.f32.partialorder %v2412_v62, 0.0 }
 0x1d3   :  { %3271 = vst [vmem:[#allocation4_spill] sm:$0xff] %v2580_v28  ;;  %v930_v28 = vmul.f32 0.2, %v2352_v9 }
 0x1d4   :  { %3272 = vst [vmem:[#allocation5_spill] sm:$0xff] %v2596_v49  ;;  %v935_v49 = vmul.f32 0.2, %v2372_v18 }
 0x1d5   :  { %3273 = vst [vmem:[#allocation7_spill] sm:$0xff] %v2604_v8  ;;  %v2629_v8 = vmul.f32 0.2, %v2388_v45 }
 0x1d6   :  { %3274 = vst [vmem:[#allocation11_spill] sm:$0xff] %v2645_v21  ;;  %v2664_v21 = vmul.f32 0.2, %v2416_v1 }
 0x1d7   :  { %3275 = vst [vmem:[#allocation13_spill] sm:$0xff] %v2648_v39  ;;  %v2669_v39 = vsel %vm865_vm6, %v2348_v33, %v929_v29  ;;  %v2690_v33 = vmul.f32 0.2, %v2432_v15  ;;  %v2693_v29 = vmul.f32 0.2, %v2436_v34  ;;  %vm895_vm6 = vcmp.gt.f32.partialorder %v2468_v61, 0.0 }
 0x1d8   :  { %3276 = vst [vmem:[#allocation15_spill] sm:$0xff] %v2661_v0  ;;  %v2680_v0 = vmul.f32 0.2, %v2428_v31 }
 0x1d9   :  { %3277 = vst [vmem:[#allocation2_spill] sm:$0xff] %v2664_v21  ;;  %v2685_v21 = vsel %vm866_vm7, %v2352_v9, %v930_v28  ;;  %v2706_v9 = vmul.f32 0.2, %v2444_v41  ;;  %v2709_v28 = vmul.f32 0.2, %v2448_v44  ;;  %vm890_vm7 = vcmp.gt.f32.partialorder %v2448_v44, 0.0 }
 0x1da   :  { %3278 = vst [vmem:[#allocation25_spill] sm:$0xff] %v2677_v20  ;;  %v2696_v20 = vmul.f32 0.2, %v2440_v37 }
 0x1db   :  { %3279 = vst [vmem:[#allocation26_spill] sm:$0xff] %v2680_v0  ;;  %v2701_v0 = vsel %vm867_vm8, %v2356_v12, %v931_v27  ;;  %vm886_vm8 = vcmp.gt.f32.partialorder %v2432_v15, 0.0  ;;  %v2722_v12 = vmul.f32 0.2, %v2456_v51  ;;  %v2725_v27 = vmul.f32 0.2, %v2460_v54 }
 0x1dc   :  { %3280 = vst [vmem:[#allocation27_spill] sm:$0xff] %v2693_v29  ;;  %v2712_v29 = vmul.f32 0.2, %v2452_v46 }
 0x1dd   :  { %3281 = vst [vmem:[#allocation28_spill] sm:$0xff] %v2696_v20  ;;  %v2717_v20 = vsel %vm868_vm9, %v2360_v11, %v932_v3  ;;  %vm888_vm9 = vcmp.gt.f32.partialorder %v2440_v37, 0.0  ;;  %v2736_v11 = vmul.f32 0.2, %v2468_v61  ;;  %v2739_v3 = vmul.f32 0.2, %v2472_v23 }
 0x1de   :  { %3282 = vst [vmem:[#allocation29_spill] sm:$0xff] %v2709_v28  ;;  %v2728_v28 = vmul.f32 0.2, %v2464_v57 }
 0x1df   :  { %3283 = vst [vmem:[#allocation30_spill] sm:$0xff] %v2712_v29  ;;  %v997_v29 = vsel %vm869_vm10, %v2364_v17, %v933_v24  ;;  %vm891_vm10 = vcmp.gt.f32.partialorder %v2452_v46, 0.0  ;;  %v2750_v17 = vmul.f32 0.2, %v2480_v58  ;;  %v2753_v24 = vmul.f32 0.2, %v2484_v10 }
 0x1e0   :  { %3284 = vst [vmem:[#allocation31_spill] sm:$0xff] %v2722_v12  ;;  %v2742_v12 = vmul.f32 0.2, %v2476_v30 }
 0x1e1   :  { %3285 = vst [vmem:[#allocation32_spill] sm:$0xff] %v2728_v28  ;;  %v998_v28 = vsel %vm870_vm11, %v2368_v2, %v934_v43  ;;  %vm893_vm11 = vcmp.gt.f32.partialorder %v2460_v54, 0.0  ;;  %v2764_v2 = vmul.f32 0.2, %v2492_v63  ;;  %v2767_v43 = vmul.f32 0.2, %v2496_v6 }
 0x1e2   :  { %3286 = vst [vmem:[#allocation33_spill] sm:$0xff] %v2736_v11  ;;  %v2756_v11 = vmul.f32 0.2, %v2488_v35 }
 0x1e3   :  { %3287 = vst [vmem:[#allocation34_spill] sm:$0xff] %v2742_v12  ;;  %v999_v12 = vsel %vm871_vm12, %v2372_v18, %v935_v49  ;;  %v2779_v18 = vmul.f32 0.2, %v2504_v48  ;;  %v1001_v49 = vsel %vm873_vm14, %v2380_v40, %v2616_v22  ;;  %vm897_vm12 = vcmp.gt.f32.partialorder %v2476_v30, 0.0 }
 0x1e4   :  { %3288 = vst [vmem:[#allocation35_spill] sm:$0xff] %v2750_v17  ;;  %v2770_v17 = vmul.f32 0.2, %v2500_v25  ;;  %v1003_v40 = vsel %vm875_vm0, %v2388_v45, %v2629_v8  ;;  %v1404_v22 = vpack.c.bf16 %v997_v29, %v2717_v20  ;;  %vm898_vm14 = vcmp.gt.f32.partialorder %v2480_v58, 0.0  ;;  %v3292_v8 = vld [vmem:[#allocation11_spill] sm:$0xff]  ;;  %v3298_v20 = vld [vmem:[#allocation8_spill] sm:$0xff] }
 0x1e5   :  { %3289 = vst [vmem:[#allocation36_spill] sm:$0xff] %v2756_v11  ;;  %v1000_v11 = vsel %vm872_vm13, %v2376_v36, %v2613_v32  ;;  %v1002_v36 = vsel %vm874_vm15, %v2384_v42, %v2626_v26  ;;  %vm899_vm13 = vcmp.gt.f32.partialorder %v2484_v10, 0.0  ;;  %v1004_v42 = vsel %vm876_vm1, %v2392_v47, %v2632_v14  ;;  %v3294_v14 = vld [vmem:[#allocation13_spill] sm:$0xff]  ;;  %v3295_v26 = vld [vmem:[#allocation3_spill] sm:$0xff] }
 0x1e6   :  { %3290 = vst [vmem:[#allocation37_spill] sm:$0xff] %v2767_v43  ;;  %v1394_v43 = vpack.c.bf16 %v2669_v39, %v2653_v38  ;;  %v2805_v38 = vmul.f32 0.2, %v2508_v52  ;;  %v1005_v45 = vsel %vm877_vm2, %v2396_v50, %v2642_v60  ;;  %v1409_v39 = vpack.c.bf16 %v999_v12, %v998_v28  ;;  %v3299_v28 = vld [vmem:[#allocation2_spill] sm:$0xff]  ;;  %v3301_v12 = vld [vmem:[#allocation9_spill] sm:$0xff] }
 0x1e7   :  { %3291 = vst [vmem:[#allocation38_spill] sm:$0xff] %v2770_v17  ;;  %v1389_v17 = vpack.c.bf16 %v2637_v7, %v2621_v19  ;;  %v1399_v7 = vpack.c.bf16 %v2701_v0, %v2685_v21  ;;  %vm900_vm15 = vcmp.gt.f32.partialorder %v2488_v35, 0.0  ;;  %v2821_v32 = vmul.f32 0.2, %v2512_v55  ;;  %v3297_v21 = vld [vmem:[#allocation15_spill] sm:$0xff] }
 0x1e8   :  { %vm3293_vm1 = vcmp.gt.f32.partialorder %v2400_v53, 0.0  ;;  %v1007_v50 = vsel %vm879_vm4, %v2404_v56, %v3294_v14  ;;  %1546 = vst [vmem:[%s3152_s4 + $0x8] sm:$0xff] %v1394_v43   ;;  %v1414_v19 = vpack.c.bf16 %v1001_v49, %v1000_v11  ;;  %vm902_vm2 = vcmp.gt.f32.partialorder %v2496_v6, 0.0  ;;  %v3304_v43 = vld [vmem:[#allocation26_spill] sm:$0xff]  ;;  %v3314_v14 = vld [vmem:[#allocation29_spill] sm:$0xff] }
 0x1e9   :  { %1390 = vst [vmem:[%s3152_s4] sm:$0xff] %v1389_v17   ;;  %v1006_v47 = vsel %vm3293_vm1, %v2400_v53, %v3292_v8  ;;  %v2837_v60 = vmul.f32 0.2, %v3295_v26  ;;  %vm3296_vm1 = vcmp.gt.f32.partialorder %v2408_v59, 0.0  ;;  %v1009_v56 = vsel %vm881_vm3, %v2412_v62, %v3297_v21  ;;  %v3302_v17 = vld [vmem:[#allocation25_spill] sm:$0xff]  ;;  %v3306_v49 = vld [vmem:[#allocation18_spill] sm:$0xff] }
 0x1ea   :  { %v1008_v53 = vsel %vm3296_vm1, %v2408_v59, %v2658_v13  ;;  %1547 = vst [vmem:[%s3152_s4 + $0x10] sm:$0xff] %v1399_v7   ;;  %v1419_v0 = vpack.c.bf16 %v1003_v40, %v1002_v36  ;;  %vm904_vm4 = vcmp.gt.f32.partialorder %v2504_v48, 0.0  ;;  %v2853_v29 = vmul.f32 0.2, %v3298_v20  ;;  %v3307_v40 = vld [vmem:[#allocation27_spill] sm:$0xff]  ;;  %v3313_v8 = vld [vmem:[#allocation10_spill] sm:$0xff] }
 0x1eb   :  { %vm3300_vm1 = vcmp.gt.f32.partialorder %v2416_v1, 0.0  ;;  %v1011_v62 = vsel %vm883_vm5, %v2420_v5, %v2674_v4  ;;  %1548 = vst [vmem:[%s3152_s4 + $0x18] sm:$0xff] %v1404_v22   ;;  %v1424_v13 = vpack.c.bf16 %v1005_v45, %v1004_v42  ;;  %v2869_v11 = vmul.f32 0.2, %v3301_v12  ;;  %v3309_v22 = vld [vmem:[#allocation20_spill] sm:$0xff] }
 0x1ec   :  { %v1010_v59 = vsel %vm3300_vm1, %v2416_v1, %v3299_v28  ;;  %vm3303_vm1 = vcmp.gt.f32.partialorder %v2424_v16, 0.0  ;;  %vm3305_vm5 = vcmp.gt.f32.partialorder %v2428_v31, 0.0  ;;  %1549 = vst [vmem:[%s3152_s4 + $0x20] sm:$0xff] %v1409_v39   ;;  %v1429_v4 = vpack.c.bf16 %v1007_v50, %v1006_v47  ;;  %v3310_v45 = vld [vmem:[#allocation28_spill] sm:$0xff]  ;;  %v3312_v39 = vld [vmem:[#allocation6_spill] sm:$0xff] }
 0x1ed   :  { %v1012_v1 = vsel %vm3303_vm1, %v2424_v16, %v3302_v17  ;;  %v1013_v5 = vsel %vm3305_vm5, %v2428_v31, %v3304_v43  ;;  %vm908_vm0 = vcmp.gt.f32.partialorder %v3298_v20, 0.0  ;;  %v2885_v36 = vmul.f32 0.2, %v3306_v49  ;;  %1550 = vst [vmem:[%s3152_s4 + $0x28] sm:$0xff] %v1414_v19   ;;  %v3315_v50 = vld [vmem:[#allocation30_spill] sm:$0xff]  ;;  %v3316_v19 = vld [vmem:[#allocation12_spill] sm:$0xff] }
 0x1ee   :  { %v1014_v16 = vsel %vm886_vm8, %v2432_v15, %v2690_v33  ;;  %vm3308_vm1 = vcmp.gt.f32.partialorder %v2436_v34, 0.0  ;;  %v1434_v7 = vpack.c.bf16 %v1009_v56, %v1008_v53  ;;  %vm910_vm5 = vcmp.gt.f32.partialorder %v3306_v49, 0.0  ;;  %1551 = vst [vmem:[%s3152_s4 + $0x30] sm:$0xff] %v1419_v0   ;;  %v3317_v53 = vld [vmem:[#allocation14_spill] sm:$0xff]  ;;  %v3318_v56 = vld [vmem:[#allocation31_spill] sm:$0xff]  ;;  %v3320_v28 = vld [vmem:[#allocation16_spill] sm:$0xff] }
 0x1ef   :  { %v1015_v31 = vsel %vm3308_vm1, %v2436_v34, %v3307_v40  ;;  %v2901_v42 = vmul.f32 0.2, %v3309_v22  ;;  %v1016_v15 = vsel %vm888_vm9, %v2440_v37, %v3310_v45  ;;  %vm3311_vm8 = vcmp.gt.f32.partialorder %v2444_v41, 0.0  ;;  %1552 = vst [vmem:[%s3152_s4 + $0x38] sm:$0xff] %v1424_v13   ;;  %v3322_v13 = vld [vmem:[#allocation32_spill] sm:$0xff]  ;;  %v3324_v17 = vld [vmem:[#allocation33_spill] sm:$0xff] }
 0x1f0   :  { %v1017_v34 = vsel %vm3311_vm8, %v2444_v41, %v2706_v9  ;;  %v1439_v33 = vpack.c.bf16 %v1011_v62, %v1010_v59  ;;  %vm912_vm1 = vcmp.gt.f32.partialorder %v3312_v39, 0.0  ;;  %vm913_vm3 = vcmp.gt.f32.partialorder %v3313_v8, 0.0  ;;  %1553 = vst [vmem:[%s3152_s4 + $0x40] sm:$0xff] %v1429_v4   ;;  %v3321_v59 = vld [vmem:[#allocation17_spill] sm:$0xff]  ;;  %v3328_v4 = vld [vmem:[#allocation34_spill] sm:$0xff]  ;;  %v3331_v45 = vld [vmem:[#allocation35_spill] sm:$0xff] }
 0x1f1   :  { %v2917_v47 = vmul.f32 0.2, %v3312_v39  ;;  %v1018_v37 = vsel %vm890_vm7, %v2448_v44, %v3314_v14  ;;  %v1019_v41 = vsel %vm891_vm10, %v2452_v46, %v3315_v50  ;;  %v1444_v9 = vpack.c.bf16 %v1013_v5, %v1012_v1  ;;  %1554 = vst [vmem:[%s3152_s4 + $0x48] sm:$0xff] %v1434_v7   ;;  %v3325_v1 = vld [vmem:[#allocation19_spill] sm:$0xff]  ;;  %v3326_v43 = vld [vmem:[#allocation21_spill] sm:$0xff]  ;;  %v3329_v40 = vld [vmem:[#allocation22_spill] sm:$0xff] }
 0x1f2   :  { %vm914_vm9 = vcmp.gt.f32.partialorder %v3316_v19, 0.0  ;;  %v977_v21 = vmul.f32 0.2, %v3313_v8  ;;  %vm3319_vm7 = vcmp.gt.f32.partialorder %v2456_v51, 0.0  ;;  %v1021_v46 = vsel %vm893_vm11, %v2460_v54, %v2725_v27  ;;  %1555 = vst [vmem:[%s3152_s4 + $0x50] sm:$0xff] %v1439_v33   ;;  %v3334_v14 = vld [vmem:[#allocation36_spill] sm:$0xff] }
 0x1f3   :  { %v1020_v44 = vsel %vm3319_vm7, %v2456_v51, %v3318_v56  ;;  %v1449_v0 = vpack.c.bf16 %v1015_v31, %v1014_v16  ;;  %vm916_vm10 = vcmp.gt.f32.partialorder %v3320_v28, 0.0  ;;  %v978_v62 = vmul.f32 0.2, %v3316_v19  ;;  %v3330_v31 = vld [vmem:[#allocation23_spill] sm:$0xff]  ;;  %1556 = vst [vmem:[%s3152_s4 + $0x58] sm:$0xff] %v1444_v9  }
 0x1f4   :  { %vm3323_vm7 = vcmp.gt.f32.partialorder %v2464_v57, 0.0  ;;  %v1023_v54 = vsel %vm895_vm6, %v2468_v61, %v3324_v17  ;;  %v1454_v27 = vpack.c.bf16 %v1017_v34, %v1016_v15  ;;  %vm918_vm11 = vcmp.gt.f32.partialorder %v3325_v1, 0.0  ;;  %v3332_v15 = vld [vmem:[#allocation24_spill] sm:$0xff] }
 0x1f5   :  { %v1022_v51 = vsel %vm3323_vm7, %v2464_v57, %v3322_v13  ;;  %v979_v5 = vmul.f32 0.2, %v3317_v53  ;;  %vm3327_vm7 = vcmp.gt.f32.partialorder %v2472_v23, 0.0  ;;  %v1025_v61 = vsel %vm897_vm12, %v2476_v30, %v3328_v4  ;;  %v3333_v34 = vld [vmem:[#allocation4_spill] sm:$0xff]  ;;  %1557 = vst [vmem:[%s3152_s4 + $0x60] sm:$0xff] %v1449_v0  }
 0x1f6   :  { %v1024_v57 = vsel %vm3327_vm7, %v2472_v23, %v2739_v3  ;;  %v1459_v16 = vpack.c.bf16 %v1019_v41, %v1018_v37  ;;  %vm920_vm6 = vcmp.gt.f32.partialorder %v3329_v40, 0.0  ;;  %vm921_vm8 = vcmp.gt.f32.partialorder %v3330_v31, 0.0  ;;  %v3336_v37 = vld [vmem:[#allocation5_spill] sm:$0xff]  ;;  %1558 = vst [vmem:[%s3152_s4 + $0x68] sm:$0xff] %v1454_v27  }
 0x1f7   :  { %v980_v7 = vmul.f32 0.2, %v3320_v28  ;;  %v1026_v23 = vsel %vm898_vm14, %v2480_v58, %v3331_v45  ;;  %v1027_v30 = vsel %vm899_vm13, %v2484_v10, %v2753_v24  ;;  %v1464_v3 = vpack.c.bf16 %v1021_v46, %v1020_v44  ;;  %v3337_v41 = vld [vmem:[#allocation37_spill] sm:$0xff] }
 0x1f8   :  { %vm922_vm12 = vcmp.gt.f32.partialorder %v3332_v15, 0.0  ;;  %vm923_vm7 = vcmp.gt.f32.partialorder %v3333_v34, 0.0  ;;  %v981_v33 = vmul.f32 0.2, %v3321_v59  ;;  %v1028_v58 = vsel %vm900_vm15, %v2488_v35, %v3334_v14  ;;  %v3338_v35 = vld [vmem:[#allocation38_spill] sm:$0xff]  ;;  %1559 = vst [vmem:[%s3152_s4 + $0x70] sm:$0xff] %v1459_v16  }
 0x1f9   :  { %vm3335_vm13 = vcmp.gt.f32.partialorder %v2492_v63, 0.0  ;;  %v1469_v24 = vpack.c.bf16 %v1023_v54, %v1022_v51  ;;  %vm924_vm14 = vcmp.gt.f32.partialorder %v3336_v37, 0.0  ;;  %v982_v50 = vmul.f32 0.2, %v3325_v1  ;;  %1560 = vst [vmem:[%s3152_s4 + $0x78] sm:$0xff] %v1464_v3  }
 0x1fa   :  { %v1029_v10 = vsel %vm3335_vm13, %v2492_v63, %v2764_v2  ;;  %v1030_v9 = vsel %vm902_vm2, %v2496_v6, %v3337_v41  ;;  %vm3339_vm15 = vcmp.gt.f32.partialorder %v2500_v25, 0.0  ;;  %v1474_v63 = vpack.c.bf16 %v1025_v61, %v1024_v57 }
 0x1fb   :  { %v1031_v56 = vsel %vm3339_vm15, %v2500_v25, %v3338_v35  ;;  %v983_v2 = vmul.f32 0.2, %v3326_v43  ;;  %v1032_v44 = vsel %vm904_vm4, %v2504_v48, %v2779_v18  ;;  %vm3340_vm2 = vcmp.gt.f32.partialorder %v2508_v52, 0.0  ;;  %1561 = vst [vmem:[%s3152_s4 + $0x80] sm:$0xff] %v1469_v24  }
 0x1fc   :  { %v1033_v6 = vsel %vm3340_vm2, %v2508_v52, %v2805_v38  ;;  %v1479_v25 = vpack.c.bf16 %v1027_v30, %v1026_v23  ;;  %v984_v46 = vmul.f32 0.2, %v3329_v40  ;;  %vm3341_vm13 = vcmp.gt.f32.partialorder %v2512_v55, 0.0  ;;  %1562 = vst [vmem:[%s3152_s4 + $0x88] sm:$0xff] %v1474_v63  }
 0x1fd   :  { %v1034_v0 = vsel %vm3341_vm13, %v2512_v55, %v2821_v32  ;;  %vm3342_vm4 = vcmp.gt.f32.partialorder %v3295_v26, 0.0  ;;  %v1484_v52 = vpack.c.bf16 %v1029_v10, %v1028_v58  ;;  %v985_v18 = vmul.f32 0.2, %v3330_v31 }
 0x1fe   :  { %v1035_v48 = vsel %vm3342_vm4, %v3295_v26, %v2837_v60  ;;  %v1036_v38 = vsel %vm908_vm0, %v3298_v20, %v2853_v29  ;;  %vm3343_vm15 = vcmp.gt.f32.partialorder %v3301_v12, 0.0  ;;  %v1489_v32 = vpack.c.bf16 %v1031_v56, %v1030_v9  ;;  %1563 = vst [vmem:[%s3152_s4 + $0x90] sm:$0xff] %v1479_v25  }
 0x1ff   :  { %v1037_v55 = vsel %vm3343_vm15, %v3301_v12, %v2869_v11  ;;  %v986_v26 = vmul.f32 0.2, %v3332_v15  ;;  %v1038_v60 = vsel %vm910_vm5, %v3306_v49, %v2885_v36  ;;  %vm3344_vm0 = vcmp.gt.f32.partialorder %v3309_v22, 0.0  ;;  %1564 = vst [vmem:[%s3152_s4 + $0x98] sm:$0xff] %v1484_v52  }
 0x200   :  { %v1039_v20 = vsel %vm3344_vm0, %v3309_v22, %v2901_v42  ;;  %v1494_v29 = vpack.c.bf16 %v1033_v6, %v1032_v44  ;;  %v987_v12 = vmul.f32 0.2, %v3333_v34  ;;  %v1040_v11 = vsel %vm912_vm1, %v3312_v39, %v2917_v47  ;;  %1565 = vst [vmem:[%s3152_s4 + $0xa0] sm:$0xff] %v1489_v32  }
 0x201   :  { %v1041_v49 = vsel %vm913_vm3, %v3313_v8, %v977_v21  ;;  %v1499_v36 = vpack.c.bf16 %v1035_v48, %v1034_v0  ;;  %v988_v22 = vmul.f32 0.2, %v3336_v37  ;;  %v1042_v42 = vsel %vm914_vm9, %v3316_v19, %v978_v62  ;;  %v3346_v8 = vld [vmem:[#allocation7_spill] sm:$0xff] }
 0x202   :  { %vm3345_vm5 = vcmp.gt.f32.partialorder %v3317_v53, 0.0  ;;  %v1504_v39 = vpack.c.bf16 %v1037_v55, %v1036_v38  ;;  %v989_v47 = vmul.f32 0.2, %v3346_v8  ;;  %v1044_v21 = vsel %vm916_vm10, %v3320_v28, %v980_v7  ;;  %1566 = vst [vmem:[%s3152_s4 + $0xa8] sm:$0xff] %v1494_v29  }
 0x203   :  { %v1043_v13 = vsel %vm3345_vm5, %v3317_v53, %v979_v5  ;;  %vm3347_vm3 = vcmp.gt.f32.partialorder %v3321_v59, 0.0  ;;  %v1509_v19 = vpack.c.bf16 %v1039_v20, %v1038_v60  ;;  %vm925_vm1 = vcmp.gt.f32.partialorder %v3346_v8, 0.0  ;;  %1567 = vst [vmem:[%s3152_s4 + $0xb0] sm:$0xff] %v1499_v36  }
 0x204   :  { %v1045_v51 = vsel %vm3347_vm3, %v3321_v59, %v981_v33  ;;  %v1046_v53 = vsel %vm918_vm11, %v3325_v1, %v982_v50  ;;  %vm3348_vm9 = vcmp.gt.f32.partialorder %v3326_v43, 0.0  ;;  %v1514_v28 = vpack.c.bf16 %v1041_v49, %v1040_v11  ;;  %1568 = vst [vmem:[%s3152_s4 + $0xb8] sm:$0xff] %v1504_v39  }
 0x205   :  { %v1047_v62 = vsel %vm3348_vm9, %v3326_v43, %v983_v2  ;;  %v1048_v59 = vsel %vm920_vm6, %v3329_v40, %v984_v46  ;;  %v1049_v17 = vsel %vm921_vm8, %v3330_v31, %v985_v18  ;;  %v1519_v54 = vpack.c.bf16 %v1043_v13, %v1042_v42  ;;  %1569 = vst [vmem:[%s3152_s4 + $0xc0] sm:$0xff] %v1509_v19  }
 0x206   :  { %v1050_v27 = vsel %vm922_vm12, %v3332_v15, %v986_v26  ;;  %v1051_v1 = vsel %vm923_vm7, %v3333_v34, %v987_v12  ;;  %v1524_v43 = vpack.c.bf16 %v1045_v51, %v1044_v21  ;;  %v1052_v5 = vsel %vm924_vm14, %v3336_v37, %v988_v22  ;;  %1570 = vst [vmem:[%s3152_s4 + $0xc8] sm:$0xff] %v1514_v28  }
 0x207   :  { %v1053_v57 = vsel %vm925_vm1, %v3346_v8, %v989_v47  ;;  %v1529_v4 = vpack.c.bf16 %v1047_v62, %v1046_v53  ;;  %v1534_v61 = vpack.c.bf16 %v1049_v17, %v1048_v59  ;;  %1571 = vst [vmem:[%s3152_s4 + $0xd0] sm:$0xff] %v1519_v54   ;;  %v1539_v16 = vpack.c.bf16 %v1051_v1, %v1050_v27 }
 0x208   :  { %1572 = vst [vmem:[%s3152_s4 + $0xd8] sm:$0xff] %v1524_v43   ;;  %v1544_v40 = vpack.c.bf16 %v1053_v57, %v1052_v5 }
 0x209   :  { %1573 = vst [vmem:[%s3152_s4 + $0xe0] sm:$0xff] %v1529_v4  }
 0x20a   :  { %1574 = vst [vmem:[%s3152_s4 + $0xe8] sm:$0xff] %v1534_v61  }
 0x20b   :  { %1575 = vst [vmem:[%s3152_s4 + $0xf0] sm:$0xff] %v1539_v16  }
 0x20c   :  { %1576 = vst [vmem:[%s3152_s4 + $0xf8] sm:$0xff] %v1544_v40  }

// kernel: discriminator_forward.7
= control target key start
LH: loop header
LB: loop body
LE: loop exit
PB: predicated region body
PF: predicated region fallthrough
CT: control target
= control target key end

     0   :  { %s1073_s1 = inlined_call_operand.vmem [shape: bf16[256,128], index: 1, kind: input, shape index: {}]   ;;  %s1074_s0 = inlined_call_operand.vmem [shape: bf16[128,256], index: 0, kind: input, shape index: {}]   ;;  %s1075_s2 = inlined_call_operand.vmem [shape: f32[1,128], index: 2, kind: input, shape index: {}]   ;;  %s1076_s3 = inlined_call_operand.vmem [shape: f32[1,128], index: 3, kind: input, shape index: {}]   ;;  %s1077_s4 = inlined_call_operand.vmem [shape: bf16[128,128], index: 4, kind: output, shape index: {}]  }
   0x1   :  { %v690_v0 = vld [vmem:[%s1073_s1 + $0x38] sm:$0xff]  ;;  %v689_v2 = vld [vmem:[%s1073_s1 + $0x30] sm:$0xff]  ;;  %v688_v4 = vld [vmem:[%s1073_s1 + $0x28] sm:$0xff] }
   0x2   :  { %v698_v1 = vld [vmem:[%s1073_s1 + $0x78] sm:$0xff]  ;;  %241 = vmatpush.bf16.msra.mxu0 %v690_v0  ;;  %v697_v3 = vld [vmem:[%s1073_s1 + $0x70] sm:$0xff]  ;;  %746 = vmatpush.bf16.msra.mxu2 %v690_v0  ;;  %v696_v5 = vld [vmem:[%s1073_s1 + $0x68] sm:$0xff] }
   0x3   :  { %290 = vmatpush.bf16.msra.mxu1 %v698_v1  ;;  %754 = vmatpush.bf16.msra.mxu3 %v698_v1  ;;  %v687_v6 = vld [vmem:[%s1073_s1 + $0x20] sm:$0xff]  ;;  %v686_v8 = vld [vmem:[%s1073_s1 + $0x18] sm:$0xff]  ;;  %v685_v10 = vld [vmem:[%s1073_s1 + $0x10] sm:$0xff] }
   0x4   :  { %v695_v7 = vld [vmem:[%s1073_s1 + $0x60] sm:$0xff]  ;;  %v694_v9 = vld [vmem:[%s1073_s1 + $0x58] sm:$0xff]  ;;  %v693_v11 = vld [vmem:[%s1073_s1 + $0x50] sm:$0xff] }
   0x5   :  { %v684_v12 = vld [vmem:[%s1073_s1 + $0x8] sm:$0xff]  ;;  %v683_v14 = vld [vmem:[%s1073_s1] sm:$0xff]  ;;  %v549_v28 = vld [vmem:[%s1074_s0 + $0x10] sm:$0xf] }
   0x6   :  { %242 = vmatpush.bf16.msra.mxu0 %v689_v2  ;;  %747 = vmatpush.bf16.msra.mxu2 %v689_v2  ;;  %v692_v13 = vld [vmem:[%s1073_s1 + $0x48] sm:$0xff]  ;;  %v691_v15 = vld [vmem:[%s1073_s1 + $0x40] sm:$0xff]  ;;  %v670_v29 = vld [vmem:[%s1074_s0 + $0x14] sm:$0xf0] }
   0x7   :  { %291 = vmatpush.bf16.msra.mxu1 %v697_v3  ;;  %755 = vmatpush.bf16.msra.mxu3 %v697_v3  ;;  %v541_v16 = vld [vmem:[%s1074_s0] sm:$0xf]  ;;  %v668_v17 = vld [vmem:[%s1074_s0 + $0x4] sm:$0xf0]  ;;  %v667_v18 = vld [vmem:[%s1074_s0 + $0x4] sm:$0xf]  ;;  %v550_v36 = vor.u32 %v670_v29, %v549_v28 }
   0x8   :  { %v543_v19 = vld [vmem:[%s1074_s0 + $0x8] sm:$0xf0]  ;;  %v573_v20 = vld [vmem:[%s1074_s0 + $0x40] sm:$0xf]  ;;  %v676_v21 = vld [vmem:[%s1074_s0 + $0x44] sm:$0xf0]  ;;  %v542_v24 = vor.u32 %v668_v17, %v541_v16 }
   0x9   :  { %v675_v22 = vld [vmem:[%s1074_s0 + $0x44] sm:$0xf]  ;;  %v575_v23 = vld [vmem:[%s1074_s0 + $0x48] sm:$0xf0]  ;;  %v546_v25 = vor.u32 %v667_v18, %v543_v19  ;;  %v574_v26 = vor.u32 %v676_v21, %v573_v20  ;;  %v669_v30 = vld [vmem:[%s1074_s0 + $0x14] sm:$0xf] }
   0xa   :  { %243 = vmatpush.bf16.msra.mxu0 %v688_v4  ;;  %748 = vmatpush.bf16.msra.mxu2 %v688_v4  ;;  %v578_v27 = vor.u32 %v675_v22, %v575_v23  ;;  %v551_v31 = vld [vmem:[%s1074_s0 + $0x18] sm:$0xf0]  ;;  %v581_v32 = vld [vmem:[%s1074_s0 + $0x50] sm:$0xf]  ;;  %v678_v33 = vld [vmem:[%s1074_s0 + $0x54] sm:$0xf0] }
   0xb   :  { %292 = vmatpush.bf16.msra.mxu1 %v696_v5  ;;  %756 = vmatpush.bf16.msra.mxu3 %v696_v5  ;;  %v677_v34 = vld [vmem:[%s1074_s0 + $0x54] sm:$0xf]  ;;  %v583_v35 = vld [vmem:[%s1074_s0 + $0x58] sm:$0xf0]  ;;  %v554_v37 = vor.u32 %v669_v30, %v551_v31  ;;  %v582_v38 = vor.u32 %v678_v33, %v581_v32  ;;  %v557_v40 = vld [vmem:[%s1074_s0 + $0x20] sm:$0xf] }
   0xc   :  { %v586_v39 = vor.u32 %v677_v34, %v583_v35  ;;  %v672_v41 = vld [vmem:[%s1074_s0 + $0x24] sm:$0xf0]  ;;  %v671_v42 = vld [vmem:[%s1074_s0 + $0x24] sm:$0xf]  ;;  %v559_v43 = vld [vmem:[%s1074_s0 + $0x28] sm:$0xf0] }
   0xd   :  { %v589_v44 = vld [vmem:[%s1074_s0 + $0x60] sm:$0xf]  ;;  %v680_v45 = vld [vmem:[%s1074_s0 + $0x64] sm:$0xf0]  ;;  %v679_v46 = vld [vmem:[%s1074_s0 + $0x64] sm:$0xf]  ;;  %v558_v48 = vor.u32 %v672_v41, %v557_v40  ;;  %v562_v49 = vor.u32 %v671_v42, %v559_v43 }
   0xe   :  { %244 = vmatpush.bf16.msra.mxu0 %v687_v6  ;;  %749 = vmatpush.bf16.msra.mxu2 %v687_v6  ;;  %v591_v47 = vld [vmem:[%s1074_s0 + $0x68] sm:$0xf0]  ;;  %v590_v50 = vor.u32 %v680_v45, %v589_v44  ;;  %v565_v52 = vld [vmem:[%s1074_s0 + $0x30] sm:$0xf]  ;;  %v674_v53 = vld [vmem:[%s1074_s0 + $0x34] sm:$0xf0] }
   0xf   :  { %293 = vmatpush.bf16.msra.mxu1 %v695_v7  ;;  %757 = vmatpush.bf16.msra.mxu3 %v695_v7  ;;  %v594_v51 = vor.u32 %v679_v46, %v591_v47  ;;  %v673_v54 = vld [vmem:[%s1074_s0 + $0x34] sm:$0xf]  ;;  %v567_v55 = vld [vmem:[%s1074_s0 + $0x38] sm:$0xf0]  ;;  %v597_v56 = vld [vmem:[%s1074_s0 + $0x70] sm:$0xf]  ;;  %v566_v60 = vor.u32 %v674_v53, %v565_v52 }
  0x10   :  { %v682_v57 = vld [vmem:[%s1074_s0 + $0x74] sm:$0xf0]  ;;  %v681_v58 = vld [vmem:[%s1074_s0 + $0x74] sm:$0xf]  ;;  %v599_v59 = vld [vmem:[%s1074_s0 + $0x78] sm:$0xf0]  ;;  %v570_v61 = vor.u32 %v673_v54, %v567_v55 }
  0x11   :  { %v598_v62 = vor.u32 %v682_v57, %v597_v56  ;;  %v602_v63 = vor.u32 %v681_v58, %v599_v59 }
  0x12   :  { %245 = vmatpush.bf16.msra.mxu0 %v686_v8  ;;  %750 = vmatpush.bf16.msra.mxu2 %v686_v8 }
  0x13   :  { %294 = vmatpush.bf16.msra.mxu1 %v694_v9  ;;  %758 = vmatpush.bf16.msra.mxu3 %v694_v9 }
  0x16   :  { %246 = vmatpush.bf16.msra.mxu0 %v685_v10  ;;  %751 = vmatpush.bf16.msra.mxu2 %v685_v10 }
  0x17   :  { %295 = vmatpush.bf16.msra.mxu1 %v693_v11  ;;  %759 = vmatpush.bf16.msra.mxu3 %v693_v11 }
  0x1a   :  { %247 = vmatpush.bf16.msra.mxu0 %v684_v12  ;;  %752 = vmatpush.bf16.msra.mxu2 %v684_v12 }
  0x1b   :  { %296 = vmatpush.bf16.msra.mxu1 %v692_v13  ;;  %760 = vmatpush.bf16.msra.mxu3 %v692_v13 }
  0x1e   :  { %248 = vmatpush.bf16.msra.mxu0 %v683_v14  ;;  %753 = vmatpush.bf16.msra.mxu2 %v683_v14 }
  0x1f   :  { %297 = vmatpush.bf16.msra.mxu1 %v691_v15  ;;  %761 = vmatpush.bf16.msra.mxu3 %v691_v15 }
  0x21   :  { %249 = vmatmul.bf16.vlgmr.msra.gmra.mxu0 %v542_v24  ;;  %269 = vmatmul.bf16.vlgmr.msra.gmra.mxu2 %v574_v26 }
  0x22   :  { %298 = vmatmul.bf16.vlgmr.msra.gmra.mxu1 %v546_v25  ;;  %318 = vmatmul.bf16.vlgmr.msra.gmra.mxu3 %v578_v27 }
  0x31   :  { %254 = vmatmul.bf16.gmra.mxu0 %v550_v36  ;;  %274 = vmatmul.bf16.gmra.mxu2 %v582_v38 }
  0x32   :  { %303 = vmatmul.bf16.gmra.mxu1 %v554_v37  ;;  %323 = vmatmul.bf16.gmra.mxu3 %v586_v39 }
  0x41   :  { %259 = vmatmul.bf16.gmra.mxu0 %v558_v48  ;;  %279 = vmatmul.bf16.gmra.mxu2 %v590_v50 }
  0x42   :  { %308 = vmatmul.bf16.gmra.mxu1 %v562_v49  ;;  %328 = vmatmul.bf16.gmra.mxu3 %v594_v51 }
  0x51   :  { %264 = vmatmul.bf16.gmra.mxu0 %v566_v60  ;;  %284 = vmatmul.bf16.gmra.mxu2 %v598_v62 }
  0x52   :  { %313 = vmatmul.bf16.gmra.mxu1 %v570_v61  ;;  %333 = vmatmul.bf16.gmra.mxu3 %v602_v63 }
  0x9e   :  { %v250_v0 = vpop.f32.mrf.mxu0 }
  0x9f   :  { %v299_v1 = vpop.f32.mrf.mxu1 }
  0xa0   :  { %v935_v23 = vadd.f32 %v299_v1, %v250_v0 }
  0xa2   :  { %v361_v27 = vmul.f32 %v935_v23, %v935_v23 }
  0xa4   :  { %v270_v2 = vpop.f32.mrf.mxu2 }
  0xa5   :  { %v319_v3 = vpop.f32.mrf.mxu3 }
  0xa6   :  { %v252_v4 = vpop.f32.mrf.mxu0  ;;  %v967_v51 = vadd.f32 %v319_v3, %v270_v2 }
  0xa7   :  { %v301_v5 = vpop.f32.mrf.mxu1 }
  0xa8   :  { %v933_v22 = vadd.f32 %v301_v5, %v252_v4  ;;  %v369_v61 = vmul.f32 %v967_v51, %v967_v51 }
  0xaa   :  { %v362_v25 = vmul.f32 %v933_v22, %v933_v22  ;;  %v339_v28 = vadd.f32 %v933_v22, %v935_v23 }
  0xac   :  { %v272_v6 = vpop.f32.mrf.mxu2  ;;  %v377_v35 = vadd.f32 %v362_v25, %v361_v27 }
  0xad   :  { %v321_v7 = vpop.f32.mrf.mxu3 }
  0xae   :  { %v255_v8 = vpop.f32.mrf.mxu0  ;;  %v972_v57 = vadd.f32 %v321_v7, %v272_v6 }
  0xaf   :  { %v304_v9 = vpop.f32.mrf.mxu1 }
  0xb0   :  { %v937_v24 = vadd.f32 %v304_v9, %v255_v8  ;;  %v370_v1 = vmul.f32 %v972_v57, %v972_v57 }
  0xb2   :  { %v363_v29 = vmul.f32 %v937_v24, %v937_v24  ;;  %v340_v36 = vadd.f32 %v339_v28, %v937_v24 }
  0xb4   :  { %v275_v10 = vpop.f32.mrf.mxu2  ;;  %v378_v39 = vadd.f32 %v377_v35, %v363_v29 }
  0xb5   :  { %v324_v11 = vpop.f32.mrf.mxu3 }
  0xb6   :  { %v257_v12 = vpop.f32.mrf.mxu0  ;;  %v979_v62 = vadd.f32 %v324_v11, %v275_v10 }
  0xb7   :  { %v306_v13 = vpop.f32.mrf.mxu1 }
  0xb8   :  { %v941_v26 = vadd.f32 %v306_v13, %v257_v12  ;;  %v371_v5 = vmul.f32 %v979_v62, %v979_v62 }
  0xba   :  { %v364_v37 = vmul.f32 %v941_v26, %v941_v26  ;;  %v341_v40 = vadd.f32 %v340_v36, %v941_v26 }
  0xbc   :  { %v277_v14 = vpop.f32.mrf.mxu2  ;;  %v379_v43 = vadd.f32 %v378_v39, %v364_v37 }
  0xbd   :  { %v326_v15 = vpop.f32.mrf.mxu3 }
  0xbe   :  { %v260_v16 = vpop.f32.mrf.mxu0  ;;  %v984_v2 = vadd.f32 %v326_v15, %v277_v14 }
  0xbf   :  { %v309_v17 = vpop.f32.mrf.mxu1 }
  0xc0   :  { %v949_v30 = vadd.f32 %v309_v17, %v260_v16  ;;  %v372_v9 = vmul.f32 %v984_v2, %v984_v2 }
  0xc2   :  { %v365_v41 = vmul.f32 %v949_v30, %v949_v30  ;;  %v342_v44 = vadd.f32 %v341_v40, %v949_v30 }
  0xc4   :  { %v280_v18 = vpop.f32.mrf.mxu2  ;;  %v380_v46 = vadd.f32 %v379_v43, %v365_v41 }
  0xc5   :  { %v329_v19 = vpop.f32.mrf.mxu3 }
  0xc6   :  { %v262_v20 = vpop.f32.mrf.mxu0  ;;  %v989_v6 = vadd.f32 %v329_v19, %v280_v18 }
  0xc7   :  { %v311_v21 = vpop.f32.mrf.mxu1 }
  0xc8   :  { %v954_v38 = vadd.f32 %v311_v21, %v262_v20  ;;  %v373_v15 = vmul.f32 %v989_v6, %v989_v6 }
  0xca   :  { %v366_v45 = vmul.f32 %v954_v38, %v954_v38  ;;  %v343_v47 = vadd.f32 %v342_v44, %v954_v38 }
  0xcc   :  { %v282_v31 = vpop.f32.mrf.mxu2  ;;  %v381_v52 = vadd.f32 %v380_v46, %v366_v45 }
  0xcd   :  { %v331_v32 = vpop.f32.mrf.mxu3 }
  0xce   :  { %v265_v33 = vpop.f32.mrf.mxu0  ;;  %v994_v10 = vadd.f32 %v331_v32, %v282_v31 }
  0xcf   :  { %v314_v34 = vpop.f32.mrf.mxu1 }
  0xd0   :  { %v959_v42 = vadd.f32 %v314_v34, %v265_v33  ;;  %v374_v19 = vmul.f32 %v994_v10, %v994_v10 }
  0xd2   :  { %v367_v48 = vmul.f32 %v959_v42, %v959_v42  ;;  %v344_v53 = vadd.f32 %v343_v47, %v959_v42 }
  0xd4   :  { %v285_v55 = vpop.f32.mrf.mxu2  ;;  %v382_v58 = vadd.f32 %v381_v52, %v367_v48 }
  0xd5   :  { %v334_v56 = vpop.f32.mrf.mxu3 }
  0xd6   :  { %v267_v49 = vpop.f32.mrf.mxu0  ;;  %v999_v16 = vadd.f32 %v334_v56, %v285_v55 }
  0xd7   :  { %v316_v50 = vpop.f32.mrf.mxu1 }
  0xd8   :  { %v970_v54 = vadd.f32 %v316_v50, %v267_v49  ;;  %v375_v28 = vmul.f32 %v999_v16, %v999_v16 }
  0xda   :  { %v345_v59 = vadd.f32 %v344_v53, %v970_v54  ;;  %v368_v60 = vmul.f32 %v970_v54, %v970_v54 }
  0xdc   :  { %v346_v63 = vadd.f32 %v345_v59, %v967_v51  ;;  %v383_v0 = vadd.f32 %v382_v58, %v368_v60  ;;  %v287_v13 = vpop.f32.mrf.mxu2 }
  0xdd   :  { %v336_v14 = vpop.f32.mrf.mxu3 }
  0xde   :  { %v347_v3 = vadd.f32 %v346_v63, %v972_v57  ;;  %v384_v4 = vadd.f32 %v383_v0, %v369_v61  ;;  %v1005_v25 = vadd.f32 %v336_v14, %v287_v13  ;;  %v401_v63 = vld [vmem:[%s1075_s2] sm:$0x1] }
  0xe0   :  { %v348_v7 = vadd.f32 %v347_v3, %v979_v62  ;;  %v385_v8 = vadd.f32 %v384_v4, %v370_v1  ;;  %v376_v33 = vmul.f32 %v1005_v25, %v1005_v25  ;;  %v414_v4 = vld [vmem:[%s1076_s3] sm:$0x1] }
  0xe2   :  { %v386_v11 = vadd.f32 %v385_v8, %v371_v5  ;;  %v349_v12 = vadd.f32 %v348_v7, %v984_v2 }
  0xe4   :  { %v350_v17 = vadd.f32 %v349_v12, %v989_v6  ;;  %v387_v18 = vadd.f32 %v386_v11, %v372_v9 }
  0xe6   :  { %v351_v20 = vadd.f32 %v350_v17, %v994_v10  ;;  %v388_v21 = vadd.f32 %v387_v18, %v373_v15 }
  0xe8   :  { %v352_v27 = vadd.f32 %v351_v20, %v999_v16  ;;  %v389_v29 = vadd.f32 %v388_v21, %v374_v19 }
  0xea   :  { %v390_v31 = vadd.f32 %v389_v29, %v375_v28  ;;  %v353_v32 = vadd.f32 %v352_v27, %v1005_v25 }
  0xec   :  { %v354_v34 = vrot.slane %v353_v32, 4  ;;  %v391_v35 = vadd.f32 %v390_v31, %v376_v33 }
  0xee   :  { %v355_v36 = vadd.f32 %v354_v34, %v353_v32  ;;  %v392_v37 = vrot.slane %v391_v35, 4 }
  0xf0   :  { %v356_v39 = vrot.slane %v355_v36, 2  ;;  %v393_v40 = vadd.f32 %v392_v37, %v391_v35 }
  0xf2   :  { %v357_v41 = vadd.f32 %v356_v39, %v355_v36  ;;  %v394_v43 = vrot.slane %v393_v40, 2 }
  0xf4   :  { %v358_v44 = vrot.slane %v357_v41, 1  ;;  %v395_v45 = vadd.f32 %v394_v43, %v393_v40 }
  0xf6   :  { %v359_v46 = vadd.f32 %v358_v44, %v357_v41  ;;  %v396_v47 = vrot.slane %v395_v45, 1 }
  0xf8   :  { %v360_v48 = vmul.f32 0.0078125, %v359_v46  ;;  %v397_v49 = vadd.f32 %v396_v47, %v395_v45 }
  0xfa   :  { %v398_v50 = vmul.f32 0.0078125, %v397_v49  ;;  %v399_v52 = vmul.f32 %v360_v48, %v360_v48 }
  0xfc   :  { %v400_v53 = vsub.f32 %v398_v50, %v399_v52 }
  0xfe   :  { %v402_v55 = vadd.f32 1e-05, %v400_v53 }
 0x100   :  { %762 = vrsqrt.f32 %v402_v55  ;;  %vm409_vm1 = vweird.f32 %v402_v55 }
 0x106   :  { %v763_v56 = vpop.eup %762 }
 0x107   :  { %v404_v58 = vmul.f32 %v763_v56, %v402_v55  ;;  %vm410_vm0 = vweird.f32 %v763_v56 }
 0x108   :  { %vm411_vm2 = vmor %vm409_vm1, %vm410_vm0 }
 0x109   :  { %v405_v59 = vmul.f32 %v763_v56, %v404_v58 }
 0x10b   :  { %v406_v60 = vmul.f32 0.5, %v405_v59 }
 0x10d   :  { %v407_v61 = vsub.f32 1.5, %v406_v60 }
 0x10f   :  { %v408_v0 = vmul.f32 %v763_v56, %v407_v61 }
 0x111   :  { %v412_v1 = vsel %vm411_vm2, %v763_v56, %v408_v0 }
 0x112   :  { %v413_v3 = vmul.f32 %v412_v1, %v401_v63 }
 0x114   :  { %v415_v5 = vmul.f32 %v413_v3, %v360_v48  ;;  %v418_v7 = vperm.slane %v413_v3, 0 }
 0x116   :  { %v416_v8 = vsub.f32 %v414_v4, %v415_v5  ;;  %v420_v9 = vmul.f32 %v418_v7, %v935_v23  ;;  %v421_v11 = vmul.f32 %v418_v7, %v933_v22  ;;  %v422_v12 = vmul.f32 %v418_v7, %v937_v24 }
 0x117   :  { %v423_v13 = vmul.f32 %v418_v7, %v941_v26  ;;  %v424_v14 = vmul.f32 %v418_v7, %v949_v30  ;;  %v425_v15 = vmul.f32 %v418_v7, %v954_v38  ;;  %v426_v17 = vmul.f32 %v418_v7, %v959_v42 }
 0x118   :  { %v437_v18 = vperm.slane %v416_v8, 0  ;;  %v427_v19 = vmul.f32 %v418_v7, %v970_v54  ;;  %v428_v20 = vmul.f32 %v418_v7, %v967_v51  ;;  %v429_v21 = vmul.f32 %v418_v7, %v972_v57 }
 0x119   :  { %v430_v23 = vmul.f32 %v418_v7, %v979_v62  ;;  %v431_v22 = vmul.f32 %v418_v7, %v984_v2  ;;  %v432_v24 = vmul.f32 %v418_v7, %v989_v6  ;;  %v433_v26 = vmul.f32 %v418_v7, %v994_v10 }
 0x11a   :  { %v434_v30 = vmul.f32 %v418_v7, %v999_v16  ;;  %v439_v38 = vadd.f32 %v437_v18, %v420_v9  ;;  %v440_v27 = vadd.f32 %v437_v18, %v421_v11  ;;  %v441_v42 = vadd.f32 %v437_v18, %v422_v12 }
 0x11b   :  { %v442_v28 = vadd.f32 %v437_v18, %v423_v13  ;;  %v443_v29 = vadd.f32 %v437_v18, %v424_v14  ;;  %v444_v54 = vadd.f32 %v437_v18, %v425_v15  ;;  %v445_v31 = vadd.f32 %v437_v18, %v426_v17 }
 0x11c   :  { %v446_v51 = vadd.f32 %v437_v18, %v427_v19  ;;  %v447_v32 = vadd.f32 %v437_v18, %v428_v20  ;;  %v448_v57 = vadd.f32 %v437_v18, %v429_v21  ;;  %v449_v33 = vadd.f32 %v437_v18, %v430_v23 }
 0x11d   :  { %v450_v62 = vadd.f32 %v437_v18, %v431_v22  ;;  %v435_v2 = vmul.f32 %v418_v7, %v1005_v25  ;;  %v451_v34 = vadd.f32 %v437_v18, %v432_v24  ;;  %v452_v6 = vadd.f32 %v437_v18, %v433_v26 }
 0x11e   :  { %v453_v35 = vadd.f32 %v437_v18, %v434_v30  ;;  %vm455_vm3 = vcmp.gt.f32.partialorder %v439_v38, 0.0  ;;  %vm456_vm4 = vcmp.gt.f32.partialorder %v440_v27, 0.0  ;;  %vm457_vm5 = vcmp.gt.f32.partialorder %v441_v42, 0.0 }
 0x11f   :  { %vm458_vm6 = vcmp.gt.f32.partialorder %v442_v28, 0.0  ;;  %vm459_vm7 = vcmp.gt.f32.partialorder %v443_v29, 0.0  ;;  %vm460_vm8 = vcmp.gt.f32.partialorder %v444_v54, 0.0  ;;  %vm461_vm9 = vcmp.gt.f32.partialorder %v445_v31, 0.0 }
 0x120   :  { %vm462_vm10 = vcmp.gt.f32.partialorder %v446_v51, 0.0  ;;  %vm463_vm11 = vcmp.gt.f32.partialorder %v447_v32, 0.0  ;;  %vm464_vm12 = vcmp.gt.f32.partialorder %v448_v57, 0.0  ;;  %vm465_vm13 = vcmp.gt.f32.partialorder %v449_v33, 0.0 }
 0x121   :  { %vm466_vm14 = vcmp.gt.f32.partialorder %v450_v62, 0.0  ;;  %vm467_vm15 = vcmp.gt.f32.partialorder %v451_v34, 0.0  ;;  %vm468_vm0 = vcmp.gt.f32.partialorder %v452_v6, 0.0  ;;  %v471_v10 = vmul.f32 0.2, %v439_v38 }
 0x122   :  { %v472_v16 = vmul.f32 0.2, %v440_v27  ;;  %v454_v25 = vadd.f32 %v437_v18, %v435_v2  ;;  %v473_v36 = vmul.f32 0.2, %v441_v42  ;;  %v474_v37 = vmul.f32 0.2, %v442_v28 }
 0x123   :  { %v475_v39 = vmul.f32 0.2, %v443_v29  ;;  %v476_v40 = vmul.f32 0.2, %v444_v54  ;;  %v477_v41 = vmul.f32 0.2, %v445_v31  ;;  %v487_v47 = vsel %vm455_vm3, %v439_v38, %v471_v10 }
 0x124   :  { %v478_v43 = vmul.f32 0.2, %v446_v51  ;;  %v479_v44 = vmul.f32 0.2, %v447_v32  ;;  %v480_v45 = vmul.f32 0.2, %v448_v57  ;;  %v488_v52 = vsel %vm456_vm4, %v440_v27, %v472_v16 }
 0x125   :  { %v481_v46 = vmul.f32 0.2, %v449_v33  ;;  %v482_v48 = vmul.f32 0.2, %v450_v62  ;;  %v483_v49 = vmul.f32 0.2, %v451_v34  ;;  %v489_v56 = vsel %vm457_vm5, %v441_v42, %v473_v36 }
 0x126   :  { %v484_v50 = vmul.f32 0.2, %v452_v6  ;;  %v485_v53 = vmul.f32 0.2, %v453_v35  ;;  %v486_v55 = vmul.f32 0.2, %v454_v25  ;;  %v490_v58 = vsel %vm458_vm6, %v442_v28, %v474_v37 }
 0x127   :  { %v491_v59 = vsel %vm459_vm7, %v443_v29, %v475_v39  ;;  %v492_v60 = vsel %vm460_vm8, %v444_v54, %v476_v40  ;;  %v493_v61 = vsel %vm461_vm9, %v445_v31, %v477_v41  ;;  %v494_v63 = vsel %vm462_vm10, %v446_v51, %v478_v43 }
 0x128   :  { %vm469_vm1 = vcmp.gt.f32.partialorder %v453_v35, 0.0  ;;  %vm470_vm2 = vcmp.gt.f32.partialorder %v454_v25, 0.0  ;;  %v495_v0 = vsel %vm463_vm11, %v447_v32, %v479_v44  ;;  %v496_v1 = vsel %vm464_vm12, %v448_v57, %v480_v45 }
 0x129   :  { %v497_v3 = vsel %vm465_vm13, %v449_v33, %v481_v46  ;;  %v498_v4 = vsel %vm466_vm14, %v450_v62, %v482_v48  ;;  %v702_v5 = vpack.c.bf16 %v488_v52, %v487_v47  ;;  %v707_v7 = vpack.c.bf16 %v490_v58, %v489_v56 }
 0x12a   :  { %v499_v8 = vsel %vm467_vm15, %v451_v34, %v483_v49  ;;  %v500_v9 = vsel %vm468_vm0, %v452_v6, %v484_v50  ;;  %v712_v11 = vpack.c.bf16 %v492_v60, %v491_v59  ;;  %v717_v12 = vpack.c.bf16 %v494_v63, %v493_v61 }
 0x12b   :  { %v501_v13 = vsel %vm469_vm1, %v453_v35, %v485_v53  ;;  %v502_v14 = vsel %vm470_vm2, %v454_v25, %v486_v55  ;;  %703 = vst [vmem:[%s1077_s4] sm:$0xff] %v702_v5   ;;  %v722_v15 = vpack.c.bf16 %v496_v1, %v495_v0  ;;  %v727_v17 = vpack.c.bf16 %v498_v4, %v497_v3 }
 0x12c   :  { %739 = vst [vmem:[%s1077_s4 + $0x8] sm:$0xff] %v707_v7   ;;  %v732_v18 = vpack.c.bf16 %v500_v9, %v499_v8  ;;  %v737_v19 = vpack.c.bf16 %v502_v14, %v501_v13 }
 0x12d   :  { %740 = vst [vmem:[%s1077_s4 + $0x10] sm:$0xff] %v712_v11  }
 0x12e   :  { %741 = vst [vmem:[%s1077_s4 + $0x18] sm:$0xff] %v717_v12  }
 0x12f   :  { %742 = vst [vmem:[%s1077_s4 + $0x20] sm:$0xff] %v722_v15  }
 0x130   :  { %743 = vst [vmem:[%s1077_s4 + $0x28] sm:$0xff] %v727_v17  }
 0x131   :  { %744 = vst [vmem:[%s1077_s4 + $0x30] sm:$0xff] %v732_v18  }
 0x132   :  { %745 = vst [vmem:[%s1077_s4 + $0x38] sm:$0xff] %v737_v19  }

// kernel: discriminator_forward.8
= control target key start
LH: loop header
LB: loop body
LE: loop exit
PB: predicated region body
PF: predicated region fallthrough
CT: control target
= control target key end

     0   :  { %s1149_s1 = inlined_call_operand.vmem [shape: bf16[512,128], index: 1, kind: input, shape index: {}]   ;;  %s1150_s0 = inlined_call_operand.vmem [shape: bf16[64,512], index: 0, kind: input, shape index: {}]   ;;  %s1151_s2 = inlined_call_operand.vmem [shape: f32[1,128], index: 2, kind: input, shape index: {}]   ;;  %s1152_s3 = inlined_call_operand.vmem [shape: f32[1,128], index: 3, kind: input, shape index: {}]   ;;  %s1153_s4 = inlined_call_operand.vmem [shape: bf16[64,128], index: 4, kind: output, shape index: {}]  }
   0x1   :  { %v820_v0 = vld [vmem:[%s1149_s1 + $0x38] sm:$0xff]  ;;  %v819_v4 = vld [vmem:[%s1149_s1 + $0x30] sm:$0xff]  ;;  %v818_v8 = vld [vmem:[%s1149_s1 + $0x28] sm:$0xff] }
   0x2   :  { %v828_v1 = vld [vmem:[%s1149_s1 + $0x78] sm:$0xff]  ;;  %369 = vmatpush.bf16.msra.mxu0 %v820_v0  ;;  %v827_v5 = vld [vmem:[%s1149_s1 + $0x70] sm:$0xff]  ;;  %v826_v9 = vld [vmem:[%s1149_s1 + $0x68] sm:$0xff] }
   0x3   :  { %v836_v2 = vld [vmem:[%s1149_s1 + $0xb8] sm:$0xff]  ;;  %398 = vmatpush.bf16.msra.mxu1 %v828_v1  ;;  %v835_v6 = vld [vmem:[%s1149_s1 + $0xb0] sm:$0xff]  ;;  %v834_v10 = vld [vmem:[%s1149_s1 + $0xa8] sm:$0xff] }
   0x4   :  { %v844_v3 = vld [vmem:[%s1149_s1 + $0xf8] sm:$0xff]  ;;  %427 = vmatpush.bf16.msra.mxu2 %v836_v2  ;;  %v843_v7 = vld [vmem:[%s1149_s1 + $0xf0] sm:$0xff]  ;;  %v842_v11 = vld [vmem:[%s1149_s1 + $0xe8] sm:$0xff] }
   0x5   :  { %456 = vmatpush.bf16.msra.mxu3 %v844_v3  ;;  %v817_v12 = vld [vmem:[%s1149_s1 + $0x20] sm:$0xff]  ;;  %v816_v16 = vld [vmem:[%s1149_s1 + $0x18] sm:$0xff]  ;;  %v815_v20 = vld [vmem:[%s1149_s1 + $0x10] sm:$0xff] }
   0x6   :  { %370 = vmatpush.bf16.msra.mxu0 %v819_v4  ;;  %v825_v13 = vld [vmem:[%s1149_s1 + $0x60] sm:$0xff]  ;;  %v824_v17 = vld [vmem:[%s1149_s1 + $0x58] sm:$0xff]  ;;  %v823_v21 = vld [vmem:[%s1149_s1 + $0x50] sm:$0xff] }
   0x7   :  { %399 = vmatpush.bf16.msra.mxu1 %v827_v5  ;;  %v833_v14 = vld [vmem:[%s1149_s1 + $0xa0] sm:$0xff]  ;;  %v832_v18 = vld [vmem:[%s1149_s1 + $0x98] sm:$0xff]  ;;  %v831_v22 = vld [vmem:[%s1149_s1 + $0x90] sm:$0xff] }
   0x8   :  { %428 = vmatpush.bf16.msra.mxu2 %v835_v6  ;;  %v841_v15 = vld [vmem:[%s1149_s1 + $0xe0] sm:$0xff]  ;;  %v840_v19 = vld [vmem:[%s1149_s1 + $0xd8] sm:$0xff]  ;;  %v839_v23 = vld [vmem:[%s1149_s1 + $0xd0] sm:$0xff] }
   0x9   :  { %457 = vmatpush.bf16.msra.mxu3 %v843_v7  ;;  %v814_v24 = vld [vmem:[%s1149_s1 + $0x8] sm:$0xff]  ;;  %v813_v28 = vld [vmem:[%s1149_s1] sm:$0xff]  ;;  %v799_v33 = vld [vmem:[%s1150_s0 + $0xc] sm:$0xf0] }
   0xa   :  { %371 = vmatpush.bf16.msra.mxu0 %v818_v8  ;;  %v822_v25 = vld [vmem:[%s1149_s1 + $0x48] sm:$0xff]  ;;  %v821_v29 = vld [vmem:[%s1149_s1 + $0x40] sm:$0xff]  ;;  %v609_v35 = vld [vmem:[%s1150_s0 + $0x10] sm:$0xf0] }
   0xb   :  { %400 = vmatpush.bf16.msra.mxu1 %v826_v9  ;;  %v830_v26 = vld [vmem:[%s1149_s1 + $0x88] sm:$0xff]  ;;  %v829_v30 = vld [vmem:[%s1149_s1 + $0x80] sm:$0xff]  ;;  %v800_v37 = vld [vmem:[%s1150_s0 + $0x14] sm:$0xf0] }
   0xc   :  { %429 = vmatpush.bf16.msra.mxu2 %v834_v10  ;;  %v838_v27 = vld [vmem:[%s1149_s1 + $0xc8] sm:$0xff]  ;;  %v837_v31 = vld [vmem:[%s1149_s1 + $0xc0] sm:$0xff]  ;;  %v617_v39 = vld [vmem:[%s1150_s0 + $0x18] sm:$0xf0] }
   0xd   :  { %458 = vmatpush.bf16.msra.mxu3 %v842_v11  ;;  %v607_v32 = vld [vmem:[%s1150_s0] sm:$0xf]  ;;  %v797_v34 = vld [vmem:[%s1150_s0 + $0x4] sm:$0xf]  ;;  %v615_v36 = vld [vmem:[%s1150_s0 + $0x8] sm:$0xf] }
   0xe   :  { %372 = vmatpush.bf16.msra.mxu0 %v817_v12  ;;  %v798_v38 = vld [vmem:[%s1150_s0 + $0xc] sm:$0xf]  ;;  %v608_v40 = vor.u32 %v799_v33, %v607_v32  ;;  %v612_v41 = vor.u32 %v797_v34, %v609_v35  ;;  %v616_v42 = vor.u32 %v800_v37, %v615_v36  ;;  %v623_v44 = vld [vmem:[%s1150_s0 + $0x20] sm:$0xf]  ;;  %v803_v45 = vld [vmem:[%s1150_s0 + $0x2c] sm:$0xf0] }
   0xf   :  { %401 = vmatpush.bf16.msra.mxu1 %v825_v13  ;;  %v620_v43 = vor.u32 %v798_v38, %v617_v39  ;;  %v801_v46 = vld [vmem:[%s1150_s0 + $0x24] sm:$0xf]  ;;  %v625_v47 = vld [vmem:[%s1150_s0 + $0x30] sm:$0xf0]  ;;  %v631_v48 = vld [vmem:[%s1150_s0 + $0x28] sm:$0xf]  ;;  %v624_v52 = vor.u32 %v803_v45, %v623_v44 }
  0x10   :  { %430 = vmatpush.bf16.msra.mxu2 %v833_v14  ;;  %v804_v49 = vld [vmem:[%s1150_s0 + $0x34] sm:$0xf0]  ;;  %v802_v50 = vld [vmem:[%s1150_s0 + $0x2c] sm:$0xf]  ;;  %v633_v51 = vld [vmem:[%s1150_s0 + $0x38] sm:$0xf0]  ;;  %v628_v53 = vor.u32 %v801_v46, %v625_v47 }
  0x11   :  { %459 = vmatpush.bf16.msra.mxu3 %v841_v15  ;;  %v632_v54 = vor.u32 %v804_v49, %v631_v48  ;;  %v636_v55 = vor.u32 %v802_v50, %v633_v51  ;;  %v639_v56 = vld [vmem:[%s1150_s0 + $0x40] sm:$0xf]  ;;  %v807_v57 = vld [vmem:[%s1150_s0 + $0x4c] sm:$0xf0]  ;;  %v805_v58 = vld [vmem:[%s1150_s0 + $0x44] sm:$0xf] }
  0x12   :  { %373 = vmatpush.bf16.msra.mxu0 %v816_v16  ;;  %v641_v59 = vld [vmem:[%s1150_s0 + $0x50] sm:$0xf0]  ;;  %v647_v60 = vld [vmem:[%s1150_s0 + $0x48] sm:$0xf]  ;;  %v808_v61 = vld [vmem:[%s1150_s0 + $0x54] sm:$0xf0]  ;;  %v640_v0 = vor.u32 %v807_v57, %v639_v56 }
  0x13   :  { %402 = vmatpush.bf16.msra.mxu1 %v824_v17  ;;  %v806_v62 = vld [vmem:[%s1150_s0 + $0x4c] sm:$0xf]  ;;  %v649_v63 = vld [vmem:[%s1150_s0 + $0x58] sm:$0xf0]  ;;  %v644_v1 = vor.u32 %v805_v58, %v641_v59  ;;  %v648_v2 = vor.u32 %v808_v61, %v647_v60  ;;  %v655_v4 = vld [vmem:[%s1150_s0 + $0x60] sm:$0xf] }
  0x14   :  { %431 = vmatpush.bf16.msra.mxu2 %v832_v18  ;;  %v652_v3 = vor.u32 %v806_v62, %v649_v63  ;;  %v811_v5 = vld [vmem:[%s1150_s0 + $0x6c] sm:$0xf0]  ;;  %v809_v6 = vld [vmem:[%s1150_s0 + $0x64] sm:$0xf]  ;;  %v657_v7 = vld [vmem:[%s1150_s0 + $0x70] sm:$0xf0] }
  0x15   :  { %460 = vmatpush.bf16.msra.mxu3 %v840_v19  ;;  %v663_v8 = vld [vmem:[%s1150_s0 + $0x68] sm:$0xf]  ;;  %v812_v9 = vld [vmem:[%s1150_s0 + $0x74] sm:$0xf0]  ;;  %v810_v10 = vld [vmem:[%s1150_s0 + $0x6c] sm:$0xf]  ;;  %v656_v12 = vor.u32 %v811_v5, %v655_v4  ;;  %v660_v13 = vor.u32 %v809_v6, %v657_v7 }
  0x16   :  { %374 = vmatpush.bf16.msra.mxu0 %v815_v20  ;;  %v665_v11 = vld [vmem:[%s1150_s0 + $0x78] sm:$0xf0]  ;;  %v664_v14 = vor.u32 %v812_v9, %v663_v8 }
  0x17   :  { %403 = vmatpush.bf16.msra.mxu1 %v823_v21  ;;  %v668_v15 = vor.u32 %v810_v10, %v665_v11 }
  0x18   :  { %432 = vmatpush.bf16.msra.mxu2 %v831_v22 }
  0x19   :  { %461 = vmatpush.bf16.msra.mxu3 %v839_v23 }
  0x1a   :  { %375 = vmatpush.bf16.msra.mxu0 %v814_v24 }
  0x1b   :  { %404 = vmatpush.bf16.msra.mxu1 %v822_v25 }
  0x1c   :  { %433 = vmatpush.bf16.msra.mxu2 %v830_v26 }
  0x1d   :  { %462 = vmatpush.bf16.msra.mxu3 %v838_v27 }
  0x1e   :  { %376 = vmatpush.bf16.msra.mxu0 %v813_v28 }
  0x1f   :  { %405 = vmatpush.bf16.msra.mxu1 %v821_v29 }
  0x20   :  { %434 = vmatpush.bf16.msra.mxu2 %v829_v30 }
  0x21   :  { %463 = vmatpush.bf16.msra.mxu3 %v837_v31  ;;  %377 = vmatmul.bf16.vlgmr.msra.gmra.mxu0 %v608_v40 }
  0x22   :  { %406 = vmatmul.bf16.vlgmr.msra.gmra.mxu1 %v612_v41 }
  0x23   :  { %435 = vmatmul.bf16.vlgmr.msra.gmra.mxu2 %v616_v42 }
  0x24   :  { %464 = vmatmul.bf16.vlgmr.msra.gmra.mxu3 %v620_v43 }
  0x31   :  { %382 = vmatmul.bf16.gmra.mxu0 %v624_v52 }
  0x32   :  { %411 = vmatmul.bf16.gmra.mxu1 %v628_v53 }
  0x33   :  { %440 = vmatmul.bf16.gmra.mxu2 %v632_v54 }
  0x34   :  { %469 = vmatmul.bf16.gmra.mxu3 %v636_v55 }
  0x41   :  { %387 = vmatmul.bf16.gmra.mxu0 %v640_v0 }
  0x42   :  { %416 = vmatmul.bf16.gmra.mxu1 %v644_v1 }
  0x43   :  { %445 = vmatmul.bf16.gmra.mxu2 %v648_v2 }
  0x44   :  { %474 = vmatmul.bf16.gmra.mxu3 %v652_v3 }
  0x51   :  { %392 = vmatmul.bf16.gmra.mxu0 %v656_v12 }
  0x52   :  { %421 = vmatmul.bf16.gmra.mxu1 %v660_v13 }
  0x53   :  { %450 = vmatmul.bf16.gmra.mxu2 %v664_v14 }
  0x54   :  { %479 = vmatmul.bf16.gmra.mxu3 %v668_v15 }
  0x9e   :  { %v378_v16 = vpop.f32.mrf.mxu0 }
  0x9f   :  { %v407_v17 = vpop.f32.mrf.mxu1 }
  0xa0   :  { %v408_v38 = vadd.f32 %v407_v17, %v378_v16 }
  0xa6   :  { %v436_v18 = vpop.f32.mrf.mxu2  ;;  %v380_v20 = vpop.f32.mrf.mxu0 }
  0xa7   :  { %v465_v19 = vpop.f32.mrf.mxu3  ;;  %v409_v21 = vpop.f32.mrf.mxu1  ;;  %v437_v42 = vadd.f32 %v436_v18, %v408_v38 }
  0xa8   :  { %v410_v39 = vadd.f32 %v409_v21, %v380_v20 }
  0xa9   :  { %v1089_v52 = vadd.f32 %v465_v19, %v437_v42 }
  0xab   :  { %v499_v60 = vmul.f32 %v1089_v52, %v1089_v52 }
  0xae   :  { %v438_v22 = vpop.f32.mrf.mxu2  ;;  %v383_v24 = vpop.f32.mrf.mxu0 }
  0xaf   :  { %v467_v23 = vpop.f32.mrf.mxu3  ;;  %v412_v25 = vpop.f32.mrf.mxu1  ;;  %v439_v41 = vadd.f32 %v438_v22, %v410_v39 }
  0xb0   :  { %v413_v40 = vadd.f32 %v412_v25, %v383_v24 }
  0xb1   :  { %v1087_v50 = vadd.f32 %v467_v23, %v439_v41 }
  0xb3   :  { %v500_v57 = vmul.f32 %v1087_v50, %v1087_v50  ;;  %v485_v63 = vadd.f32 %v1087_v50, %v1089_v52 }
  0xb5   :  { %v507_v3 = vadd.f32 %v500_v57, %v499_v60  ;;  %v536_v60 = vld [vmem:[%s1152_s3] sm:$0x1] }
  0xb6   :  { %v441_v26 = vpop.f32.mrf.mxu2  ;;  %v385_v28 = vpop.f32.mrf.mxu0 }
  0xb7   :  { %v470_v27 = vpop.f32.mrf.mxu3  ;;  %v414_v29 = vpop.f32.mrf.mxu1  ;;  %v442_v45 = vadd.f32 %v441_v26, %v413_v40 }
  0xb8   :  { %v415_v46 = vadd.f32 %v414_v29, %v385_v28 }
  0xb9   :  { %v1091_v53 = vadd.f32 %v470_v27, %v442_v45 }
  0xbb   :  { %v501_v0 = vmul.f32 %v1091_v53, %v1091_v53  ;;  %v486_v4 = vadd.f32 %v485_v63, %v1091_v53 }
  0xbd   :  { %v508_v9 = vadd.f32 %v507_v3, %v501_v0 }
  0xbe   :  { %v443_v30 = vpop.f32.mrf.mxu2  ;;  %v388_v32 = vpop.f32.mrf.mxu0 }
  0xbf   :  { %v472_v31 = vpop.f32.mrf.mxu3  ;;  %v417_v33 = vpop.f32.mrf.mxu1  ;;  %v444_v51 = vadd.f32 %v443_v30, %v415_v46 }
  0xc0   :  { %v418_v47 = vadd.f32 %v417_v33, %v388_v32 }
  0xc1   :  { %v1095_v58 = vadd.f32 %v472_v31, %v444_v51 }
  0xc3   :  { %v502_v5 = vmul.f32 %v1095_v58, %v1095_v58  ;;  %v487_v10 = vadd.f32 %v486_v4, %v1095_v58 }
  0xc5   :  { %v509_v13 = vadd.f32 %v508_v9, %v502_v5 }
  0xc6   :  { %v446_v34 = vpop.f32.mrf.mxu2  ;;  %v390_v36 = vpop.f32.mrf.mxu0 }
  0xc7   :  { %v475_v35 = vpop.f32.mrf.mxu3  ;;  %v419_v37 = vpop.f32.mrf.mxu1  ;;  %v447_v54 = vadd.f32 %v446_v34, %v418_v47 }
  0xc8   :  { %v420_v55 = vadd.f32 %v419_v37, %v390_v36 }
  0xc9   :  { %v1103_v1 = vadd.f32 %v475_v35, %v447_v54 }
  0xcb   :  { %v503_v11 = vmul.f32 %v1103_v1, %v1103_v1  ;;  %v488_v14 = vadd.f32 %v487_v10, %v1103_v1 }
  0xcd   :  { %v510_v18 = vadd.f32 %v509_v13, %v503_v11 }
  0xce   :  { %v448_v43 = vpop.f32.mrf.mxu2  ;;  %v393_v48 = vpop.f32.mrf.mxu0 }
  0xcf   :  { %v477_v44 = vpop.f32.mrf.mxu3  ;;  %v422_v49 = vpop.f32.mrf.mxu1  ;;  %v449_v59 = vadd.f32 %v448_v43, %v420_v55  ;;  %v523_v55 = vld [vmem:[%s1151_s2] sm:$0x1] }
  0xd0   :  { %v423_v56 = vadd.f32 %v422_v49, %v393_v48 }
  0xd1   :  { %v1108_v6 = vadd.f32 %v477_v44, %v449_v59 }
  0xd3   :  { %v504_v15 = vmul.f32 %v1108_v6, %v1108_v6  ;;  %v489_v19 = vadd.f32 %v488_v14, %v1108_v6 }
  0xd5   :  { %v511_v23 = vadd.f32 %v510_v18, %v504_v15 }
  0xd6   :  { %v451_v61 = vpop.f32.mrf.mxu2  ;;  %v395_v7 = vpop.f32.mrf.mxu0 }
  0xd7   :  { %v480_v62 = vpop.f32.mrf.mxu3  ;;  %v452_v2 = vadd.f32 %v451_v61, %v423_v56  ;;  %v424_v8 = vpop.f32.mrf.mxu1 }
  0xd8   :  { %v425_v16 = vadd.f32 %v424_v8, %v395_v7 }
  0xd9   :  { %v481_v12 = vadd.f32 %v480_v62, %v452_v2 }
  0xdb   :  { %v505_v20 = vmul.f32 %v481_v12, %v481_v12  ;;  %v490_v24 = vadd.f32 %v489_v19, %v481_v12 }
  0xdd   :  { %v512_v26 = vadd.f32 %v511_v23, %v505_v20 }
  0xde   :  { %v453_v17 = vpop.f32.mrf.mxu2 }
  0xdf   :  { %v454_v21 = vadd.f32 %v453_v17, %v425_v16  ;;  %v482_v22 = vpop.f32.mrf.mxu3 }
  0xe1   :  { %v483_v25 = vadd.f32 %v482_v22, %v454_v21 }
  0xe3   :  { %v491_v27 = vadd.f32 %v490_v24, %v483_v25  ;;  %v506_v28 = vmul.f32 %v483_v25, %v483_v25 }
  0xe5   :  { %v492_v29 = vrot.slane %v491_v27, 4  ;;  %v513_v30 = vadd.f32 %v512_v26, %v506_v28 }
  0xe7   :  { %v493_v31 = vadd.f32 %v492_v29, %v491_v27  ;;  %v514_v32 = vrot.slane %v513_v30, 4 }
  0xe9   :  { %v494_v33 = vrot.slane %v493_v31, 2  ;;  %v515_v34 = vadd.f32 %v514_v32, %v513_v30 }
  0xeb   :  { %v495_v35 = vadd.f32 %v494_v33, %v493_v31  ;;  %v516_v36 = vrot.slane %v515_v34, 2 }
  0xed   :  { %v496_v37 = vrot.slane %v495_v35, 1  ;;  %v517_v38 = vadd.f32 %v516_v36, %v515_v34 }
  0xef   :  { %v497_v39 = vadd.f32 %v496_v37, %v495_v35  ;;  %v518_v40 = vrot.slane %v517_v38, 1 }
  0xf1   :  { %v498_v41 = vmul.f32 0.02, %v497_v39  ;;  %v519_v42 = vadd.f32 %v518_v40, %v517_v38 }
  0xf3   :  { %v520_v43 = vmul.f32 0.02, %v519_v42  ;;  %v521_v44 = vmul.f32 %v498_v41, %v498_v41 }
  0xf5   :  { %v522_v45 = vsub.f32 %v520_v43, %v521_v44 }
  0xf7   :  { %v524_v46 = vadd.f32 1e-05, %v522_v45 }
  0xf9   :  { %868 = vrsqrt.f32 %v524_v46  ;;  %vm531_vm1 = vweird.f32 %v524_v46 }
  0xff   :  { %v869_v47 = vpop.eup %868 }
 0x100   :  { %v526_v48 = vmul.f32 %v869_v47, %v524_v46  ;;  %vm532_vm0 = vweird.f32 %v869_v47 }
 0x101   :  { %vm533_vm2 = vmor %vm531_vm1, %vm532_vm0 }
 0x102   :  { %v527_v49 = vmul.f32 %v869_v47, %v526_v48 }
 0x104   :  { %v528_v51 = vmul.f32 0.5, %v527_v49 }
 0x106   :  { %v529_v54 = vsub.f32 1.5, %v528_v51 }
 0x108   :  { %v530_v56 = vmul.f32 %v869_v47, %v529_v54 }
 0x10a   :  { %v534_v57 = vsel %vm533_vm2, %v869_v47, %v530_v56 }
 0x10b   :  { %v535_v59 = vmul.f32 %v534_v57, %v523_v55 }
 0x10d   :  { %v537_v61 = vmul.f32 %v535_v59, %v498_v41  ;;  %v540_v62 = vperm.slane %v535_v59, 0 }
 0x10f   :  { %v538_v63 = vsub.f32 %v536_v60, %v537_v61  ;;  %v542_v0 = vmul.f32 %v540_v62, %v1089_v52  ;;  %v543_v2 = vmul.f32 %v540_v62, %v1087_v50  ;;  %v544_v3 = vmul.f32 %v540_v62, %v1091_v53 }
 0x110   :  { %v545_v4 = vmul.f32 %v540_v62, %v1095_v58  ;;  %v546_v7 = vmul.f32 %v540_v62, %v1103_v1  ;;  %v547_v8 = vmul.f32 %v540_v62, %v1108_v6  ;;  %v548_v9 = vmul.f32 %v540_v62, %v481_v12 }
 0x111   :  { %v551_v5 = vperm.slane %v538_v63, 0  ;;  %v549_v10 = vmul.f32 %v540_v62, %v483_v25 }
 0x113   :  { %v553_v11 = vadd.f32 %v551_v5, %v542_v0  ;;  %v554_v13 = vadd.f32 %v551_v5, %v543_v2  ;;  %v555_v14 = vadd.f32 %v551_v5, %v544_v3  ;;  %v556_v15 = vadd.f32 %v551_v5, %v545_v4 }
 0x114   :  { %v557_v16 = vadd.f32 %v551_v5, %v546_v7  ;;  %v558_v17 = vadd.f32 %v551_v5, %v547_v8  ;;  %v559_v52 = vadd.f32 %v551_v5, %v548_v9  ;;  %v560_v18 = vadd.f32 %v551_v5, %v549_v10 }
 0x115   :  { %vm561_vm3 = vcmp.gt.f32.partialorder %v553_v11, 0.0  ;;  %vm562_vm4 = vcmp.gt.f32.partialorder %v554_v13, 0.0  ;;  %vm563_vm5 = vcmp.gt.f32.partialorder %v555_v14, 0.0  ;;  %vm564_vm6 = vcmp.gt.f32.partialorder %v556_v15, 0.0 }
 0x116   :  { %vm565_vm7 = vcmp.gt.f32.partialorder %v557_v16, 0.0  ;;  %vm566_vm8 = vcmp.gt.f32.partialorder %v558_v17, 0.0  ;;  %vm567_vm9 = vcmp.gt.f32.partialorder %v559_v52, 0.0  ;;  %vm568_vm10 = vcmp.gt.f32.partialorder %v560_v18, 0.0 }
 0x117   :  { %v569_v50 = vmul.f32 0.2, %v553_v11  ;;  %v570_v53 = vmul.f32 0.2, %v554_v13  ;;  %v571_v58 = vmul.f32 0.2, %v555_v14 }
 0x118   :  { %v572_v1 = vmul.f32 0.2, %v556_v15  ;;  %v573_v6 = vmul.f32 0.2, %v557_v16  ;;  %v574_v12 = vmul.f32 0.2, %v558_v17 }
 0x119   :  { %v575_v19 = vmul.f32 0.2, %v559_v52  ;;  %v576_v20 = vmul.f32 0.2, %v560_v18  ;;  %v577_v21 = vsel %vm561_vm3, %v553_v11, %v569_v50  ;;  %v578_v22 = vsel %vm562_vm4, %v554_v13, %v570_v53 }
 0x11a   :  { %v579_v23 = vsel %vm563_vm5, %v555_v14, %v571_v58  ;;  %v580_v24 = vsel %vm564_vm6, %v556_v15, %v572_v1  ;;  %v581_v25 = vsel %vm565_vm7, %v557_v16, %v573_v6  ;;  %v582_v26 = vsel %vm566_vm8, %v558_v17, %v574_v12 }
 0x11b   :  { %v583_v27 = vsel %vm567_vm9, %v559_v52, %v575_v19  ;;  %v584_v28 = vsel %vm568_vm10, %v560_v18, %v576_v20  ;;  %v848_v29 = vpack.c.bf16 %v578_v22, %v577_v21  ;;  %v853_v30 = vpack.c.bf16 %v580_v24, %v579_v23 }
 0x11c   :  { %v858_v31 = vpack.c.bf16 %v582_v26, %v581_v25  ;;  %v863_v32 = vpack.c.bf16 %v584_v28, %v583_v27 }
 0x11d   :  { %849 = vst [vmem:[%s1153_s4] sm:$0xff] %v848_v29  }
 0x11e   :  { %865 = vst [vmem:[%s1153_s4 + $0x8] sm:$0xff] %v853_v30  }
 0x11f   :  { %866 = vst [vmem:[%s1153_s4 + $0x10] sm:$0xff] %v858_v31  }
 0x120   :  { %867 = vst [vmem:[%s1153_s4 + $0x18] sm:$0xff] %v863_v32  }

// kernel: discriminator_forward.9
= control target key start
LH: loop header
LB: loop body
LE: loop exit
PB: predicated region body
PF: predicated region fallthrough
CT: control target
= control target key end

     0   :  { %s1344_s1 = inlined_call_operand.vmem [shape: bf16[1024,128], index: 1, kind: input, shape index: {}]   ;;  %s1345_s2 = inlined_call_operand.vmem [shape: f32[1,128], index: 2, kind: input, shape index: {}]   ;;  %s1346_s0 = inlined_call_operand.vmem [shape: bf16[16,1024], index: 0, kind: input, shape index: {}]   ;;  %s1347_s3 = inlined_call_operand.vmem [shape: f32[16,128], index: 3, kind: output, shape index: {}]  }
   0x1   :  { %v1009_v0 = vld [vmem:[%s1344_s1 + $0x38] sm:$0xff]  ;;  %v1008_v4 = vld [vmem:[%s1344_s1 + $0x30] sm:$0xff]  ;;  %v1007_v8 = vld [vmem:[%s1344_s1 + $0x28] sm:$0xff] }
   0x2   :  { %v1017_v1 = vld [vmem:[%s1344_s1 + $0x78] sm:$0xff]  ;;  %578 = vmatpush.bf16.msra.mxu0 %v1009_v0  ;;  %v1016_v5 = vld [vmem:[%s1344_s1 + $0x70] sm:$0xff]  ;;  %v1015_v9 = vld [vmem:[%s1344_s1 + $0x68] sm:$0xff] }
   0x3   :  { %v1025_v2 = vld [vmem:[%s1344_s1 + $0xb8] sm:$0xff]  ;;  %592 = vmatpush.bf16.msra.mxu1 %v1017_v1  ;;  %v1024_v6 = vld [vmem:[%s1344_s1 + $0xb0] sm:$0xff]  ;;  %v1023_v10 = vld [vmem:[%s1344_s1 + $0xa8] sm:$0xff] }
   0x4   :  { %v1033_v3 = vld [vmem:[%s1344_s1 + $0xf8] sm:$0xff]  ;;  %606 = vmatpush.bf16.msra.mxu2 %v1025_v2  ;;  %v1032_v7 = vld [vmem:[%s1344_s1 + $0xf0] sm:$0xff]  ;;  %v1031_v11 = vld [vmem:[%s1344_s1 + $0xe8] sm:$0xff] }
   0x5   :  { %620 = vmatpush.bf16.msra.mxu3 %v1033_v3  ;;  %v1006_v12 = vld [vmem:[%s1344_s1 + $0x20] sm:$0xff]  ;;  %v1005_v16 = vld [vmem:[%s1344_s1 + $0x18] sm:$0xff]  ;;  %v1004_v20 = vld [vmem:[%s1344_s1 + $0x10] sm:$0xff] }
   0x6   :  { %579 = vmatpush.bf16.msra.mxu0 %v1008_v4  ;;  %v1014_v13 = vld [vmem:[%s1344_s1 + $0x60] sm:$0xff]  ;;  %v1013_v17 = vld [vmem:[%s1344_s1 + $0x58] sm:$0xff]  ;;  %v1012_v21 = vld [vmem:[%s1344_s1 + $0x50] sm:$0xff] }
   0x7   :  { %593 = vmatpush.bf16.msra.mxu1 %v1016_v5  ;;  %v1022_v14 = vld [vmem:[%s1344_s1 + $0xa0] sm:$0xff]  ;;  %v1021_v18 = vld [vmem:[%s1344_s1 + $0x98] sm:$0xff]  ;;  %v1020_v22 = vld [vmem:[%s1344_s1 + $0x90] sm:$0xff] }
   0x8   :  { %607 = vmatpush.bf16.msra.mxu2 %v1024_v6  ;;  %v1030_v15 = vld [vmem:[%s1344_s1 + $0xe0] sm:$0xff]  ;;  %v1029_v19 = vld [vmem:[%s1344_s1 + $0xd8] sm:$0xff]  ;;  %v1028_v23 = vld [vmem:[%s1344_s1 + $0xd0] sm:$0xff] }
   0x9   :  { %621 = vmatpush.bf16.msra.mxu3 %v1032_v7  ;;  %v1003_v24 = vld [vmem:[%s1344_s1 + $0x8] sm:$0xff]  ;;  %v1002_v28 = vld [vmem:[%s1344_s1] sm:$0xff]  ;;  %v1041_v32 = vld [vmem:[%s1344_s1 + $0x138] sm:$0xff] }
   0xa   :  { %580 = vmatpush.bf16.msra.mxu0 %v1007_v8  ;;  %v1011_v25 = vld [vmem:[%s1344_s1 + $0x48] sm:$0xff]  ;;  %v1010_v29 = vld [vmem:[%s1344_s1 + $0x40] sm:$0xff]  ;;  %v1049_v33 = vld [vmem:[%s1344_s1 + $0x178] sm:$0xff] }
   0xb   :  { %594 = vmatpush.bf16.msra.mxu1 %v1015_v9  ;;  %v1019_v26 = vld [vmem:[%s1344_s1 + $0x88] sm:$0xff]  ;;  %v1018_v30 = vld [vmem:[%s1344_s1 + $0x80] sm:$0xff]  ;;  %v1057_v42 = vld [vmem:[%s1344_s1 + $0x1b8] sm:$0xff] }
   0xc   :  { %608 = vmatpush.bf16.msra.mxu2 %v1023_v10  ;;  %v1027_v27 = vld [vmem:[%s1344_s1 + $0xc8] sm:$0xff]  ;;  %v1026_v31 = vld [vmem:[%s1344_s1 + $0xc0] sm:$0xff]  ;;  %v1065_v43 = vld [vmem:[%s1344_s1 + $0x1f8] sm:$0xff] }
   0xd   :  { %622 = vmatpush.bf16.msra.mxu3 %v1031_v11  ;;  %v716_v34 = vld [vmem:[%s1346_s0 + $0x8] sm:$0xf]  ;;  %v708_v36 = vld [vmem:[%s1346_s0] sm:$0xf]  ;;  %v995_v38 = vld [vmem:[%s1346_s0 + $0xc] sm:$0xf] }
   0xe   :  { %581 = vmatpush.bf16.msra.mxu0 %v1006_v12  ;;  %v999_v35 = vld [vmem:[%s1346_s0 + $0x24] sm:$0xf0]  ;;  %v998_v37 = vld [vmem:[%s1346_s0 + $0x1c] sm:$0xf0]  ;;  %v718_v39 = vld [vmem:[%s1346_s0 + $0x28] sm:$0xf0] }
   0xf   :  { %595 = vmatpush.bf16.msra.mxu1 %v1014_v13  ;;  %v994_v40 = vld [vmem:[%s1346_s0 + $0x4] sm:$0xf]  ;;  %v717_v44 = vor.u32 %v999_v35, %v716_v34  ;;  %v709_v45 = vor.u32 %v998_v37, %v708_v36  ;;  %v721_v46 = vor.u32 %v995_v38, %v718_v39  ;;  %v1040_v48 = vld [vmem:[%s1344_s1 + $0x130] sm:$0xff]  ;;  %v1039_v52 = vld [vmem:[%s1344_s1 + $0x128] sm:$0xff] }
  0x10   :  { %609 = vmatpush.bf16.msra.mxu2 %v1022_v14  ;;  %v710_v41 = vld [vmem:[%s1346_s0 + $0x20] sm:$0xf0]  ;;  %v1048_v49 = vld [vmem:[%s1344_s1 + $0x170] sm:$0xff]  ;;  %v1047_v53 = vld [vmem:[%s1344_s1 + $0x168] sm:$0xff] }
  0x11   :  { %623 = vmatpush.bf16.msra.mxu3 %v1030_v15  ;;  %v713_v47 = vor.u32 %v994_v40, %v710_v41  ;;  %v1056_v50 = vld [vmem:[%s1344_s1 + $0x1b0] sm:$0xff]  ;;  %v1055_v54 = vld [vmem:[%s1344_s1 + $0x1a8] sm:$0xff]  ;;  %v1038_v56 = vld [vmem:[%s1344_s1 + $0x120] sm:$0xff] }
  0x12   :  { %582 = vmatpush.bf16.msra.mxu0 %v1005_v16  ;;  %v1064_v51 = vld [vmem:[%s1344_s1 + $0x1f0] sm:$0xff]  ;;  %v1063_v55 = vld [vmem:[%s1344_s1 + $0x1e8] sm:$0xff]  ;;  %v1046_v57 = vld [vmem:[%s1344_s1 + $0x160] sm:$0xff] }
  0x13   :  { %596 = vmatpush.bf16.msra.mxu1 %v1013_v17  ;;  %v1054_v58 = vld [vmem:[%s1344_s1 + $0x1a0] sm:$0xff]  ;;  %v1037_v60 = vld [vmem:[%s1344_s1 + $0x118] sm:$0xff]  ;;  %v1036_v0 = vld [vmem:[%s1344_s1 + $0x110] sm:$0xff] }
  0x14   :  { %610 = vmatpush.bf16.msra.mxu2 %v1021_v18  ;;  %v1062_v59 = vld [vmem:[%s1344_s1 + $0x1e0] sm:$0xff]  ;;  %v1045_v61 = vld [vmem:[%s1344_s1 + $0x158] sm:$0xff]  ;;  %v1044_v1 = vld [vmem:[%s1344_s1 + $0x150] sm:$0xff] }
  0x15   :  { %624 = vmatpush.bf16.msra.mxu3 %v1029_v19  ;;  %v1053_v62 = vld [vmem:[%s1344_s1 + $0x198] sm:$0xff]  ;;  %v1052_v2 = vld [vmem:[%s1344_s1 + $0x190] sm:$0xff]  ;;  %v1035_v4 = vld [vmem:[%s1344_s1 + $0x108] sm:$0xff] }
  0x16   :  { %583 = vmatpush.bf16.msra.mxu0 %v1004_v20  ;;  %v1061_v63 = vld [vmem:[%s1344_s1 + $0x1d8] sm:$0xff]  ;;  %v1060_v3 = vld [vmem:[%s1344_s1 + $0x1d0] sm:$0xff]  ;;  %v1043_v5 = vld [vmem:[%s1344_s1 + $0x148] sm:$0xff] }
  0x17   :  { %597 = vmatpush.bf16.msra.mxu1 %v1012_v21  ;;  %v1051_v6 = vld [vmem:[%s1344_s1 + $0x188] sm:$0xff]  ;;  %v1034_v8 = vld [vmem:[%s1344_s1 + $0x100] sm:$0xff]  ;;  %v724_v12 = vld [vmem:[%s1346_s0 + $0x10] sm:$0xf] }
  0x18   :  { %611 = vmatpush.bf16.msra.mxu2 %v1020_v22  ;;  %v1059_v7 = vld [vmem:[%s1344_s1 + $0x1c8] sm:$0xff]  ;;  %v1042_v9 = vld [vmem:[%s1344_s1 + $0x140] sm:$0xff]  ;;  %v1000_v13 = vld [vmem:[%s1346_s0 + $0x2c] sm:$0xf0] }
  0x19   :  { %625 = vmatpush.bf16.msra.mxu3 %v1028_v23  ;;  %v1050_v10 = vld [vmem:[%s1344_s1 + $0x180] sm:$0xff]  ;;  %v996_v14 = vld [vmem:[%s1346_s0 + $0x14] sm:$0xf]  ;;  %v732_v16 = vld [vmem:[%s1346_s0 + $0x18] sm:$0xf]  ;;  %v725_v20 = vor.u32 %v1000_v13, %v724_v12 }
  0x1a   :  { %584 = vmatpush.bf16.msra.mxu0 %v1003_v24  ;;  %v1058_v11 = vld [vmem:[%s1344_s1 + $0x1c0] sm:$0xff]  ;;  %v726_v15 = vld [vmem:[%s1346_s0 + $0x30] sm:$0xf0]  ;;  %v1001_v17 = vld [vmem:[%s1346_s0 + $0x34] sm:$0xf0] }
  0x1b   :  { %598 = vmatpush.bf16.msra.mxu1 %v1011_v25  ;;  %v997_v18 = vld [vmem:[%s1346_s0 + $0x1c] sm:$0xf]  ;;  %v729_v21 = vor.u32 %v996_v14, %v726_v15  ;;  %v733_v22 = vor.u32 %v1001_v17, %v732_v16  ;;  %v1066_v25 = vld [vmem:[%s1345_s2] ss:$0 sm:$0xff] }
  0x1c   :  { %612 = vmatpush.bf16.msra.mxu2 %v1019_v26  ;;  %v734_v19 = vld [vmem:[%s1346_s0 + $0x38] sm:$0xf0] }
  0x1d   :  { %626 = vmatpush.bf16.msra.mxu3 %v1027_v27  ;;  %v737_v23 = vor.u32 %v997_v18, %v734_v19 }
  0x1e   :  { %585 = vmatpush.bf16.msra.mxu0 %v1002_v28 }
  0x1f   :  { %599 = vmatpush.bf16.msra.mxu1 %v1010_v29 }
  0x20   :  { %613 = vmatpush.bf16.msra.mxu2 %v1018_v30 }
  0x21   :  { %627 = vmatpush.bf16.msra.mxu3 %v1026_v31  ;;  %586 = vmatmul.bf16.vlgmr.msra.gmra.mxu0 %v709_v45 }
  0x22   :  { %634 = vmatpush.bf16.msrb.mxu0 %v1041_v32  ;;  %600 = vmatmul.bf16.vlgmr.msra.gmra.mxu1 %v713_v47 }
  0x23   :  { %648 = vmatpush.bf16.msrb.mxu1 %v1049_v33  ;;  %614 = vmatmul.bf16.vlgmr.msra.gmra.mxu2 %v717_v44 }
  0x24   :  { %662 = vmatpush.bf16.msrb.mxu2 %v1057_v42  ;;  %628 = vmatmul.bf16.vlgmr.msra.gmra.mxu3 %v721_v46 }
  0x25   :  { %676 = vmatpush.bf16.msrb.mxu3 %v1065_v43 }
  0x26   :  { %635 = vmatpush.bf16.msrb.mxu0 %v1040_v48 }
  0x27   :  { %649 = vmatpush.bf16.msrb.mxu1 %v1048_v49 }
  0x28   :  { %663 = vmatpush.bf16.msrb.mxu2 %v1056_v50 }
  0x29   :  { %677 = vmatpush.bf16.msrb.mxu3 %v1064_v51 }
  0x2a   :  { %636 = vmatpush.bf16.msrb.mxu0 %v1039_v52 }
  0x2b   :  { %650 = vmatpush.bf16.msrb.mxu1 %v1047_v53 }
  0x2c   :  { %664 = vmatpush.bf16.msrb.mxu2 %v1055_v54 }
  0x2d   :  { %678 = vmatpush.bf16.msrb.mxu3 %v1063_v55 }
  0x2e   :  { %637 = vmatpush.bf16.msrb.mxu0 %v1038_v56 }
  0x2f   :  { %651 = vmatpush.bf16.msrb.mxu1 %v1046_v57 }
  0x30   :  { %665 = vmatpush.bf16.msrb.mxu2 %v1054_v58 }
  0x31   :  { %679 = vmatpush.bf16.msrb.mxu3 %v1062_v59 }
  0x32   :  { %638 = vmatpush.bf16.msrb.mxu0 %v1037_v60 }
  0x33   :  { %652 = vmatpush.bf16.msrb.mxu1 %v1045_v61 }
  0x34   :  { %666 = vmatpush.bf16.msrb.mxu2 %v1053_v62 }
  0x35   :  { %680 = vmatpush.bf16.msrb.mxu3 %v1061_v63 }
  0x36   :  { %639 = vmatpush.bf16.msrb.mxu0 %v1036_v0 }
  0x37   :  { %653 = vmatpush.bf16.msrb.mxu1 %v1044_v1 }
  0x38   :  { %667 = vmatpush.bf16.msrb.mxu2 %v1052_v2 }
  0x39   :  { %681 = vmatpush.bf16.msrb.mxu3 %v1060_v3 }
  0x3a   :  { %640 = vmatpush.bf16.msrb.mxu0 %v1035_v4 }
  0x3b   :  { %654 = vmatpush.bf16.msrb.mxu1 %v1043_v5 }
  0x3c   :  { %668 = vmatpush.bf16.msrb.mxu2 %v1051_v6 }
  0x3d   :  { %682 = vmatpush.bf16.msrb.mxu3 %v1059_v7 }
  0x3e   :  { %641 = vmatpush.bf16.msrb.mxu0 %v1034_v8 }
  0x3f   :  { %655 = vmatpush.bf16.msrb.mxu1 %v1042_v9 }
  0x40   :  { %669 = vmatpush.bf16.msrb.mxu2 %v1050_v10 }
  0x41   :  { %683 = vmatpush.bf16.msrb.mxu3 %v1058_v11  ;;  %642 = vmatmul.bf16.vlgmr.msrb.gmra.mxu0 %v725_v20 }
  0x42   :  { %656 = vmatmul.bf16.vlgmr.msrb.gmra.mxu1 %v729_v21 }
  0x43   :  { %670 = vmatmul.bf16.vlgmr.msrb.gmra.mxu2 %v733_v22 }
  0x44   :  { %684 = vmatmul.bf16.vlgmr.msrb.gmra.mxu3 %v737_v23 }
  0x9e   :  { %v587_v24 = vpop.f32.mrf.mxu0 }
  0x9f   :  { %v601_v26 = vpop.f32.mrf.mxu1  ;;  %v588_v27 = vadd.f32 %v1066_v25, %v587_v24 }
  0xa1   :  { %v602_v30 = vadd.f32 %v601_v26, %v588_v27 }
  0xa6   :  { %v615_v28 = vpop.f32.mrf.mxu2  ;;  %v589_v31 = vpop.f32.mrf.mxu0 }
  0xa7   :  { %v629_v29 = vpop.f32.mrf.mxu3  ;;  %v603_v32 = vpop.f32.mrf.mxu1  ;;  %v616_v33 = vadd.f32 %v615_v28, %v602_v30  ;;  %v590_v34 = vadd.f32 %v1066_v25, %v589_v31 }
  0xa9   :  { %v630_v37 = vadd.f32 %v629_v29, %v616_v33  ;;  %v604_v38 = vadd.f32 %v603_v32, %v590_v34 }
  0xae   :  { %v617_v35 = vpop.f32.mrf.mxu2 }
  0xaf   :  { %v631_v36 = vpop.f32.mrf.mxu3  ;;  %v618_v42 = vadd.f32 %v617_v35, %v604_v38 }
  0xb1   :  { %v632_v46 = vadd.f32 %v631_v36, %v618_v42 }
  0xbe   :  { %v643_v39 = vpop.f32.mrf.mxu0 }
  0xbf   :  { %v644_v40 = vadd.f32 %v643_v39, %v630_v37  ;;  %v657_v41 = vpop.f32.mrf.mxu1 }
  0xc1   :  { %v658_v43 = vadd.f32 %v657_v41, %v644_v40 }
  0xc6   :  { %v671_v44 = vpop.f32.mrf.mxu2  ;;  %v645_v48 = vpop.f32.mrf.mxu0 }
  0xc7   :  { %v685_v45 = vpop.f32.mrf.mxu3  ;;  %v672_v47 = vadd.f32 %v671_v44, %v658_v43  ;;  %v646_v50 = vadd.f32 %v645_v48, %v632_v46  ;;  %v659_v52 = vpop.f32.mrf.mxu1 }
  0xc9   :  { %v686_v49 = vadd.f32 %v685_v45, %v672_v47  ;;  %v660_v54 = vadd.f32 %v659_v52, %v646_v50 }
  0xcb   :  { %v690_v51 = vsub.f32 0.0, %v686_v49 }
  0xcd   :  { %v692_v53 = vmul.f32 1.442695, %v690_v51 }
  0xce   :  { %v673_v55 = vpop.f32.mrf.mxu2 }
  0xcf   :  { %1067 = vpow2.f32 %v692_v53  ;;  %v674_v56 = vadd.f32 %v673_v55, %v660_v54  ;;  %v687_v57 = vpop.f32.mrf.mxu3 }
  0xd1   :  { %v688_v58 = vadd.f32 %v687_v57, %v674_v56 }
  0xd3   :  { %v691_v59 = vsub.f32 0.0, %v688_v58 }
  0xd5   :  { %v1068_v60 = vpop.eup %1067  ;;  %v694_v61 = vmul.f32 1.442695, %v691_v59 }
  0xd6   :  { %v696_v62 = vadd.f32 1.0, %v1068_v60 }
  0xd7   :  { %1069 = vpow2.f32 %v694_v61 }
  0xd8   :  { %1071 = vrcp.f32 %v696_v62 }
  0xdd   :  { %v1070_v63 = vpop.eup %1069 }
  0xde   :  { %v1072_v0 = vpop.eup %1071  ;;  %v697_v1 = vadd.f32 1.0, %v1070_v63 }
  0xdf   :  { %700 = vst [vmem:[%s1347_s3] sm:$0xff] %v1072_v0 }
  0xe0   :  { %1073 = vrcp.f32 %v697_v1 }
  0xe6   :  { %v1074_v2 = vpop.eup %1073 }
  0xe7   :  { %701 = vst [vmem:[%s1347_s3 + $0x8] sm:$0xff] %v1074_v2 }

</bundles_post_ra>
